<compile_context>
chip_gen: v5e
topology: v5e:2x2
jax: 0.10.0
libtpu: 0.0.40
codegen_flags: <defaults>
</compile_context>

<pallas_src>
import functools

import jax
import jax.numpy as jnp
from jax import lax
from jax.experimental import pallas as pl
from jax.experimental.pallas import tpu as pltpu

_EPS = 1e-5
_LANES = 128


def _round_up(v, m):
    return -(-v // m) * m


@functools.lru_cache(maxsize=None)
def _vmem_limit_bytes():
    cap = 64 * 1024 * 1024
    try:
        cap = int(pltpu.get_tpu_info().vmem_capacity_bytes)
    except Exception:
        pass
    return max(16 * 1024 * 1024, min(64 * 1024 * 1024, cap // 2))


def _cp(grid_rank=1):
    return pltpu.CompilerParams(
        dimension_semantics=("parallel",) * grid_rank,
        vmem_limit_bytes=_vmem_limit_bytes())


def _pick_row_tile(rows, chans, max_block_bytes=4 * 1024 * 1024):
    """Largest row tile (multiple of 8) dividing `rows` within the block cap."""
    assert rows % 8 == 0, "N*H*W must be a multiple of 8"
    cap = max(8, min(rows, (max_block_bytes // (4 * chans)) // 8 * 8))
    if cap >= rows and rows >= 16:
        # keep at least two grid steps so the DMA/compute pipeline is exercised
        cap = max(8, (rows // 2) // 8 * 8)
    best = 8
    for t in range(8, cap + 1, 8):
        if rows % t == 0:
            best = t
    return best


def _pad_lanes(a, axis, target, value=0.0):
    pad = target - a.shape[axis]
    if pad == 0:
        return a
    widths = [(0, 0)] * a.ndim
    widths[axis] = (0, pad)
    return jnp.pad(a, widths, constant_values=value)


def _write_stats(st_ref, y):
    # Per-block partial [sum, sum-of-squares] over rows, shape (2, C), f32.
    st_ref[0] = jnp.concatenate(
        [jnp.sum(y, axis=0, keepdims=True),
         jnp.sum(y * y, axis=0, keepdims=True)], axis=0)


# ----------------------- K1: conv1 (1x1) + batch stats -----------------------
def _mm_stats_kernel(x_ref, w_ref, y_ref, st_ref):
    y = jnp.dot(x_ref[...].astype(jnp.bfloat16), w_ref[...],
                preferred_element_type=jnp.float32)
    y_ref[...] = y.astype(y_ref.dtype)
    _write_stats(st_ref, y)


# -------------- K3: bn(scale/shift)+relu + conv3 (1x1) + batch stats ---------
def _norm_relu_mm_stats_kernel(x_ref, sc_ref, sh_ref, w_ref, y_ref, st_ref):
    h = jnp.maximum(x_ref[...].astype(jnp.float32) * sc_ref[...] + sh_ref[...],
                    0.0)
    y = jnp.dot(h.astype(jnp.bfloat16), w_ref[...],
                preferred_element_type=jnp.float32)
    y_ref[...] = y.astype(y_ref.dtype)
    _write_stats(st_ref, y)


def _mm_stats(x2d, w, tm, scale=None, shift=None):
    R, cin = x2d.shape
    cout = w.shape[1]
    T = R // tm
    x_spec = pl.BlockSpec((tm, cin), lambda i: (i, 0))
    w_spec = pl.BlockSpec((cin, cout), lambda i: (0, 0))
    s_spec = pl.BlockSpec((1, cin), lambda i: (0, 0))
    y_spec = pl.BlockSpec((tm, cout), lambda i: (i, 0))
    st_spec = pl.BlockSpec((1, 2, cout), lambda i: (i, 0, 0))
    out_shape = (jax.ShapeDtypeStruct((R, cout), jnp.bfloat16),
                 jax.ShapeDtypeStruct((T, 2, cout), jnp.float32))
    if scale is None:
        return pl.pallas_call(
            _mm_stats_kernel, grid=(T,),
            in_specs=[x_spec, w_spec],
            out_specs=(y_spec, st_spec),
            out_shape=out_shape,
            compiler_params=_cp())(x2d, w)
    return pl.pallas_call(
        _norm_relu_mm_stats_kernel, grid=(T,),
        in_specs=[x_spec, s_spec, s_spec, w_spec],
        out_specs=(y_spec, st_spec),
        out_shape=out_shape,
        compiler_params=_cp())(x2d, scale, shift, w)


# ---------- K2: bn1+relu + conv2 (3x3, dilated) + batch stats, per image -----
def _conv2_stats_kernel(h1_ref, sc_ref, sh_ref, w2_ref, y_ref, st_ref, pad_ref,
                        *, W, dilation, off0, HW):
    d = dilation
    Pp = h1_ref.shape[-1]
    L = pad_ref.shape[1]
    dW = d * W

    # bn1 (folded per-channel scale/shift) + relu in f32, one cast to bf16.
    h_bf = jnp.maximum(
        h1_ref[0].astype(jnp.float32) * sc_ref[...] + sh_ref[...],
        0.0).astype(jnp.bfloat16)

    col = lax.broadcasted_iota(jnp.int32, (HW, 1), 0) % W
    zeros_top = jnp.zeros((off0, Pp), jnp.bfloat16)
    zeros_bot = jnp.zeros((L - off0 - HW, Pp), jnp.bfloat16)
    zrow = jnp.zeros((d, Pp), jnp.bfloat16)

    # Three horizontally pre-shifted, column-masked copies written at
    # sublane-aligned offsets: every per-tap slice below is then aligned
    # (off0 and d*W are multiples of 16 for typical W, d).
    for kx in range(3):
        s = (kx - 1) * d
        if s < 0:
            shifted = jnp.concatenate([zrow, h_bf[:HW + s]], axis=0)
            shifted = jnp.where(col >= -s, shifted, jnp.zeros_like(shifted))
        elif s > 0:
            shifted = jnp.concatenate([h_bf[s:], zrow], axis=0)
            shifted = jnp.where(col < W - s, shifted, jnp.zeros_like(shifted))
        else:
            shifted = h_bf
        pad_ref[kx, 0:off0] = zeros_top
        pad_ref[kx, off0 + HW:L] = zeros_bot
        pad_ref[kx, off0:off0 + HW] = shifted

    # Three matmuls with K = 3*Pp: vertical taps fused on the contraction axis;
    # taps accumulate into a local f32 value (single write of the output block).
    base = off0 - dW
    acc = jnp.zeros((HW, Pp), jnp.float32)
    for kx in range(3):
        patch = jnp.concatenate(
            [pad_ref[kx, base + ky * dW: base + ky * dW + HW]
             for ky in range(3)], axis=-1)                       # (HW, 3*Pp) bf16
        acc = acc + jnp.dot(patch, w2_ref[kx],
                            preferred_element_type=jnp.float32)

    y_ref[0] = acc.astype(y_ref.dtype)
    st_ref[0] = jnp.concatenate(
        [jnp.sum(acc, axis=0, keepdims=True),
         jnp.sum(acc * acc, axis=0, keepdims=True)], axis=0)


def _conv2_stats(h1_2d, sc1, sh1, w2k, N, H, W, dilation):
    HW = H * W
    Pp = h1_2d.shape[1]
    assert HW % 8 == 0, "H*W must be a multiple of 8"
    dW = dilation * W
    off0 = _round_up(max(dW, 1), 16)           # 16-aligned interior offset
    L = _round_up(off0 + HW + dW, 16)
    kernel = functools.partial(_conv2_stats_kernel, W=W, dilation=dilation,
                               off0=off0, HW=HW)
    y, st = pl.pallas_call(
        kernel, grid=(N,),
        in_specs=[pl.BlockSpec((1, HW, Pp), lambda n: (n, 0, 0)),
                  pl.BlockSpec((1, Pp), lambda n: (0, 0)),
                  pl.BlockSpec((1, Pp), lambda n: (0, 0)),
                  pl.BlockSpec((3, 3 * Pp, Pp), lambda n: (0, 0, 0))],
        out_specs=(pl.BlockSpec((1, HW, Pp), lambda n: (n, 0, 0)),
                   pl.BlockSpec((1, 2, Pp), lambda n: (n, 0, 0))),
        out_shape=(jax.ShapeDtypeStruct((N, HW, Pp), jnp.bfloat16),
                   jax.ShapeDtypeStruct((N, 2, Pp), jnp.float32)),
        scratch_shapes=[pltpu.VMEM((3, L, Pp), jnp.bfloat16)],
        compiler_params=_cp(),
    )(h1_2d.reshape(N, HW, Pp), sc1, sh1, w2k)
    return y.reshape(N * HW, Pp), st


# ----------------------- K4: bn3 + residual add + relu -----------------------
def _bn_add_relu_kernel(h_ref, r_ref, sc_ref, sh_ref, o_ref):
    o_ref[...] = jnp.maximum(
        h_ref[...].astype(jnp.float32) * sc_ref[...] + sh_ref[...] + r_ref[...],
        0.0)


def _bn_add_relu(h2d, res2d, scale, shift, tm):
    R, C = h2d.shape
    T = R // tm
    row = pl.BlockSpec((tm, C), lambda i: (i, 0))
    vec = pl.BlockSpec((1, C), lambda i: (0, 0))
    return pl.pallas_call(
        _bn_add_relu_kernel, grid=(T,),
        in_specs=[row, row, vec, vec],
        out_specs=pl.BlockSpec((tm, C), lambda i: (i, 0)),
        out_shape=jax.ShapeDtypeStruct((R, C), jnp.float32),
        compiler_params=_cp())(h2d, res2d, scale, shift)


# ------------------ stats -> per-channel scale / shift (tiny, XLA) -----------
def _bn_scale_shift(st_partial, count, gamma, beta):
    s = jnp.sum(st_partial, axis=0)                    # (2, C), f32
    mu = s[0] / count
    var = jnp.maximum(s[1] / count - mu * mu, 0.0)     # biased batch variance
    scale = gamma.reshape(-1) * lax.rsqrt(var + _EPS)
    shift = beta.reshape(-1) - mu * scale
    return scale[None, :], shift[None, :]


# --------------------------------- forward -----------------------------------
@functools.partial(jax.jit, static_argnames=("dilation",))
def bottleneck_forward_nhwc(x_nhwc, params, *, dilation):
    """Bottleneck forward, NHWC layout (channels on the TPU lane axis)."""
    N, H, W, Cin = x_nhwc.shape
    P = params["w1"].shape[1]
    Cout = params["w3"].shape[1]
    assert Cin == Cout, "downsample=None requires inplanes == 4*planes"
    # TODO(synk): stride > 1 needs a downsample module (None here) - unimplemented.

    R = N * H * W
    Cp = _round_up(Cin, _LANES)
    Pp = _round_up(P, _LANES)

    # Lane-pad channels (no-op at production widths that are already x128).
    x2d = _pad_lanes(x_nhwc.reshape(R, Cin), 1, Cp)                      # f32
    w1 = _pad_lanes(_pad_lanes(params["w1"], 0, Cp), 1, Pp).astype(jnp.bfloat16)
    w3 = _pad_lanes(_pad_lanes(params["w3"], 0, Pp), 1, Cp).astype(jnp.bfloat16)
    w2 = _pad_lanes(_pad_lanes(params["w2"], 2, Pp), 3, Pp)
    w2k = jnp.transpose(w2, (1, 0, 2, 3)).reshape(3, 3 * Pp, Pp).astype(
        jnp.bfloat16)                                  # (kw, kh*in, out) blocks
    g1 = _pad_lanes(params["g1"], 1, Pp, 1.0)
    b1 = _pad_lanes(params["b1"], 1, Pp)
    g2 = _pad_lanes(params["g2"], 1, Pp, 1.0)
    b2 = _pad_lanes(params["b2"], 1, Pp)
    g3 = _pad_lanes(params["g3"], 1, Cp, 1.0)
    b3 = _pad_lanes(params["b3"], 1, Cp)

    tm = _pick_row_tile(R, max(Cp, Pp))

    # conv1 (1x1) + batch stats of its output
    h1, st1 = _mm_stats(x2d, w1, tm)
    sc1, sh1 = _bn_scale_shift(st1, R, g1, b1)

    # bn1 + relu + conv2 (3x3, dilation=d, padding=d) + batch stats
    h2, st2 = _conv2_stats(h1, sc1, sh1, w2k, N, H, W, dilation)
    sc2, sh2 = _bn_scale_shift(st2, R, g2, b2)

    # bn2 + relu + conv3 (1x1) + batch stats
    h3, st3 = _mm_stats(h2, w3, tm, scale=sc2, shift=sh2)
    sc3, sh3 = _bn_scale_shift(st3, R, g3, b3)

    # bn3 + residual + relu (f32 output)
    out = _bn_add_relu(h3, x2d, sc3, sh3, tm)
    return out.reshape(N, H, W, Cp)[..., :Cout]


def bottleneck_forward_nchw(x_nchw, params, dilation):
    # PyTorch-layout compatibility wrapper only: each transpose is an extra HBM
    # round trip of the activation - keep the surrounding model NHWC if possible.
    x = jnp.transpose(x_nchw, (0, 2, 3, 1))
    y = bottleneck_forward_nhwc(x, params, dilation=dilation)
    return jnp.transpose(y, (0, 3, 1, 2))


# ------------------------- references (plain JAX, NHWC) ----------------------
def _bn_ref(y, g, b):
    mu = jnp.mean(y, axis=(0, 1, 2), keepdims=True)
    var = jnp.mean((y - mu) ** 2, axis=(0, 1, 2), keepdims=True)
    return (y - mu) * lax.rsqrt(var + _EPS) * g.reshape(1, 1, 1, -1) \
        + b.reshape(1, 1, 1, -1)


def bottleneck_ref_nhwc(x, p, d):
    """Pure-f32 reference (faithful to the PyTorch training-mode forward)."""
    dn = ("NHWC", "HWIO", "NHWC")
    out = lax.conv_general_dilated(x, p["w1"][None, None], (1, 1), "VALID",
                                   dimension_numbers=dn)
    out = jax.nn.relu(_bn_ref(out, p["g1"], p["b1"]))
    out = lax.conv_general_dilated(out, p["w2"], (1, 1), ((d, d), (d, d)),
                                   rhs_dilation=(d, d), dimension_numbers=dn)
    out = jax.nn.relu(_bn_ref(out, p["g2"], p["b2"]))
    out = lax.conv_general_dilated(out, p["w3"][None, None], (1, 1), "VALID",
                                   dimension_numbers=dn)
    out = _bn_ref(out, p["g3"], p["b3"])
    return jax.nn.relu(out + x)


def _bq(a):
    return a.astype(jnp.bfloat16).astype(jnp.float32)


def bottleneck_ref_matched_nhwc(x, p, d):
    """Reference with the kernel's precision policy (bf16 operands, f32 acc,
    bf16 inter-stage activations, f32 BN stats) for a tight comparison."""
    dn = ("NHWC", "HWIO", "NHWC")
    N, H, W, _ = x.shape
    R = N * H * W

    def bf(a):
        return a.astype(jnp.bfloat16)

    def full_stats(y):
        y2 = y.reshape(-1, y.shape[-1])
        return jnp.stack([jnp.sum(y2, axis=0), jnp.sum(y2 * y2, axis=0)],
                         axis=0)[None]

    def conv(inp, w, **kw):
        return lax.conv_general_dilated(bf(inp), bf(w), (1, 1),
                                        kw.pop("padding", "VALID"),
                                        dimension_numbers=dn,
                                        preferred_element_type=jnp.float32,
                                        **kw)

    h1 = conv(x, p["w1"][None, None])
    sc1, sh1 = _bn_scale_shift(full_stats(h1), R, p["g1"], p["b1"])
    a1 = jnp.maximum(_bq(h1) * sc1.reshape(1, 1, 1, -1)
                     + sh1.reshape(1, 1, 1, -1), 0.0)
    h2 = conv(a1, p["w2"], padding=((d, d), (d, d)), rhs_dilation=(d, d))
    sc2, sh2 = _bn_scale_shift(full_stats(h2), R, p["g2"], p["b2"])
    a2 = jnp.maximum(_bq(h2) * sc2.reshape(1, 1, 1, -1)
                     + sh2.reshape(1, 1, 1, -1), 0.0)
    h3 = conv(a2, p["w3"][None, None])
    sc3, sh3 = _bn_scale_shift(full_stats(h3), R, p["g3"], p["b3"])
    return jnp.maximum(_bq(h3) * sc3.reshape(1, 1, 1, -1)
                       + sh3.reshape(1, 1, 1, -1) + x, 0.0)


def make_params(key, inplanes, planes):
    cout = planes * 4
    ks = jax.random.split(key, 9)
    return {
        # conv weights stored in matmul / HWIO layout:
        #   w1: (inplanes, planes)      == torch conv1.weight[:, :, 0, 0].T
        #   w2: (3, 3, planes, planes)  == torch conv2.weight.permute(2, 3, 1, 0)
        #   w3: (planes, planes*4)      == torch conv3.weight[:, :, 0, 0].T
        "w1": jax.random.normal(ks[0], (inplanes, planes), jnp.float32)
              * (1.0 / jnp.sqrt(inplanes)),
        "w2": jax.random.normal(ks[1], (3, 3, planes, planes), jnp.float32)
              * (1.0 / jnp.sqrt(9.0 * planes)),
        "w3": jax.random.normal(ks[2], (planes, cout), jnp.float32)
              * (1.0 / jnp.sqrt(planes)),
        # BN affine params, shaped (1, C).
        "g1": 1.0 + 0.1 * jax.random.normal(ks[3], (1, planes), jnp.float32),
        "b1": 0.1 * jax.random.normal(ks[4], (1, planes), jnp.float32),
        "g2": 1.0 + 0.1 * jax.random.normal(ks[5], (1, planes), jnp.float32),
        "b2": 0.1 * jax.random.normal(ks[6], (1, planes), jnp.float32),
        "g3": 1.0 + 0.1 * jax.random.normal(ks[7], (1, cout), jnp.float32),
        "b3": 0.1 * jax.random.normal(ks[8], (1, cout), jnp.float32),
    }


if __name__ == "__main__":
    key = jax.random.PRNGKey(0)
    k_x, k_p = jax.random.split(key)

    # Small shapes: Bottleneck(inplanes=16, planes=4, stride=1, dilation=2)
    N, planes, H, W = 2, 4, 16, 16
    inplanes = planes * 4            # required for downsample=None residual add
    dilation = 2

    x = jax.random.normal(k_x, (N, H, W, inplanes), jnp.float32)   # NHWC
    params = make_params(k_p, inplanes, planes)

    out = jax.block_until_ready(
        bottleneck_forward_nhwc(x, params, dilation=dilation))
    assert out.shape == (N, H, W, inplanes)

    # Tight check against a precision-matched reference (same bf16 policy).
    ref_m = jax.block_until_ready(bottleneck_ref_matched_nhwc(x, params, dilation))
    err_m = float(jnp.max(jnp.abs(out - ref_m)))
    assert err_m < 5e-3, f"matched-precision mismatch: {err_m}"

    # Loose sanity check against the pure-f32 reference (bf16 rounding only).
    ref_f = jax.block_until_ready(bottleneck_ref_nhwc(x, params, dilation))
    err_f = float(jnp.max(jnp.abs(out - ref_f)))
    assert err_f < 0.25, f"f32-reference sanity check failed: {err_f}"

    # PyTorch-layout (NCHW) compatibility path.
    x_nchw = jnp.transpose(x, (0, 3, 1, 2))
    out_nchw = jax.block_until_ready(
        bottleneck_forward_nchw(x_nchw, params, dilation))
    err_l = float(jnp.max(jnp.abs(jnp.transpose(out_nchw, (0, 2, 3, 1)) - out)))
    assert err_l < 1e-6, err_l

    print("KERNEL_OK")
</pallas_src>

<mosaic_0001>
module attributes {stable_mosaic.version = 11 : i64} {
  func.func @_mm_stats_kernel(%arg0: i32, %arg1: memref<256x128xf32, #tpu.memory_space<vmem>>, %arg2: memref<128x128xbf16, #tpu.memory_space<vmem>>, %arg3: memref<256x128xbf16, #tpu.memory_space<vmem>>, %arg4: memref<1x2x128xf32, #tpu.memory_space<vmem>>) attributes {dimension_semantics = [#tpu.dimension_semantics<parallel>], iteration_bounds = array<i64: 2>, scalar_prefetch = 0 : i64, scratch_operands = 0 : i64, tpu.core_type = #tpu.core_type<tc>, window_params = [{transform_indices = @transform_0, window_bounds = array<i64: 256, 128>}, {pipeline_mode = #tpu.pipeline_mode<synchronous>, transform_indices = @transform_1, window_bounds = array<i64: 128, 128>}, {transform_indices = @transform_2, window_bounds = array<i64: 256, 128>}, {transform_indices = @transform_3, window_bounds = array<i64: 1, 2, 128>}]} {
    %c0 = arith.constant 0 : index
    %c0_0 = arith.constant 0 : index
    %0 = vector.load %arg1[%c0, %c0_0] : memref<256x128xf32, #tpu.memory_space<vmem>>, vector<256x128xf32>
    %1 = arith.truncf %0 : vector<256x128xf32> to vector<256x128xbf16>
    %c0_1 = arith.constant 0 : index
    %c0_2 = arith.constant 0 : index
    %2 = vector.load %arg2[%c0_1, %c0_2] : memref<128x128xbf16, #tpu.memory_space<vmem>>, vector<128x128xbf16>
    %cst = arith.constant dense<0.000000e+00> : vector<256x128xf32>
    %3 = tpu.matmul %1, %2, %cst {dimension_numbers = #tpu.dot_dimension_numbers<[1], [0], [0], [1], [0, 0, 1, 1], [], []>} : vector<256x128xbf16>, vector<128x128xbf16>, vector<256x128xf32> -> vector<256x128xf32>
    %4 = arith.truncf %3 : vector<256x128xf32> to vector<256x128xbf16>
    %c0_3 = arith.constant 0 : index
    %c0_4 = arith.constant 0 : index
    %5 = vector.load %arg3[%c0_3, %c0_4] : memref<256x128xbf16, #tpu.memory_space<vmem>>, vector<256x128xbf16>
    tpu.vector_store %arg3[%c0_3, %c0_4], %4 {strides = array<i32>} : memref<256x128xbf16, #tpu.memory_space<vmem>>, vector<256x128xbf16>,
    %cst_5 = arith.constant dense<0.000000e+00> : vector<128xf32>
    %6 = vector.multi_reduction <add>, %3, %cst_5 [0] : vector<256x128xf32> to vector<128xf32>
    %7 = vector.shape_cast %6 : vector<128xf32> to vector<1x128xf32>
    %8 = arith.mulf %3, %3 : vector<256x128xf32>
    %cst_6 = arith.constant dense<0.000000e+00> : vector<128xf32>
    %9 = vector.multi_reduction <add>, %8, %cst_6 [0] : vector<256x128xf32> to vector<128xf32>
    %10 = vector.shape_cast %9 : vector<128xf32> to vector<1x128xf32>
    %11 = tpu.concatenate %7, %10 in 0 : vector<1x128xf32>, vector<1x128xf32> -> vector<2x128xf32>
    %c0_7 = arith.constant 0 : index
    %c0_8 = arith.constant 0 : index
    %c0_9 = arith.constant 0 : index
    %12 = vector.load %arg4[%c0_7, %c0_8, %c0_9] : memref<1x2x128xf32, #tpu.memory_space<vmem>>, vector<1x2x128xf32>
    %13 = vector.shape_cast %12 : vector<1x2x128xf32> to vector<2x128xf32>
    %14 = vector.shape_cast %11 : vector<2x128xf32> to vector<1x2x128xf32>
    tpu.vector_store %arg4[%c0_7, %c0_8, %c0_9], %14 {strides = array<i32>} : memref<1x2x128xf32, #tpu.memory_space<vmem>>, vector<1x2x128xf32>,
    return
  }
  func.func @transform_0(%arg0: i32) -> (i32, i32) {
    %c0_i32 = arith.constant 0 : i32
    %c0_i32_0 = arith.constant 0 : i32
    return %arg0, %c0_i32 : i32, i32
  }
  func.func @transform_1(%arg0: i32) -> (i32, i32) {
    %c0_i32 = arith.constant 0 : i32
    %c0_i32_0 = arith.constant 0 : i32
    %c0_i32_1 = arith.constant 0 : i32
    return %c0_i32, %c0_i32_0 : i32, i32
  }
  func.func @transform_2(%arg0: i32) -> (i32, i32) {
    %c0_i32 = arith.constant 0 : i32
    %c0_i32_0 = arith.constant 0 : i32
    return %arg0, %c0_i32 : i32, i32
  }
  func.func @transform_3(%arg0: i32) -> (i32, i32, i32) {
    %c0_i32 = arith.constant 0 : i32
    %c0_i32_0 = arith.constant 0 : i32
    %c0_i32_1 = arith.constant 0 : i32
    return %arg0, %c0_i32, %c0_i32_0 : i32, i32, i32
  }
}

module attributes {stable_mosaic.version = 11 : i64} {
  func.func @_norm_relu_mm_stats_kernel(%arg0: i32, %arg1: memref<256x128xbf16, #tpu.memory_space<vmem>>, %arg2: memref<1x128xf32, #tpu.memory_space<vmem>>, %arg3: memref<1x128xf32, #tpu.memory_space<vmem>>, %arg4: memref<128x128xbf16, #tpu.memory_space<vmem>>, %arg5: memref<256x128xbf16, #tpu.memory_space<vmem>>, %arg6: memref<1x2x128xf32, #tpu.memory_space<vmem>>) attributes {dimension_semantics = [#tpu.dimension_semantics<parallel>], iteration_bounds = array<i64: 2>, scalar_prefetch = 0 : i64, scratch_operands = 0 : i64, tpu.core_type = #tpu.core_type<tc>, window_params = [{transform_indices = @transform_0, window_bounds = array<i64: 256, 128>}, {pipeline_mode = #tpu.pipeline_mode<synchronous>, transform_indices = @transform_1, window_bounds = array<i64: 1, 128>}, {pipeline_mode = #tpu.pipeline_mode<synchronous>, transform_indices = @transform_2, window_bounds = array<i64: 1, 128>}, {pipeline_mode = #tpu.pipeline_mode<synchronous>, transform_indices = @transform_3, window_bounds = array<i64: 128, 128>}, {transform_indices = @transform_4, window_bounds = array<i64: 256, 128>}, {transform_indices = @transform_5, window_bounds = array<i64: 1, 2, 128>}]} {
    %c0 = arith.constant 0 : index
    %c0_0 = arith.constant 0 : index
    %0 = vector.load %arg1[%c0, %c0_0] : memref<256x128xbf16, #tpu.memory_space<vmem>>, vector<256x128xbf16>
    %1 = arith.extf %0 : vector<256x128xbf16> to vector<256x128xf32>
    %c0_1 = arith.constant 0 : index
    %c0_2 = arith.constant 0 : index
    %2 = vector.load %arg2[%c0_1, %c0_2] : memref<1x128xf32, #tpu.memory_space<vmem>>, vector<1x128xf32>
    %3 = vector.broadcast %2 : vector<1x128xf32> to vector<256x128xf32>
    %4 = arith.mulf %1, %3 : vector<256x128xf32>
    %c0_3 = arith.constant 0 : index
    %c0_4 = arith.constant 0 : index
    %5 = vector.load %arg3[%c0_3, %c0_4] : memref<1x128xf32, #tpu.memory_space<vmem>>, vector<1x128xf32>
    %6 = vector.broadcast %5 : vector<1x128xf32> to vector<256x128xf32>
    %7 = arith.addf %4, %6 : vector<256x128xf32>
    %cst = arith.constant 0.000000e+00 : f32
    %8 = vector.broadcast %cst : f32 to vector<256x128xf32>
    %9 = arith.maximumf %7, %8 : vector<256x128xf32>
    %10 = arith.truncf %9 : vector<256x128xf32> to vector<256x128xbf16>
    %c0_5 = arith.constant 0 : index
    %c0_6 = arith.constant 0 : index
    %11 = vector.load %arg4[%c0_5, %c0_6] : memref<128x128xbf16, #tpu.memory_space<vmem>>, vector<128x128xbf16>
    %cst_7 = arith.constant dense<0.000000e+00> : vector<256x128xf32>
    %12 = tpu.matmul %10, %11, %cst_7 {dimension_numbers = #tpu.dot_dimension_numbers<[1], [0], [0], [1], [0, 0, 1, 1], [], []>} : vector<256x128xbf16>, vector<128x128xbf16>, vector<256x128xf32> -> vector<256x128xf32>
    %13 = arith.truncf %12 : vector<256x128xf32> to vector<256x128xbf16>
    %c0_8 = arith.constant 0 : index
    %c0_9 = arith.constant 0 : index
    %14 = vector.load %arg5[%c0_8, %c0_9] : memref<256x128xbf16, #tpu.memory_space<vmem>>, vector<256x128xbf16>
    tpu.vector_store %arg5[%c0_8, %c0_9], %13 {strides = array<i32>} : memref<256x128xbf16, #tpu.memory_space<vmem>>, vector<256x128xbf16>,
    %cst_10 = arith.constant dense<0.000000e+00> : vector<128xf32>
    %15 = vector.multi_reduction <add>, %12, %cst_10 [0] : vector<256x128xf32> to vector<128xf32>
    %16 = vector.shape_cast %15 : vector<128xf32> to vector<1x128xf32>
    %17 = arith.mulf %12, %12 : vector<256x128xf32>
    %cst_11 = arith.constant dense<0.000000e+00> : vector<128xf32>
    %18 = vector.multi_reduction <add>, %17, %cst_11 [0] : vector<256x128xf32> to vector<128xf32>
    %19 = vector.shape_cast %18 : vector<128xf32> to vector<1x128xf32>
    %20 = tpu.concatenate %16, %19 in 0 : vector<1x128xf32>, vector<1x128xf32> -> vector<2x128xf32>
    %c0_12 = arith.constant 0 : index
    %c0_13 = arith.constant 0 : index
    %c0_14 = arith.constant 0 : index
    %21 = vector.load %arg6[%c0_12, %c0_13, %c0_14] : memref<1x2x128xf32, #tpu.memory_space<vmem>>, vector<1x2x128xf32>
    %22 = vector.shape_cast %21 : vector<1x2x128xf32> to vector<2x128xf32>
    %23 = vector.shape_cast %20 : vector<2x128xf32> to vector<1x2x128xf32>
    tpu.vector_store %arg6[%c0_12, %c0_13, %c0_14], %23 {strides = array<i32>} : memref<1x2x128xf32, #tpu.memory_space<vmem>>, vector<1x2x128xf32>,
    return
  }
  func.func @transform_0(%arg0: i32) -> (i32, i32) {
    %c0_i32 = arith.constant 0 : i32
    %c0_i32_0 = arith.constant 0 : i32
    return %arg0, %c0_i32 : i32, i32
  }
  func.func @transform_1(%arg0: i32) -> (i32, i32) {
    %c0_i32 = arith.constant 0 : i32
    %c0_i32_0 = arith.constant 0 : i32
    %c0_i32_1 = arith.constant 0 : i32
    return %c0_i32, %c0_i32_0 : i32, i32
  }
  func.func @transform_2(%arg0: i32) -> (i32, i32) {
    %c0_i32 = arith.constant 0 : i32
    %c0_i32_0 = arith.constant 0 : i32
    %c0_i32_1 = arith.constant 0 : i32
    return %c0_i32, %c0_i32_0 : i32, i32
  }
  func.func @transform_3(%arg0: i32) -> (i32, i32) {
    %c0_i32 = arith.constant 0 : i32
    %c0_i32_0 = arith.constant 0 : i32
    %c0_i32_1 = arith.constant 0 : i32
    return %c0_i32, %c0_i32_0 : i32, i32
  }
  func.func @transform_4(%arg0: i32) -> (i32, i32) {
    %c0_i32 = arith.constant 0 : i32
    %c0_i32_0 = arith.constant 0 : i32
    return %arg0, %c0_i32 : i32, i32
  }
  func.func @transform_5(%arg0: i32) -> (i32, i32, i32) {
    %c0_i32 = arith.constant 0 : i32
    %c0_i32_0 = arith.constant 0 : i32
    %c0_i32_1 = arith.constant 0 : i32
    return %arg0, %c0_i32, %c0_i32_0 : i32, i32, i32
  }
}

module attributes {stable_mosaic.version = 11 : i64} {
  func.func @_conv2_stats_kernel(%arg0: i32, %arg1: memref<1x256x128xbf16, #tpu.memory_space<vmem>>, %arg2: memref<1x128xf32, #tpu.memory_space<vmem>>, %arg3: memref<1x128xf32, #tpu.memory_space<vmem>>, %arg4: memref<3x384x128xbf16, #tpu.memory_space<vmem>>, %arg5: memref<1x256x128xbf16, #tpu.memory_space<vmem>>, %arg6: memref<1x2x128xf32, #tpu.memory_space<vmem>>, %arg7: memref<3x320x128xbf16, #tpu.memory_space<vmem>>) attributes {dimension_semantics = [#tpu.dimension_semantics<parallel>], iteration_bounds = array<i64: 2>, scalar_prefetch = 0 : i64, scratch_operands = 1 : i64, tpu.core_type = #tpu.core_type<tc>, window_params = [{transform_indices = @transform_0, window_bounds = array<i64: 1, 256, 128>}, {pipeline_mode = #tpu.pipeline_mode<synchronous>, transform_indices = @transform_1, window_bounds = array<i64: 1, 128>}, {pipeline_mode = #tpu.pipeline_mode<synchronous>, transform_indices = @transform_2, window_bounds = array<i64: 1, 128>}, {pipeline_mode = #tpu.pipeline_mode<synchronous>, transform_indices = @transform_3, window_bounds = array<i64: 3, 384, 128>}, {transform_indices = @transform_4, window_bounds = array<i64: 1, 256, 128>}, {transform_indices = @transform_5, window_bounds = array<i64: 1, 2, 128>}]} {
    %c0 = arith.constant 0 : index
    %c0_0 = arith.constant 0 : index
    %c0_1 = arith.constant 0 : index
    %0 = vector.load %arg1[%c0, %c0_0, %c0_1] : memref<1x256x128xbf16, #tpu.memory_space<vmem>>, vector<1x256x128xbf16>
    %1 = vector.shape_cast %0 : vector<1x256x128xbf16> to vector<256x128xbf16>
    %2 = arith.extf %1 : vector<256x128xbf16> to vector<256x128xf32>
    %c0_2 = arith.constant 0 : index
    %c0_3 = arith.constant 0 : index
    %3 = vector.load %arg2[%c0_2, %c0_3] : memref<1x128xf32, #tpu.memory_space<vmem>>, vector<1x128xf32>
    %4 = vector.broadcast %3 : vector<1x128xf32> to vector<256x128xf32>
    %5 = arith.mulf %2, %4 : vector<256x128xf32>
    %c0_4 = arith.constant 0 : index
    %c0_5 = arith.constant 0 : index
    %6 = vector.load %arg3[%c0_4, %c0_5] : memref<1x128xf32, #tpu.memory_space<vmem>>, vector<1x128xf32>
    %7 = vector.broadcast %6 : vector<1x128xf32> to vector<256x128xf32>
    %8 = arith.addf %5, %7 : vector<256x128xf32>
    %cst = arith.constant 0.000000e+00 : f32
    %9 = vector.broadcast %cst : f32 to vector<256x128xf32>
    %10 = arith.maximumf %8, %9 : vector<256x128xf32>
    %11 = arith.truncf %10 : vector<256x128xf32> to vector<256x128xbf16>
    %12 = tpu.iota {dimensions = array<i32: 0>} : vector<256x1xi32>
    %c16_i32 = arith.constant 16 : i32
    %c0_i32 = arith.constant 0 : i32
    %13 = arith.cmpi eq, %c16_i32, %c0_i32 : i32
    %c1_i32 = arith.constant 1 : i32
    %14 = arith.select %13, %c1_i32, %c16_i32 : i32
    %15 = vector.broadcast %14 : i32 to vector<256x1xi32>
    %16 = arith.remsi %12, %15 : vector<256x1xi32>
    %c0_i32_6 = arith.constant 0 : i32
    %17 = vector.broadcast %c0_i32_6 : i32 to vector<256x1xi32>
    %18 = arith.cmpi ne, %16, %17 : vector<256x1xi32>
    %c0_i32_7 = arith.constant 0 : i32
    %19 = vector.broadcast %c0_i32_7 : i32 to vector<256x1xi32>
    %20 = arith.cmpi slt, %16, %19 : vector<256x1xi32>
    %c0_i32_8 = arith.constant 0 : i32
    %21 = arith.cmpi slt, %14, %c0_i32_8 : i32
    %22 = vector.broadcast %21 : i1 to vector<256x1xi1>
    %23 = vector.broadcast %22 : vector<256x1xi1> to vector<256x1xi1>
    %24 = arith.xori %20, %23 : vector<256x1xi1>
    %25 = arith.andi %24, %18 : vector<256x1xi1>
    %26 = vector.broadcast %14 : i32 to vector<256x1xi32>
    %27 = arith.addi %16, %26 : vector<256x1xi32>
    %28 = arith.select %25, %27, %16 : vector<256x1xi1>, vector<256x1xi32>
    %cst_9 = arith.constant 0.000000e+00 : bf16
    %29 = vector.broadcast %cst_9 : bf16 to vector<32x128xbf16>
    %cst_10 = arith.constant 0.000000e+00 : bf16
    %30 = vector.broadcast %cst_10 : bf16 to vector<32x128xbf16>
    %cst_11 = arith.constant 0.000000e+00 : bf16
    %31 = vector.broadcast %cst_11 : bf16 to vector<2x128xbf16>
    %32 = vector.extract_strided_slice %11 {offsets = [0, 0], sizes = [254, 128], strides = [1, 1]} : vector<256x128xbf16> to vector<254x128xbf16>
    %33 = tpu.concatenate %31, %32 in 0 : vector<2x128xbf16>, vector<254x128xbf16> -> vector<256x128xbf16>
    %c2_i32 = arith.constant 2 : i32
    %34 = vector.broadcast %c2_i32 : i32 to vector<256x1xi32>
    %35 = arith.cmpi sge, %28, %34 : vector<256x1xi32>
    %cst_12 = arith.constant 0.000000e+00 : bf16
    %36 = vector.broadcast %cst_12 : bf16 to vector<256x128xbf16>
    %37 = vector.shape_cast %35 : vector<256x1xi1> to vector<256x1xi1>
    %38 = vector.broadcast %37 : vector<256x1xi1> to vector<256x128xi1>
    %39 = arith.select %38, %33, %36 : vector<256x128xi1>, vector<256x128xbf16>
    %c0_13 = arith.constant 0 : index
    %c0_14 = arith.constant 0 : index
    %c0_15 = arith.constant 0 : index
    %40 = vector.load %arg7[%c0_13, %c0_14, %c0_15] : memref<3x320x128xbf16, #tpu.memory_space<vmem>>, vector<1x32x128xbf16>
    %41 = vector.shape_cast %40 : vector<1x32x128xbf16> to vector<32x128xbf16>
    %42 = vector.shape_cast %29 : vector<32x128xbf16> to vector<1x32x128xbf16>
    tpu.vector_store %arg7[%c0_13, %c0_14, %c0_15], %42 {strides = array<i32>} : memref<3x320x128xbf16, #tpu.memory_space<vmem>>, vector<1x32x128xbf16>,
    %c0_16 = arith.constant 0 : index
    %c288 = arith.constant 288 : index
    %c0_17 = arith.constant 0 : index
    %43 = vector.load %arg7[%c0_16, %c288, %c0_17] : memref<3x320x128xbf16, #tpu.memory_space<vmem>>, vector<1x32x128xbf16>
    %44 = vector.shape_cast %43 : vector<1x32x128xbf16> to vector<32x128xbf16>
    %45 = vector.shape_cast %30 : vector<32x128xbf16> to vector<1x32x128xbf16>
    tpu.vector_store %arg7[%c0_16, %c288, %c0_17], %45 {strides = array<i32>} : memref<3x320x128xbf16, #tpu.memory_space<vmem>>, vector<1x32x128xbf16>,
    %c0_18 = arith.constant 0 : index
    %c32 = arith.constant 32 : index
    %c0_19 = arith.constant 0 : index
    %46 = vector.load %arg7[%c0_18, %c32, %c0_19] : memref<3x320x128xbf16, #tpu.memory_space<vmem>>, vector<1x256x128xbf16>
    %47 = vector.shape_cast %46 : vector<1x256x128xbf16> to vector<256x128xbf16>
    %48 = vector.shape_cast %39 : vector<256x128xbf16> to vector<1x256x128xbf16>
    tpu.vector_store %arg7[%c0_18, %c32, %c0_19], %48 {strides = array<i32>} : memref<3x320x128xbf16, #tpu.memory_space<vmem>>, vector<1x256x128xbf16>,
    %c1 = arith.constant 1 : index
    %c0_20 = arith.constant 0 : index
    %c0_21 = arith.constant 0 : index
    %49 = vector.load %arg7[%c1, %c0_20, %c0_21] : memref<3x320x128xbf16, #tpu.memory_space<vmem>>, vector<1x32x128xbf16>
    %50 = vector.shape_cast %49 : vector<1x32x128xbf16> to vector<32x128xbf16>
    %51 = vector.shape_cast %29 : vector<32x128xbf16> to vector<1x32x128xbf16>
    tpu.vector_store %arg7[%c1, %c0_20, %c0_21], %51 {strides = array<i32>} : memref<3x320x128xbf16, #tpu.memory_space<vmem>>, vector<1x32x128xbf16>,
    %c1_22 = arith.constant 1 : index
    %c288_23 = arith.constant 288 : index
    %c0_24 = arith.constant 0 : index
    %52 = vector.load %arg7[%c1_22, %c288_23, %c0_24] : memref<3x320x128xbf16, #tpu.memory_space<vmem>>, vector<1x32x128xbf16>
    %53 = vector.shape_cast %52 : vector<1x32x128xbf16> to vector<32x128xbf16>
    %54 = vector.shape_cast %30 : vector<32x128xbf16> to vector<1x32x128xbf16>
    tpu.vector_store %arg7[%c1_22, %c288_23, %c0_24], %54 {strides = array<i32>} : memref<3x320x128xbf16, #tpu.memory_space<vmem>>, vector<1x32x128xbf16>,
    %c1_25 = arith.constant 1 : index
    %c32_26 = arith.constant 32 : index
    %c0_27 = arith.constant 0 : index
    %55 = vector.load %arg7[%c1_25, %c32_26, %c0_27] : memref<3x320x128xbf16, #tpu.memory_space<vmem>>, vector<1x256x128xbf16>
    %56 = vector.shape_cast %55 : vector<1x256x128xbf16> to vector<256x128xbf16>
    %57 = vector.shape_cast %11 : vector<256x128xbf16> to vector<1x256x128xbf16>
    tpu.vector_store %arg7[%c1_25, %c32_26, %c0_27], %57 {strides = array<i32>} : memref<3x320x128xbf16, #tpu.memory_space<vmem>>, vector<1x256x128xbf16>,
    %58 = vector.extract_strided_slice %11 {offsets = [2, 0], sizes = [254, 128], strides = [1, 1]} : vector<256x128xbf16> to vector<254x128xbf16>
    %59 = tpu.concatenate %58, %31 in 0 : vector<254x128xbf16>, vector<2x128xbf16> -> vector<256x128xbf16>
    %c14_i32 = arith.constant 14 : i32
    %60 = vector.broadcast %c14_i32 : i32 to vector<256x1xi32>
    %61 = arith.cmpi slt, %28, %60 : vector<256x1xi32>
    %cst_28 = arith.constant 0.000000e+00 : bf16
    %62 = vector.broadcast %cst_28 : bf16 to vector<256x128xbf16>
    %63 = vector.shape_cast %61 : vector<256x1xi1> to vector<256x1xi1>
    %64 = vector.broadcast %63 : vector<256x1xi1> to vector<256x128xi1>
    %65 = arith.select %64, %59, %62 : vector<256x128xi1>, vector<256x128xbf16>
    %c2 = arith.constant 2 : index
    %c0_29 = arith.constant 0 : index
    %c0_30 = arith.constant 0 : index
    %66 = vector.load %arg7[%c2, %c0_29, %c0_30] : memref<3x320x128xbf16, #tpu.memory_space<vmem>>, vector<1x32x128xbf16>
    %67 = vector.shape_cast %66 : vector<1x32x128xbf16> to vector<32x128xbf16>
    %68 = vector.shape_cast %29 : vector<32x128xbf16> to vector<1x32x128xbf16>
    tpu.vector_store %arg7[%c2, %c0_29, %c0_30], %68 {strides = array<i32>} : memref<3x320x128xbf16, #tpu.memory_space<vmem>>, vector<1x32x128xbf16>,
    %c2_31 = arith.constant 2 : index
    %c288_32 = arith.constant 288 : index
    %c0_33 = arith.constant 0 : index
    %69 = vector.load %arg7[%c2_31, %c288_32, %c0_33] : memref<3x320x128xbf16, #tpu.memory_space<vmem>>, vector<1x32x128xbf16>
    %70 = vector.shape_cast %69 : vector<1x32x128xbf16> to vector<32x128xbf16>
    %71 = vector.shape_cast %30 : vector<32x128xbf16> to vector<1x32x128xbf16>
    tpu.vector_store %arg7[%c2_31, %c288_32, %c0_33], %71 {strides = array<i32>} : memref<3x320x128xbf16, #tpu.memory_space<vmem>>, vector<1x32x128xbf16>,
    %c2_34 = arith.constant 2 : index
    %c32_35 = arith.constant 32 : index
    %c0_36 = arith.constant 0 : index
    %72 = vector.load %arg7[%c2_34, %c32_35, %c0_36] : memref<3x320x128xbf16, #tpu.memory_space<vmem>>, vector<1x256x128xbf16>
    %73 = vector.shape_cast %72 : vector<1x256x128xbf16> to vector<256x128xbf16>
    %74 = vector.shape_cast %65 : vector<256x128xbf16> to vector<1x256x128xbf16>
    tpu.vector_store %arg7[%c2_34, %c32_35, %c0_36], %74 {strides = array<i32>} : memref<3x320x128xbf16, #tpu.memory_space<vmem>>, vector<1x256x128xbf16>,
    %cst_37 = arith.constant 0.000000e+00 : f32
    %75 = vector.broadcast %cst_37 : f32 to vector<256x128xf32>
    %c0_38 = arith.constant 0 : index
    %c0_39 = arith.constant 0 : index
    %c0_40 = arith.constant 0 : index
    %76 = vector.load %arg7[%c0_38, %c0_39, %c0_40] : memref<3x320x128xbf16, #tpu.memory_space<vmem>>, vector<1x256x128xbf16>
    %77 = vector.shape_cast %76 : vector<1x256x128xbf16> to vector<256x128xbf16>
    %c0_41 = arith.constant 0 : index
    %c32_42 = arith.constant 32 : index
    %c0_43 = arith.constant 0 : index
    %78 = vector.load %arg7[%c0_41, %c32_42, %c0_43] : memref<3x320x128xbf16, #tpu.memory_space<vmem>>, vector<1x256x128xbf16>
    %79 = vector.shape_cast %78 : vector<1x256x128xbf16> to vector<256x128xbf16>
    %c0_44 = arith.constant 0 : index
    %c64 = arith.constant 64 : index
    %c0_45 = arith.constant 0 : index
    %80 = vector.load %arg7[%c0_44, %c64, %c0_45] : memref<3x320x128xbf16, #tpu.memory_space<vmem>>, vector<1x256x128xbf16>
    %81 = vector.shape_cast %80 : vector<1x256x128xbf16> to vector<256x128xbf16>
    %82 = tpu.concatenate %77, %79, %81 in 1 : vector<256x128xbf16>, vector<256x128xbf16>, vector<256x128xbf16> -> vector<256x384xbf16>
    %c0_46 = arith.constant 0 : index
    %c0_47 = arith.constant 0 : index
    %c0_48 = arith.constant 0 : index
    %83 = vector.load %arg4[%c0_46, %c0_47, %c0_48] : memref<3x384x128xbf16, #tpu.memory_space<vmem>>, vector<1x384x128xbf16>
    %84 = vector.shape_cast %83 : vector<1x384x128xbf16> to vector<384x128xbf16>
    %cst_49 = arith.constant dense<0.000000e+00> : vector<256x128xf32>
    %85 = tpu.matmul %82, %84, %cst_49 {dimension_numbers = #tpu.dot_dimension_numbers<[1], [0], [0], [1], [0, 0, 1, 1], [], []>} : vector<256x384xbf16>, vector<384x128xbf16>, vector<256x128xf32> -> vector<256x128xf32>
    %86 = arith.addf %75, %85 : vector<256x128xf32>
    %c1_50 = arith.constant 1 : index
    %c0_51 = arith.constant 0 : index
    %c0_52 = arith.constant 0 : index
    %87 = vector.load %arg7[%c1_50, %c0_51, %c0_52] : memref<3x320x128xbf16, #tpu.memory_space<vmem>>, vector<1x256x128xbf16>
    %88 = vector.shape_cast %87 : vector<1x256x128xbf16> to vector<256x128xbf16>
    %c1_53 = arith.constant 1 : index
    %c32_54 = arith.constant 32 : index
    %c0_55 = arith.constant 0 : index
    %89 = vector.load %arg7[%c1_53, %c32_54, %c0_55] : memref<3x320x128xbf16, #tpu.memory_space<vmem>>, vector<1x256x128xbf16>
    %90 = vector.shape_cast %89 : vector<1x256x128xbf16> to vector<256x128xbf16>
    %c1_56 = arith.constant 1 : index
    %c64_57 = arith.constant 64 : index
    %c0_58 = arith.constant 0 : index
    %91 = vector.load %arg7[%c1_56, %c64_57, %c0_58] : memref<3x320x128xbf16, #tpu.memory_space<vmem>>, vector<1x256x128xbf16>
    %92 = vector.shape_cast %91 : vector<1x256x128xbf16> to vector<256x128xbf16>
    %93 = tpu.concatenate %88, %90, %92 in 1 : vector<256x128xbf16>, vector<256x128xbf16>, vector<256x128xbf16> -> vector<256x384xbf16>
    %c1_59 = arith.constant 1 : index
    %c0_60 = arith.constant 0 : index
    %c0_61 = arith.constant 0 : index
    %94 = vector.load %arg4[%c1_59, %c0_60, %c0_61] : memref<3x384x128xbf16, #tpu.memory_space<vmem>>, vector<1x384x128xbf16>
    %95 = vector.shape_cast %94 : vector<1x384x128xbf16> to vector<384x128xbf16>
    %cst_62 = arith.constant dense<0.000000e+00> : vector<256x128xf32>
    %96 = tpu.matmul %93, %95, %cst_62 {dimension_numbers = #tpu.dot_dimension_numbers<[1], [0], [0], [1], [0, 0, 1, 1], [], []>} : vector<256x384xbf16>, vector<384x128xbf16>, vector<256x128xf32> -> vector<256x128xf32>
    %97 = arith.addf %86, %96 : vector<256x128xf32>
    %c2_63 = arith.constant 2 : index
    %c0_64 = arith.constant 0 : index
    %c0_65 = arith.constant 0 : index
    %98 = vector.load %arg7[%c2_63, %c0_64, %c0_65] : memref<3x320x128xbf16, #tpu.memory_space<vmem>>, vector<1x256x128xbf16>
    %99 = vector.shape_cast %98 : vector<1x256x128xbf16> to vector<256x128xbf16>
    %c2_66 = arith.constant 2 : index
    %c32_67 = arith.constant 32 : index
    %c0_68 = arith.constant 0 : index
    %100 = vector.load %arg7[%c2_66, %c32_67, %c0_68] : memref<3x320x128xbf16, #tpu.memory_space<vmem>>, vector<1x256x128xbf16>
    %101 = vector.shape_cast %100 : vector<1x256x128xbf16> to vector<256x128xbf16>
    %c2_69 = arith.constant 2 : index
    %c64_70 = arith.constant 64 : index
    %c0_71 = arith.constant 0 : index
    %102 = vector.load %arg7[%c2_69, %c64_70, %c0_71] : memref<3x320x128xbf16, #tpu.memory_space<vmem>>, vector<1x256x128xbf16>
    %103 = vector.shape_cast %102 : vector<1x256x128xbf16> to vector<256x128xbf16>
    %104 = tpu.concatenate %99, %101, %103 in 1 : vector<256x128xbf16>, vector<256x128xbf16>, vector<256x128xbf16> -> vector<256x384xbf16>
    %c2_72 = arith.constant 2 : index
    %c0_73 = arith.constant 0 : index
    %c0_74 = arith.constant 0 : index
    %105 = vector.load %arg4[%c2_72, %c0_73, %c0_74] : memref<3x384x128xbf16, #tpu.memory_space<vmem>>, vector<1x384x128xbf16>
    %106 = vector.shape_cast %105 : vector<1x384x128xbf16> to vector<384x128xbf16>
    %cst_75 = arith.constant dense<0.000000e+00> : vector<256x128xf32>
    %107 = tpu.matmul %104, %106, %cst_75 {dimension_numbers = #tpu.dot_dimension_numbers<[1], [0], [0], [1], [0, 0, 1, 1], [], []>} : vector<256x384xbf16>, vector<384x128xbf16>, vector<256x128xf32> -> vector<256x128xf32>
    %108 = arith.addf %97, %107 : vector<256x128xf32>
    %109 = arith.truncf %108 : vector<256x128xf32> to vector<256x128xbf16>
    %c0_76 = arith.constant 0 : index
    %c0_77 = arith.constant 0 : index
    %c0_78 = arith.constant 0 : index
    %110 = vector.load %arg5[%c0_76, %c0_77, %c0_78] : memref<1x256x128xbf16, #tpu.memory_space<vmem>>, vector<1x256x128xbf16>
    %111 = vector.shape_cast %110 : vector<1x256x128xbf16> to vector<256x128xbf16>
    %112 = vector.shape_cast %109 : vector<256x128xbf16> to vector<1x256x128xbf16>
    tpu.vector_store %arg5[%c0_76, %c0_77, %c0_78], %112 {strides = array<i32>} : memref<1x256x128xbf16, #tpu.memory_space<vmem>>, vector<1x256x128xbf16>,
    %cst_79 = arith.constant dense<0.000000e+00> : vector<128xf32>
    %113 = vector.multi_reduction <add>, %108, %cst_79 [0] : vector<256x128xf32> to vector<128xf32>
    %114 = vector.shape_cast %113 : vector<128xf32> to vector<1x128xf32>
    %115 = arith.mulf %108, %108 : vector<256x128xf32>
    %cst_80 = arith.constant dense<0.000000e+00> : vector<128xf32>
    %116 = vector.multi_reduction <add>, %115, %cst_80 [0] : vector<256x128xf32> to vector<128xf32>
    %117 = vector.shape_cast %116 : vector<128xf32> to vector<1x128xf32>
    %118 = tpu.concatenate %114, %117 in 0 : vector<1x128xf32>, vector<1x128xf32> -> vector<2x128xf32>
    %c0_81 = arith.constant 0 : index
    %c0_82 = arith.constant 0 : index
    %c0_83 = arith.constant 0 : index
    %119 = vector.load %arg6[%c0_81, %c0_82, %c0_83] : memref<1x2x128xf32, #tpu.memory_space<vmem>>, vector<1x2x128xf32>
    %120 = vector.shape_cast %119 : vector<1x2x128xf32> to vector<2x128xf32>
    %121 = vector.shape_cast %118 : vector<2x128xf32> to vector<1x2x128xf32>
    tpu.vector_store %arg6[%c0_81, %c0_82, %c0_83], %121 {strides = array<i32>} : memref<1x2x128xf32, #tpu.memory_space<vmem>>, vector<1x2x128xf32>,
    return
  }
  func.func @transform_0(%arg0: i32) -> (i32, i32, i32) {
    %c0_i32 = arith.constant 0 : i32
    %c0_i32_0 = arith.constant 0 : i32
    %c0_i32_1 = arith.constant 0 : i32
    return %arg0, %c0_i32, %c0_i32_0 : i32, i32, i32
  }
  func.func @transform_1(%arg0: i32) -> (i32, i32) {
    %c0_i32 = arith.constant 0 : i32
    %c0_i32_0 = arith.constant 0 : i32
    %c0_i32_1 = arith.constant 0 : i32
    return %c0_i32, %c0_i32_0 : i32, i32
  }
  func.func @transform_2(%arg0: i32) -> (i32, i32) {
    %c0_i32 = arith.constant 0 : i32
    %c0_i32_0 = arith.constant 0 : i32
    %c0_i32_1 = arith.constant 0 : i32
    return %c0_i32, %c0_i32_0 : i32, i32
  }
  func.func @transform_3(%arg0: i32) -> (i32, i32, i32) {
    %c0_i32 = arith.constant 0 : i32
    %c0_i32_0 = arith.constant 0 : i32
    %c0_i32_1 = arith.constant 0 : i32
    %c0_i32_2 = arith.constant 0 : i32
    return %c0_i32, %c0_i32_0, %c0_i32_1 : i32, i32, i32
  }
  func.func @transform_4(%arg0: i32) -> (i32, i32, i32) {
    %c0_i32 = arith.constant 0 : i32
    %c0_i32_0 = arith.constant 0 : i32
    %c0_i32_1 = arith.constant 0 : i32
    return %arg0, %c0_i32, %c0_i32_0 : i32, i32, i32
  }
  func.func @transform_5(%arg0: i32) -> (i32, i32, i32) {
    %c0_i32 = arith.constant 0 : i32
    %c0_i32_0 = arith.constant 0 : i32
    %c0_i32_1 = arith.constant 0 : i32
    return %arg0, %c0_i32, %c0_i32_0 : i32, i32, i32
  }
}

module attributes {stable_mosaic.version = 11 : i64} {
  func.func @_bn_add_relu_kernel(%arg0: i32, %arg1: memref<256x128xbf16, #tpu.memory_space<vmem>>, %arg2: memref<256x128xf32, #tpu.memory_space<vmem>>, %arg3: memref<1x128xf32, #tpu.memory_space<vmem>>, %arg4: memref<1x128xf32, #tpu.memory_space<vmem>>, %arg5: memref<256x128xf32, #tpu.memory_space<vmem>>) attributes {dimension_semantics = [#tpu.dimension_semantics<parallel>], iteration_bounds = array<i64: 2>, scalar_prefetch = 0 : i64, scratch_operands = 0 : i64, tpu.core_type = #tpu.core_type<tc>, window_params = [{transform_indices = @transform_0, window_bounds = array<i64: 256, 128>}, {transform_indices = @transform_1, window_bounds = array<i64: 256, 128>}, {pipeline_mode = #tpu.pipeline_mode<synchronous>, transform_indices = @transform_2, window_bounds = array<i64: 1, 128>}, {pipeline_mode = #tpu.pipeline_mode<synchronous>, transform_indices = @transform_3, window_bounds = array<i64: 1, 128>}, {transform_indices = @transform_4, window_bounds = array<i64: 256, 128>}]} {
    %c0 = arith.constant 0 : index
    %c0_0 = arith.constant 0 : index
    %0 = vector.load %arg1[%c0, %c0_0] : memref<256x128xbf16, #tpu.memory_space<vmem>>, vector<256x128xbf16>
    %1 = arith.extf %0 : vector<256x128xbf16> to vector<256x128xf32>
    %c0_1 = arith.constant 0 : index
    %c0_2 = arith.constant 0 : index
    %2 = vector.load %arg3[%c0_1, %c0_2] : memref<1x128xf32, #tpu.memory_space<vmem>>, vector<1x128xf32>
    %3 = vector.broadcast %2 : vector<1x128xf32> to vector<256x128xf32>
    %4 = arith.mulf %1, %3 : vector<256x128xf32>
    %c0_3 = arith.constant 0 : index
    %c0_4 = arith.constant 0 : index
    %5 = vector.load %arg4[%c0_3, %c0_4] : memref<1x128xf32, #tpu.memory_space<vmem>>, vector<1x128xf32>
    %6 = vector.broadcast %5 : vector<1x128xf32> to vector<256x128xf32>
    %7 = arith.addf %4, %6 : vector<256x128xf32>
    %c0_5 = arith.constant 0 : index
    %c0_6 = arith.constant 0 : index
    %8 = vector.load %arg2[%c0_5, %c0_6] : memref<256x128xf32, #tpu.memory_space<vmem>>, vector<256x128xf32>
    %9 = arith.addf %7, %8 : vector<256x128xf32>
    %cst = arith.constant 0.000000e+00 : f32
    %10 = vector.broadcast %cst : f32 to vector<256x128xf32>
    %11 = arith.maximumf %9, %10 : vector<256x128xf32>
    %c0_7 = arith.constant 0 : index
    %c0_8 = arith.constant 0 : index
    %12 = vector.load %arg5[%c0_7, %c0_8] : memref<256x128xf32, #tpu.memory_space<vmem>>, vector<256x128xf32>
    tpu.vector_store %arg5[%c0_7, %c0_8], %11 {strides = array<i32>} : memref<256x128xf32, #tpu.memory_space<vmem>>, vector<256x128xf32>,
    return
  }
  func.func @transform_0(%arg0: i32) -> (i32, i32) {
    %c0_i32 = arith.constant 0 : i32
    %c0_i32_0 = arith.constant 0 : i32
    return %arg0, %c0_i32 : i32, i32
  }
  func.func @transform_1(%arg0: i32) -> (i32, i32) {
    %c0_i32 = arith.constant 0 : i32
    %c0_i32_0 = arith.constant 0 : i32
    return %arg0, %c0_i32 : i32, i32
  }
  func.func @transform_2(%arg0: i32) -> (i32, i32) {
    %c0_i32 = arith.constant 0 : i32
    %c0_i32_0 = arith.constant 0 : i32
    %c0_i32_1 = arith.constant 0 : i32
    return %c0_i32, %c0_i32_0 : i32, i32
  }
  func.func @transform_3(%arg0: i32) -> (i32, i32) {
    %c0_i32 = arith.constant 0 : i32
    %c0_i32_0 = arith.constant 0 : i32
    %c0_i32_1 = arith.constant 0 : i32
    return %c0_i32, %c0_i32_0 : i32, i32
  }
  func.func @transform_4(%arg0: i32) -> (i32, i32) {
    %c0_i32 = arith.constant 0 : i32
    %c0_i32_0 = arith.constant 0 : i32
    return %arg0, %c0_i32 : i32, i32
  }
}

</mosaic_0001>

<bundles_post_ra>
// kernel: bottleneck_forward_nhwc.4
= control target key start
LH: loop header
LB: loop body
LE: loop exit
PB: predicated region body
PF: predicated region fallthrough
CT: control target
= control target key end

     0   :  { %s853_s12 = smov 0   ;;  %s1072_s0 = inlined_call_operand.vmem [shape: f32[512,128], index: 0, kind: input, shape index: {}]   ;;  %s1073_s1 = inlined_call_operand.vmem [shape: bf16[128,128], index: 1, kind: input, shape index: {}]   ;;  %s1074_s2 = inlined_call_operand.vmem [shape: bf16[512,128], index: 2, kind: output, shape index: {0}]   ;;  %s1075_s3 = inlined_call_operand.vmem [shape: f32[2,2,128], index: 3, kind: output, shape index: {1}]  }
   0x1 LB: > { %s859_s13 = sadd.s32 4294967295, %s831_s12   ;;  %p650_p0 = scmp.ge.s32.totalorder %s831_s12, 1  ;;  %s831_s12 = sphi %s853_s12, %s14_s12  }
   0x2   : > { %p141_p1 = scmp.lt.s32.totalorder %s831_s12, 3 }
   0x4   : > { %p142_p2 = pnand %p650_p0, %p141_p1 }
   0x5   : > { %s651_s20 = sshll.u32 (!%p142_p2), %s859_s13, 5  ;;  %p181_p4 = scmp.lt.s32.totalorder (!%p142_p2), %s859_s13, 1 }
   0x6   : > { %145 = sbr.rel (%p142_p2) target bundleno = 291 (0x123), region = 28  ;;  %p170_p3 = scmp.lt.s32.totalorder (!%p142_p2), %s651_s20, 63 }
   0xb   : > { %v697_v0 = vld [vmem:[%s1073_s1 + $0x38] sm:$0xff]  ;;  %v696_v1 = vld [vmem:[%s1073_s1 + $0x30] sm:$0xff]  ;;  %v695_v2 = vld [vmem:[%s1073_s1 + $0x28] sm:$0xff]  ;;  %s1077_s20 = smov (!%p170_p3, %s651_s20), 63  ;;  %s1079_s13 = smov (!%p181_p4, %s859_s13), 1  ;;  %vm556_vm0 = vcmask 1040384  }
   0xc   : > { %297 = vmatpush.bf16.msra.mxu0 %v697_v0  ;;  %793 = vmatpush.bf16.msra.mxu1 %v697_v0  ;;  %v694_v3 = vld [vmem:[%s1073_s1 + $0x20] sm:$0xff]  ;;  %v693_v4 = vld [vmem:[%s1073_s1 + $0x18] sm:$0xff]  ;;  %v692_v5 = vld [vmem:[%s1073_s1 + $0x10] sm:$0xff]  ;;  %s652_s27 = sshll.u32 %s1077_s20, 3  ;;  %s654_s8 = sshll.u32 %s1077_s20, 2 }
   0xd   : > { %794 = vmatpush.bf16.msra.mxu2 %v697_v0  ;;  %795 = vmatpush.bf16.msra.mxu3 %v697_v0  ;;  %v691_v6 = vld [vmem:[%s1073_s1 + $0x8] sm:$0xff]  ;;  %s891_s5 = scalar_lea.vmem %s1072_s0, %s652_s27  ;;  %v690_v7 = vld [vmem:[%s1073_s1] sm:$0xff]  ;;  %s936_s11 = scalar_lea.vmem %s1074_s2, %s654_s8 }
   0xe   : > { %v185_v8 = vld [vmem:[%s891_s5] sm:$0xff]  ;;  %v186_v9 = vld [vmem:[%s891_s5 + $0x8] sm:$0xff]  ;;  %v187_v20 = vld [vmem:[%s891_s5 + $0x10] sm:$0xff]  ;;  %s655_s14 = sshll.u32 %s1079_s13, 1 }
   0xf   : > { %v193_v10 = vld [vmem:[%s891_s5 + $0x40] sm:$0xff]  ;;  %v194_v11 = vld [vmem:[%s891_s5 + $0x48] sm:$0xff]  ;;  %v217_v14 = vpack.c.bf16 %v186_v9, %v185_v8  ;;  %v188_v21 = vld [vmem:[%s891_s5 + $0x18] sm:$0xff]  ;;  %s184_s17 = scalar_lea.vmem %s1075_s3, %s655_s14 }
  0x10   : > { %298 = vmatpush.bf16.msra.mxu0 %v696_v1  ;;  %796 = vmatpush.bf16.msra.mxu1 %v696_v1  ;;  %v201_v12 = vld [vmem:[%s891_s5 + $0x80] sm:$0xff]  ;;  %v202_v13 = vld [vmem:[%s891_s5 + $0x88] sm:$0xff]  ;;  %v221_v15 = vpack.c.bf16 %v194_v11, %v193_v10  ;;  %v195_v22 = vld [vmem:[%s891_s5 + $0x50] sm:$0xff]  ;;  %v218_v26 = vpack.c.bf16 %v188_v21, %v187_v20 }
  0x11   : > { %797 = vmatpush.bf16.msra.mxu2 %v696_v1  ;;  %798 = vmatpush.bf16.msra.mxu3 %v696_v1  ;;  %v225_v16 = vpack.c.bf16 %v202_v13, %v201_v12  ;;  %v209_v17 = vld [vmem:[%s891_s5 + $0xc0] sm:$0xff]  ;;  %v210_v18 = vld [vmem:[%s891_s5 + $0xc8] sm:$0xff]  ;;  %v196_v23 = vld [vmem:[%s891_s5 + $0x58] sm:$0xff] }
  0x12   : > { %v229_v19 = vpack.c.bf16 %v210_v18, %v209_v17  ;;  %v203_v24 = vld [vmem:[%s891_s5 + $0x90] sm:$0xff]  ;;  %v204_v25 = vld [vmem:[%s891_s5 + $0x98] sm:$0xff]  ;;  %v222_v27 = vpack.c.bf16 %v196_v23, %v195_v22  ;;  %v189_v32 = vld [vmem:[%s891_s5 + $0x20] sm:$0xff] }
  0x13   : > { %v226_v28 = vpack.c.bf16 %v204_v25, %v203_v24  ;;  %v211_v29 = vld [vmem:[%s891_s5 + $0xd0] sm:$0xff]  ;;  %v212_v30 = vld [vmem:[%s891_s5 + $0xd8] sm:$0xff]  ;;  %v190_v33 = vld [vmem:[%s891_s5 + $0x28] sm:$0xff] }
  0x14   : > { %299 = vmatpush.bf16.msra.mxu0 %v695_v2  ;;  %799 = vmatpush.bf16.msra.mxu1 %v695_v2  ;;  %v230_v31 = vpack.c.bf16 %v212_v30, %v211_v29  ;;  %v197_v34 = vld [vmem:[%s891_s5 + $0x60] sm:$0xff]  ;;  %v198_v35 = vld [vmem:[%s891_s5 + $0x68] sm:$0xff]  ;;  %v219_v38 = vpack.c.bf16 %v190_v33, %v189_v32  ;;  %v191_v44 = vld [vmem:[%s891_s5 + $0x30] sm:$0xff] }
  0x15   : > { %800 = vmatpush.bf16.msra.mxu2 %v695_v2  ;;  %801 = vmatpush.bf16.msra.mxu3 %v695_v2  ;;  %v205_v36 = vld [vmem:[%s891_s5 + $0xa0] sm:$0xff]  ;;  %v206_v37 = vld [vmem:[%s891_s5 + $0xa8] sm:$0xff]  ;;  %v223_v39 = vpack.c.bf16 %v198_v35, %v197_v34  ;;  %v192_v45 = vld [vmem:[%s891_s5 + $0x38] sm:$0xff] }
  0x16   : > { %v213_v40 = vld [vmem:[%s891_s5 + $0xe0] sm:$0xff]  ;;  %v214_v41 = vld [vmem:[%s891_s5 + $0xe8] sm:$0xff]  ;;  %v227_v42 = vpack.c.bf16 %v206_v37, %v205_v36  ;;  %v199_v46 = vld [vmem:[%s891_s5 + $0x70] sm:$0xff]  ;;  %v220_v50 = vpack.c.bf16 %v192_v45, %v191_v44 }
  0x17   : > { %v231_v43 = vpack.c.bf16 %v214_v41, %v213_v40  ;;  %v200_v47 = vld [vmem:[%s891_s5 + $0x78] sm:$0xff]  ;;  %v207_v48 = vld [vmem:[%s891_s5 + $0xb0] sm:$0xff] }
  0x18   : > { %300 = vmatpush.bf16.msra.mxu0 %v694_v3  ;;  %802 = vmatpush.bf16.msra.mxu1 %v694_v3  ;;  %v208_v49 = vld [vmem:[%s891_s5 + $0xb8] sm:$0xff]  ;;  %v224_v51 = vpack.c.bf16 %v200_v47, %v199_v46  ;;  %v215_v52 = vld [vmem:[%s891_s5 + $0xf0] sm:$0xff] }
  0x19   : > { %803 = vmatpush.bf16.msra.mxu2 %v694_v3  ;;  %804 = vmatpush.bf16.msra.mxu3 %v694_v3  ;;  %v216_v53 = vld [vmem:[%s891_s5 + $0xf8] sm:$0xff]  ;;  %v228_v54 = vpack.c.bf16 %v208_v49, %v207_v48 }
  0x1a   : > { %v232_v55 = vpack.c.bf16 %v216_v53, %v215_v52 }
  0x1c   : > { %301 = vmatpush.bf16.msra.mxu0 %v693_v4  ;;  %805 = vmatpush.bf16.msra.mxu1 %v693_v4 }
  0x1d   : > { %806 = vmatpush.bf16.msra.mxu2 %v693_v4  ;;  %807 = vmatpush.bf16.msra.mxu3 %v693_v4 }
  0x20   : > { %302 = vmatpush.bf16.msra.mxu0 %v692_v5  ;;  %808 = vmatpush.bf16.msra.mxu1 %v692_v5 }
  0x21   : > { %809 = vmatpush.bf16.msra.mxu2 %v692_v5  ;;  %810 = vmatpush.bf16.msra.mxu3 %v692_v5 }
  0x24   : > { %303 = vmatpush.bf16.msra.mxu0 %v691_v6  ;;  %811 = vmatpush.bf16.msra.mxu1 %v691_v6 }
  0x25   : > { %812 = vmatpush.bf16.msra.mxu2 %v691_v6  ;;  %813 = vmatpush.bf16.msra.mxu3 %v691_v6 }
  0x28   : > { %304 = vmatpush.bf16.msra.mxu0 %v690_v7  ;;  %814 = vmatpush.bf16.msra.mxu1 %v690_v7 }
  0x29   : > { %815 = vmatpush.bf16.msra.mxu2 %v690_v7  ;;  %816 = vmatpush.bf16.msra.mxu3 %v690_v7 }
  0x2b   : > { %305 = vmatmul.bf16.vlgmr.msra.gmra.mxu0 %v217_v14  ;;  %325 = vmatmul.bf16.vlgmr.msra.gmra.mxu1 %v221_v15 }
  0x2c   : > { %345 = vmatmul.bf16.vlgmr.msra.gmra.mxu2 %v225_v16  ;;  %365 = vmatmul.bf16.vlgmr.msra.gmra.mxu3 %v229_v19 }
  0x3b   : > { %310 = vmatmul.bf16.gmra.mxu0 %v218_v26  ;;  %330 = vmatmul.bf16.gmra.mxu1 %v222_v27 }
  0x3c   : > { %350 = vmatmul.bf16.gmra.mxu2 %v226_v28  ;;  %370 = vmatmul.bf16.gmra.mxu3 %v230_v31 }
  0x4b   : > { %315 = vmatmul.bf16.gmra.mxu0 %v219_v38  ;;  %335 = vmatmul.bf16.gmra.mxu1 %v223_v39 }
  0x4c   : > { %355 = vmatmul.bf16.gmra.mxu2 %v227_v42  ;;  %375 = vmatmul.bf16.gmra.mxu3 %v231_v43 }
  0x5b   : > { %320 = vmatmul.bf16.gmra.mxu0 %v220_v50  ;;  %340 = vmatmul.bf16.gmra.mxu1 %v224_v51 }
  0x5c   : > { %360 = vmatmul.bf16.gmra.mxu2 %v228_v54  ;;  %380 = vmatmul.bf16.gmra.mxu3 %v232_v55 }
  0xa8   : > { %v306_v56 = vpop.f32.mrf.mxu0  ;;  %v928_v57 = vpop.f32.mrf.mxu1 }
  0xa9   : > { %v487_v25 = vmul.f32 %v306_v56, %v306_v56 }
  0xaf   : > { %v931_v58 = vpop.f32.mrf.mxu2  ;;  %v942_v63 = vpop.f32.mrf.mxu3 }
  0xb0   : > { %v308_v59 = vpop.f32.mrf.mxu0  ;;  %v938_v60 = vpop.f32.mrf.mxu1 }
  0xb1   : > { %v701_v61 = vpack.c.bf16 %v308_v59, %v306_v56  ;;  %v721_v62 = vpack.c.bf16 %v938_v60, %v928_v57  ;;  %v488_v24 = vmul.f32 %v308_v59, %v308_v59  ;;  %v450_v27 = vadd.f32 %v308_v59, %v306_v56 }
  0xb2   : > { %v495_v59 = vmul.f32 %v928_v57, %v928_v57 }
  0xb3   : > { %702 = vst [vmem:[%s936_s11] sm:$0xff] %v701_v61   ;;  %v519_v28 = vadd.f32 %v488_v24, %v487_v25 }
  0xb4   : > { %781 = vst [vmem:[%s936_s11 + $0x20] sm:$0xff] %v721_v62  }
  0xb7   : > { %v946_v0 = vpop.f32.mrf.mxu2  ;;  %v952_v4 = vpop.f32.mrf.mxu3 }
  0xb8   : > { %v311_v1 = vpop.f32.mrf.mxu0  ;;  %v948_v2 = vpop.f32.mrf.mxu1  ;;  %v741_v3 = vpack.c.bf16 %v946_v0, %v931_v58  ;;  %v761_v5 = vpack.c.bf16 %v952_v4, %v942_v63 }
  0xb9   : > { %v489_v26 = vmul.f32 %v311_v1, %v311_v1  ;;  %v451_v30 = vadd.f32 %v450_v27, %v311_v1 }
  0xba   : > { %785 = vst [vmem:[%s936_s11 + $0x40] sm:$0xff] %v741_v3  }
  0xbb   : > { %789 = vst [vmem:[%s936_s11 + $0x60] sm:$0xff] %v761_v5   ;;  %v520_v32 = vadd.f32 %v519_v28, %v489_v26 }
  0xbf   : > { %v958_v6 = vpop.f32.mrf.mxu2  ;;  %v964_v11 = vpop.f32.mrf.mxu3 }
  0xc0   : > { %v313_v7 = vpop.f32.mrf.mxu0  ;;  %v960_v8 = vpop.f32.mrf.mxu1 }
  0xc1   : > { %v706_v9 = vpack.c.bf16 %v313_v7, %v311_v1  ;;  %v726_v10 = vpack.c.bf16 %v960_v8, %v948_v2  ;;  %v490_v29 = vmul.f32 %v313_v7, %v313_v7  ;;  %v452_v37 = vadd.f32 %v451_v30, %v313_v7 }
  0xc2   : > { %v496_v1 = vmul.f32 %v938_v60, %v938_v60  ;;  %v497_v7 = vmul.f32 %v948_v2, %v948_v2 }
  0xc3   : > { %778 = vst [vmem:[%s936_s11 + $0x8] sm:$0xff] %v706_v9   ;;  %v521_v39 = vadd.f32 %v520_v32, %v490_v29 }
  0xc4   : > { %782 = vst [vmem:[%s936_s11 + $0x28] sm:$0xff] %v726_v10  }
  0xc7   : > { %v968_v12 = vpop.f32.mrf.mxu2  ;;  %v974_v16 = vpop.f32.mrf.mxu3 }
  0xc8   : > { %v316_v13 = vpop.f32.mrf.mxu0  ;;  %v970_v14 = vpop.f32.mrf.mxu1  ;;  %v746_v15 = vpack.c.bf16 %v968_v12, %v958_v6  ;;  %v766_v17 = vpack.c.bf16 %v974_v16, %v964_v11 }
  0xc9   : > { %v491_v33 = vmul.f32 %v316_v13, %v316_v13  ;;  %v453_v42 = vadd.f32 %v452_v37, %v316_v13  ;;  %v504_v37 = vmul.f32 %v946_v0, %v946_v0 }
  0xca   : > { %786 = vst [vmem:[%s936_s11 + $0x48] sm:$0xff] %v746_v15  }
  0xcb   : > { %790 = vst [vmem:[%s936_s11 + $0x68] sm:$0xff] %v766_v17   ;;  %v522_v43 = vadd.f32 %v521_v39, %v491_v33 }
  0xcf   : > { %v980_v18 = vpop.f32.mrf.mxu2  ;;  %v986_v23 = vpop.f32.mrf.mxu3 }
  0xd0   : > { %v318_v19 = vpop.f32.mrf.mxu0  ;;  %v982_v20 = vpop.f32.mrf.mxu1 }
  0xd1   : > { %v711_v21 = vpack.c.bf16 %v318_v19, %v316_v13  ;;  %v731_v22 = vpack.c.bf16 %v982_v20, %v970_v14  ;;  %v492_v40 = vmul.f32 %v318_v19, %v318_v19  ;;  %v454_v45 = vadd.f32 %v453_v42, %v318_v19 }
  0xd2   : > { %v506_v42 = vmul.f32 %v968_v12, %v968_v12 }
  0xd3   : > { %779 = vst [vmem:[%s936_s11 + $0x10] sm:$0xff] %v711_v21   ;;  %v523_v46 = vadd.f32 %v522_v43, %v492_v40 }
  0xd4   : > { %783 = vst [vmem:[%s936_s11 + $0x30] sm:$0xff] %v731_v22   ;;  %v499_v22 = vmul.f32 %v970_v14, %v970_v14 }
  0xd7   : > { %v990_v31 = vpop.f32.mrf.mxu2  ;;  %v994_v38 = vpop.f32.mrf.mxu3 }
  0xd8   : > { %v321_v34 = vpop.f32.mrf.mxu0  ;;  %v341_v35 = vpop.f32.mrf.mxu1  ;;  %v751_v36 = vpack.c.bf16 %v990_v31, %v980_v18  ;;  %v771_v41 = vpack.c.bf16 %v994_v38, %v986_v23 }
  0xd9   : > { %v493_v44 = vmul.f32 %v321_v34, %v321_v34  ;;  %v455_v47 = vadd.f32 %v454_v45, %v321_v34  ;;  %v501_v29 = vmul.f32 %v341_v35, %v341_v35 }
  0xda   : > { %787 = vst [vmem:[%s936_s11 + $0x50] sm:$0xff] %v751_v36  }
  0xdb   : > { %791 = vst [vmem:[%s936_s11 + $0x70] sm:$0xff] %v771_v41   ;;  %v524_v49 = vadd.f32 %v523_v46, %v493_v44 }
  0xdf   : > { %v361_v48 = vpop.f32.mrf.mxu2  ;;  %v1000_v56 = vpop.f32.mrf.mxu3 }
  0xe0   : > { %v323_v50 = vpop.f32.mrf.mxu0  ;;  %v343_v51 = vpop.f32.mrf.mxu1 }
  0xe1   : > { %v716_v52 = vpack.c.bf16 %v323_v50, %v321_v34  ;;  %v456_v53 = vadd.f32 %v455_v47, %v323_v50  ;;  %v494_v54 = vmul.f32 %v323_v50, %v323_v50  ;;  %v736_v55 = vpack.c.bf16 %v343_v51, %v341_v35 }
  0xe2   : > { %v502_v33 = vmul.f32 %v343_v51, %v343_v51  ;;  %v503_v34 = vmul.f32 %v931_v58, %v931_v58  ;;  %v508_v47 = vmul.f32 %v990_v31, %v990_v31 }
  0xe3   : > { %780 = vst [vmem:[%s936_s11 + $0x18] sm:$0xff] %v716_v52   ;;  %v457_v61 = vadd.f32 %v456_v53, %v928_v57  ;;  %v525_v62 = vadd.f32 %v524_v49, %v494_v54  ;;  %v498_v57 = vmul.f32 %v960_v8, %v960_v8 }
  0xe4   : > { %784 = vst [vmem:[%s936_s11 + $0x38] sm:$0xff] %v736_v55  }
  0xe5   : > { %v458_v3 = vadd.f32 %v457_v61, %v938_v60  ;;  %v526_v5 = vadd.f32 %v525_v62, %v495_v59 }
  0xe7   : > { %v459_v9 = vadd.f32 %v458_v3, %v948_v2  ;;  %v527_v10 = vadd.f32 %v526_v5, %v496_v1  ;;  %v363_v13 = vpop.f32.mrf.mxu2  ;;  %v383_v21 = vpop.f32.mrf.mxu3  ;;  %v500_v2 = vmul.f32 %v982_v20, %v982_v20  ;;  %v514_v3 = vmul.f32 %v974_v16, %v974_v16 }
  0xe8   : > { %v756_v15 = vpack.c.bf16 %v363_v13, %v361_v48  ;;  %v776_v60 = vpack.c.bf16 %v383_v21, %v1000_v56  ;;  %v510_v54 = vmul.f32 %v363_v13, %v363_v13 }
  0xe9   : > { %v528_v17 = vadd.f32 %v527_v10, %v497_v7  ;;  %v460_v19 = vadd.f32 %v459_v9, %v960_v8  ;;  %v515_v7 = vmul.f32 %v986_v23, %v986_v23 }
  0xea   : > { %788 = vst [vmem:[%s936_s11 + $0x58] sm:$0xff] %v756_v15  }
  0xeb   : > { %v461_v24 = vadd.f32 %v460_v19, %v970_v14  ;;  %v529_v25 = vadd.f32 %v528_v17, %v498_v57  ;;  %792 = vst [vmem:[%s936_s11 + $0x78] sm:$0xff] %v776_v60   ;;  %v517_v17 = vmul.f32 %v1000_v56, %v1000_v56  ;;  %v518_v60 = vmul.f32 %v383_v21, %v383_v21 }
  0xed   : > { %v462_v26 = vadd.f32 %v461_v24, %v982_v20  ;;  %v530_v27 = vadd.f32 %v529_v25, %v499_v22  ;;  %v505_v20 = vmul.f32 %v958_v6, %v958_v6 }
  0xef   : > { %v463_v28 = vadd.f32 %v462_v26, %v341_v35  ;;  %v531_v8 = vadd.f32 %v530_v27, %v500_v2 }
  0xf1   : > { %v532_v30 = vadd.f32 %v531_v8, %v501_v29  ;;  %v464_v32 = vadd.f32 %v463_v28, %v343_v51  ;;  %v509_v51 = vmul.f32 %v361_v48, %v361_v48 }
  0xf3   : > { %v465_v36 = vadd.f32 %v464_v32, %v931_v58  ;;  %v533_v14 = vadd.f32 %v532_v30, %v502_v33  ;;  %v507_v58 = vmul.f32 %v980_v18, %v980_v18 }
  0xf5   : > { %v466_v39 = vadd.f32 %v465_v36, %v946_v0  ;;  %v534_v40 = vadd.f32 %v533_v14, %v503_v34 }
  0xf7   : > { %v467_v35 = vadd.f32 %v466_v39, %v958_v6  ;;  %v535_v41 = vadd.f32 %v534_v40, %v504_v37 }
  0xf9   : > { %v536_v43 = vadd.f32 %v535_v41, %v505_v20  ;;  %v468_v44 = vadd.f32 %v467_v35, %v968_v12  ;;  %v511_v12 = vmul.f32 %v942_v63, %v942_v63 }
  0xfb   : > { %v469_v45 = vadd.f32 %v468_v44, %v980_v18  ;;  %v537_v46 = vadd.f32 %v536_v43, %v506_v42  ;;  %v512_v18 = vmul.f32 %v952_v4, %v952_v4 }
  0xfd   : > { %v470_v0 = vadd.f32 %v469_v45, %v990_v31  ;;  %v538_v49 = vadd.f32 %v537_v46, %v507_v58  ;;  %v513_v31 = vmul.f32 %v964_v11, %v964_v11 }
  0xff   : > { %v539_v6 = vadd.f32 %v538_v49, %v508_v47  ;;  %v471_v50 = vadd.f32 %v470_v0, %v361_v48 }
 0x101   : > { %v540_v52 = vadd.f32 %v539_v6, %v509_v51  ;;  %v472_v53 = vadd.f32 %v471_v50, %v363_v13 }
 0x103   : > { %v473_v55 = vadd.f32 %v472_v53, %v942_v63  ;;  %v541_v59 = vadd.f32 %v540_v52, %v510_v54 }
 0x105   : > { %v474_v61 = vadd.f32 %v473_v55, %v952_v4  ;;  %v542_v62 = vadd.f32 %v541_v59, %v511_v12 }
 0x107   : > { %v475_v48 = vadd.f32 %v474_v61, %v964_v11  ;;  %v543_v1 = vadd.f32 %v542_v62, %v512_v18  ;;  %v516_v11 = vmul.f32 %v994_v38, %v994_v38 }
 0x109   : > { %v544_v5 = vadd.f32 %v543_v1, %v513_v31  ;;  %v476_v63 = vadd.f32 %v475_v48, %v974_v16 }
 0x10b   : > { %v477_v9 = vadd.f32 %v476_v63, %v986_v23  ;;  %v545_v4 = vadd.f32 %v544_v5, %v514_v3 }
 0x10d   : > { %v478_v10 = vadd.f32 %v477_v9, %v994_v38  ;;  %v546_v13 = vadd.f32 %v545_v4, %v515_v7 }
 0x10f   : > { %v547_v15 = vadd.f32 %v546_v13, %v516_v11  ;;  %v479_v57 = vadd.f32 %v478_v10, %v1000_v56 }
 0x111   : > { %v548_v16 = vadd.f32 %v547_v15, %v517_v17  ;;  %v480_v19 = vadd.f32 %v479_v57, %v383_v21 }
 0x113   : > { %v481_v22 = vrot.slane %v480_v19, 4  ;;  %v549_v24 = vadd.f32 %v548_v16, %v518_v60 }
 0x115   : > { %v482_v23 = vadd.f32 %v481_v22, %v480_v19  ;;  %v550_v25 = vrot.slane %v549_v24, 4 }
 0x117   : > { %v483_v2 = vrot.slane %v482_v23, 2  ;;  %v551_v26 = vadd.f32 %v550_v25, %v549_v24 }
 0x119   : > { %v484_v27 = vadd.f32 %v483_v2, %v482_v23  ;;  %v552_v38 = vrot.slane %v551_v26, 2 }
 0x11b   : > { %v485_v28 = vrot.slane %v484_v27, 1  ;;  %v553_v29 = vadd.f32 %v552_v38, %v551_v26 }
 0x11d   : > { %v554_v8 = vrot.slane %v553_v29, 1  ;;  %v486_v56 = vadd.f32 %v485_v28, %v484_v27 }
 0x11f   : > { %v555_v21 = vadd.f32 %v554_v8, %v553_v29 }
 0x121   : > { %v557_v30 = vsel %vm556_vm0, %v486_v56, %v555_v21 }
 0x122   : > { %558 = vst [vmem:[%s184_s17] sm:$0x3] %v557_v30 }
 0x123 PF: > { %s14_s12 = sadd.s32 1, %s831_s12  }
 0x124   : > { %p11_p5 = scmp.ge.s32.totalorder %s14_s12, 4  }
 0x126   :  { %13 = sbr.rel (!%p11_p5) target bundleno = 1 (0x1), region = 70 }

// kernel: bottleneck_forward_nhwc.6
= control target key start
LH: loop header
LB: loop body
LE: loop exit
PB: predicated region body
PF: predicated region fallthrough
CT: control target
= control target key end

     0   :  { %s1134_s18 = smov 0   ;;  %s1414_s0 = inlined_call_operand.vmem [shape: bf16[512,128], index: 0, kind: input, shape index: {}]   ;;  %s1415_s1 = inlined_call_operand.vmem [shape: f32[1,128], index: 1, kind: input, shape index: {}]   ;;  %s1416_s2 = inlined_call_operand.vmem [shape: f32[1,128], index: 2, kind: input, shape index: {}]   ;;  %s1417_s3 = inlined_call_operand.vmem [shape: bf16[128,128], index: 3, kind: input, shape index: {}]   ;;  %s1418_s4 = inlined_call_operand.vmem [shape: bf16[512,128], index: 4, kind: output, shape index: {0}]   ;;  %s1419_s5 = inlined_call_operand.vmem [shape: f32[2,2,128], index: 5, kind: output, shape index: {1}]  }
   0x1 LB: > { %s1140_s19 = sadd.s32 4294967295, %s1102_s18   ;;  %p840_p0 = scmp.ge.s32.totalorder %s1102_s18, 1  ;;  %s1102_s18 = sphi %s1134_s18, %s16_s18  }
   0x2   : > { %p191_p1 = scmp.lt.s32.totalorder %s1102_s18, 3 }
   0x4   : > { %p192_p2 = pnand %p840_p0, %p191_p1 }
   0x5   : > { %s841_s22 = sshll.u32 (!%p192_p2), %s1140_s19, 5  ;;  %p235_p4 = scmp.lt.s32.totalorder (!%p192_p2), %s1140_s19, 1 }
   0x6   : > { %195 = sbr.rel (%p192_p2) target bundleno = 291 (0x123), region = 36  ;;  %p224_p3 = scmp.lt.s32.totalorder (!%p192_p2), %s841_s22, 63 }
   0xb   : > { %v887_v0 = vld [vmem:[%s1417_s3 + $0x38] sm:$0xff]  ;;  %v886_v1 = vld [vmem:[%s1417_s3 + $0x30] sm:$0xff]  ;;  %s1421_s22 = smov (!%p224_p3, %s841_s22), 63  ;;  %v885_v2 = vld [vmem:[%s1417_s3 + $0x28] sm:$0xff]  ;;  %s1423_s19 = smov (!%p235_p4, %s1140_s19), 1  ;;  %vm746_vm0 = vcmask 1040384  }
   0xc   : > { %487 = vmatpush.bf16.msra.mxu0 %v887_v0  ;;  %1062 = vmatpush.bf16.msra.mxu1 %v887_v0  ;;  %s842_s25 = sshll.u32 %s1421_s22, 2  ;;  %v884_v4 = vld [vmem:[%s1417_s3 + $0x20] sm:$0xff]  ;;  %v883_v12 = vld [vmem:[%s1417_s3 + $0x18] sm:$0xff]  ;;  %v882_v20 = vld [vmem:[%s1417_s3 + $0x10] sm:$0xff]  ;;  %s845_s22 = sshll.u32 %s1423_s19, 1 }
   0xd   : > { %1063 = vmatpush.bf16.msra.mxu2 %v887_v0  ;;  %1064 = vmatpush.bf16.msra.mxu3 %v887_v0  ;;  %s1162_s30 = scalar_lea.vmem %s1414_s0, %s842_s25  ;;  %v1173_v9 = vld [vmem:[%s1415_s1] ss:$0 sm:$0xff]  ;;  %v881_v27 = vld [vmem:[%s1417_s3 + $0x8] sm:$0xff]  ;;  %s1278_s26 = scalar_lea.vmem %s1418_s4, %s842_s25 }
   0xe   : > { %v889_v3 = vld [vmem:[%s1162_s30] sm:$0xff]   ;;  %v1032_v32 = vld [vmem:[%s1162_s30 + $0x8] sm:$0xff]   ;;  %s238_s28 = scalar_lea.vmem %s1419_s5, %s845_s22 }
   0xf   : > { %v1035_v5 = vld [vmem:[%s1162_s30 + $0x20] sm:$0xff]   ;;  %v890_v7 = vunpack.c.l.bf16 %v889_v3  ;;  %v891_v8 = vunpack.c.h.bf16 %v889_v3  ;;  %v1036_v36 = vld [vmem:[%s1162_s30 + $0x28] sm:$0xff]   ;;  %v894_v42 = vunpack.c.l.bf16 %v1032_v32  ;;  %v895_v45 = vunpack.c.h.bf16 %v1032_v32 }
  0x10   : > { %488 = vmatpush.bf16.msra.mxu0 %v886_v1  ;;  %1065 = vmatpush.bf16.msra.mxu1 %v886_v1  ;;  %v1039_v6 = vld [vmem:[%s1162_s30 + $0x40] sm:$0xff]   ;;  %v906_v10 = vunpack.c.l.bf16 %v1035_v5  ;;  %v907_v11 = vunpack.c.h.bf16 %v1035_v5  ;;  %v1040_v43 = vld [vmem:[%s1162_s30 + $0x48] sm:$0xff]   ;;  %v910_v46 = vunpack.c.l.bf16 %v1036_v36  ;;  %v911_v47 = vunpack.c.h.bf16 %v1036_v36 }
  0x11   : > { %1066 = vmatpush.bf16.msra.mxu2 %v886_v1  ;;  %1067 = vmatpush.bf16.msra.mxu3 %v886_v1  ;;  %v922_v13 = vunpack.c.l.bf16 %v1039_v6  ;;  %v923_v14 = vunpack.c.h.bf16 %v1039_v6  ;;  %v307_v15 = vmul.f32 %v1173_v9, %v890_v7  ;;  %v308_v16 = vmul.f32 %v1173_v9, %v891_v8  ;;  %v1183_v17 = vld [vmem:[%s1416_s2] ss:$0 sm:$0xff] }
  0x12   : > { %v315_v18 = vmul.f32 %v1173_v9, %v906_v10  ;;  %v316_v19 = vmul.f32 %v1173_v9, %v907_v11  ;;  %v1043_v33 = vld [vmem:[%s1162_s30 + $0x60] sm:$0xff]   ;;  %v926_v53 = vunpack.c.l.bf16 %v1040_v43  ;;  %v927_v54 = vunpack.c.h.bf16 %v1040_v43  ;;  %v1045_v43 = vld [vmem:[%s1162_s30 + $0x70] sm:$0xff]  }
  0x13   : > { %v323_v21 = vmul.f32 %v1173_v9, %v922_v13  ;;  %v324_v22 = vmul.f32 %v1173_v9, %v923_v14  ;;  %v343_v23 = vadd.f32 %v1183_v17, %v307_v15  ;;  %v344_v24 = vadd.f32 %v1183_v17, %v308_v16  ;;  %v880_v39 = vld [vmem:[%s1417_s3] sm:$0xff]  ;;  %v1033_v13 = vld [vmem:[%s1162_s30 + $0x10] sm:$0xff]  }
  0x14   : > { %489 = vmatpush.bf16.msra.mxu0 %v885_v2  ;;  %1068 = vmatpush.bf16.msra.mxu1 %v885_v2  ;;  %v351_v25 = vadd.f32 %v1183_v17, %v315_v18  ;;  %v352_v26 = vadd.f32 %v1183_v17, %v316_v19  ;;  %v938_v37 = vunpack.c.l.bf16 %v1043_v33  ;;  %v939_v38 = vunpack.c.h.bf16 %v1043_v33  ;;  %v1037_v19 = vld [vmem:[%s1162_s30 + $0x30] sm:$0xff]  }
  0x15   : > { %1069 = vmatpush.bf16.msra.mxu2 %v885_v2  ;;  %1070 = vmatpush.bf16.msra.mxu3 %v885_v2  ;;  %v359_v28 = vadd.f32 %v1183_v17, %v323_v21  ;;  %v360_v29 = vadd.f32 %v1183_v17, %v324_v22  ;;  %v375_v30 = vmax.f32 %v343_v23, 0.0  ;;  %v376_v31 = vmax.f32 %v344_v24, 0.0 }
  0x16   : > { %v383_v34 = vmax.f32 %v351_v25, 0.0  ;;  %v384_v35 = vmax.f32 %v352_v26, 0.0  ;;  %v331_v44 = vmul.f32 %v1173_v9, %v938_v37  ;;  %v332_v48 = vmul.f32 %v1173_v9, %v939_v38 }
  0x17   : > { %v391_v40 = vmax.f32 %v359_v28, 0.0  ;;  %v392_v41 = vmax.f32 %v360_v29, 0.0  ;;  %v407_v49 = vpack.c.bf16 %v376_v31, %v375_v30  ;;  %v309_v56 = vmul.f32 %v1173_v9, %v894_v42 }
  0x18   : > { %490 = vmatpush.bf16.msra.mxu0 %v884_v4  ;;  %1071 = vmatpush.bf16.msra.mxu1 %v884_v4  ;;  %v411_v50 = vpack.c.bf16 %v384_v35, %v383_v34  ;;  %v367_v51 = vadd.f32 %v1183_v17, %v331_v44  ;;  %v368_v55 = vadd.f32 %v1183_v17, %v332_v48  ;;  %v898_v25 = vunpack.c.l.bf16 %v1033_v13 }
  0x19   : > { %1072 = vmatpush.bf16.msra.mxu2 %v884_v4  ;;  %1073 = vmatpush.bf16.msra.mxu3 %v884_v4  ;;  %v415_v52 = vpack.c.bf16 %v392_v41, %v391_v40  ;;  %v310_v58 = vmul.f32 %v1173_v9, %v895_v45  ;;  %v317_v59 = vmul.f32 %v1173_v9, %v910_v46  ;;  %v899_v26 = vunpack.c.h.bf16 %v1033_v13 }
  0x1a   : > { %v399_v57 = vmax.f32 %v367_v51, 0.0  ;;  %v318_v60 = vmul.f32 %v1173_v9, %v911_v47  ;;  %v400_v61 = vmax.f32 %v368_v55, 0.0  ;;  %v325_v62 = vmul.f32 %v1173_v9, %v926_v53 }
  0x1b   : > { %v326_v63 = vmul.f32 %v1173_v9, %v927_v54  ;;  %v345_v1 = vadd.f32 %v1183_v17, %v309_v56  ;;  %v346_v2 = vadd.f32 %v1183_v17, %v310_v58  ;;  %v353_v3 = vadd.f32 %v1183_v17, %v317_v59 }
  0x1c   : > { %491 = vmatpush.bf16.msra.mxu0 %v883_v12  ;;  %1074 = vmatpush.bf16.msra.mxu1 %v883_v12  ;;  %v419_v0 = vpack.c.bf16 %v400_v61, %v399_v57  ;;  %v354_v4 = vadd.f32 %v1183_v17, %v318_v60  ;;  %v361_v5 = vadd.f32 %v1183_v17, %v325_v62  ;;  %v915_v28 = vunpack.c.h.bf16 %v1037_v19  ;;  %v1034_v60 = vld [vmem:[%s1162_s30 + $0x18] sm:$0xff]  }
  0x1d   : > { %1075 = vmatpush.bf16.msra.mxu2 %v883_v12  ;;  %1076 = vmatpush.bf16.msra.mxu3 %v883_v12  ;;  %v362_v6 = vadd.f32 %v1183_v17, %v326_v63  ;;  %v377_v7 = vmax.f32 %v345_v1, 0.0  ;;  %v378_v8 = vmax.f32 %v346_v2, 0.0  ;;  %v385_v10 = vmax.f32 %v353_v3, 0.0  ;;  %v1044_v12 = vld [vmem:[%s1162_s30 + $0x68] sm:$0xff]   ;;  %v1038_v63 = vld [vmem:[%s1162_s30 + $0x38] sm:$0xff]  }
  0x1e   : > { %v386_v11 = vmax.f32 %v354_v4, 0.0  ;;  %v942_v14 = vunpack.c.l.bf16 %v1044_v12  ;;  %v943_v15 = vunpack.c.h.bf16 %v1044_v12  ;;  %v393_v16 = vmax.f32 %v361_v5, 0.0 }
  0x1f   : > { %v394_v18 = vmax.f32 %v362_v6, 0.0  ;;  %v408_v23 = vpack.c.bf16 %v378_v8, %v377_v7  ;;  %v311_v36 = vmul.f32 %v1173_v9, %v898_v25  ;;  %v312_v37 = vmul.f32 %v1173_v9, %v899_v26 }
  0x20   : > { %492 = vmatpush.bf16.msra.mxu0 %v882_v20  ;;  %1077 = vmatpush.bf16.msra.mxu1 %v882_v20  ;;  %v333_v21 = vmul.f32 %v1173_v9, %v942_v14  ;;  %v334_v22 = vmul.f32 %v1173_v9, %v943_v15  ;;  %v412_v24 = vpack.c.bf16 %v386_v11, %v385_v10  ;;  %v946_v44 = vunpack.c.l.bf16 %v1045_v43  ;;  %v1046_v10 = vld [vmem:[%s1162_s30 + $0x78] sm:$0xff]  }
  0x21   : > { %1078 = vmatpush.bf16.msra.mxu2 %v882_v20  ;;  %1079 = vmatpush.bf16.msra.mxu3 %v882_v20  ;;  %v1041_v20 = vld [vmem:[%s1162_s30 + $0x50] sm:$0xff]   ;;  %v416_v31 = vpack.c.bf16 %v394_v18, %v393_v16  ;;  %v947_v45 = vunpack.c.h.bf16 %v1045_v43  ;;  %v347_v46 = vadd.f32 %v1183_v17, %v311_v36  ;;  %v348_v47 = vadd.f32 %v1183_v17, %v312_v37 }
  0x22   : > { %v369_v29 = vadd.f32 %v1183_v17, %v333_v21  ;;  %v370_v30 = vadd.f32 %v1183_v17, %v334_v22  ;;  %v930_v32 = vunpack.c.l.bf16 %v1041_v20  ;;  %v931_v33 = vunpack.c.h.bf16 %v1041_v20 }
  0x23   : > { %v336_v51 = vmul.f32 %v1173_v9, %v947_v45  ;;  %v379_v54 = vmax.f32 %v347_v46, 0.0  ;;  %v380_v55 = vmax.f32 %v348_v47, 0.0  ;;  %v902_v2 = vunpack.c.l.bf16 %v1034_v60 }
  0x24   : > { %493 = vmatpush.bf16.msra.mxu0 %v881_v27  ;;  %1080 = vmatpush.bf16.msra.mxu1 %v881_v27  ;;  %v401_v34 = vmax.f32 %v369_v29, 0.0  ;;  %v402_v35 = vmax.f32 %v370_v30, 0.0  ;;  %v327_v41 = vmul.f32 %v1173_v9, %v930_v32  ;;  %v328_v42 = vmul.f32 %v1173_v9, %v931_v33 }
  0x25   : > { %1081 = vmatpush.bf16.msra.mxu2 %v881_v27  ;;  %1082 = vmatpush.bf16.msra.mxu3 %v881_v27  ;;  %v914_v27 = vunpack.c.l.bf16 %v1037_v19  ;;  %v372_v57 = vadd.f32 %v1183_v17, %v336_v51  ;;  %v409_v1 = vpack.c.bf16 %v380_v55, %v379_v54  ;;  %v903_v6 = vunpack.c.h.bf16 %v1034_v60 }
  0x26   : > { %v420_v40 = vpack.c.bf16 %v402_v35, %v401_v34  ;;  %v364_v53 = vadd.f32 %v1183_v17, %v328_v42  ;;  %v918_v7 = vunpack.c.l.bf16 %v1038_v63  ;;  %v919_v8 = vunpack.c.h.bf16 %v1038_v63 }
  0x27   : > { %v319_v38 = vmul.f32 %v1173_v9, %v914_v27  ;;  %v404_v4 = vmax.f32 %v372_v57, 0.0  ;;  %v313_v14 = vmul.f32 %v1173_v9, %v902_v2  ;;  %v950_v16 = vunpack.c.l.bf16 %v1046_v10 }
  0x28   : > { %494 = vmatpush.bf16.msra.mxu0 %v880_v39  ;;  %1083 = vmatpush.bf16.msra.mxu1 %v880_v39  ;;  %v396_v62 = vmax.f32 %v364_v53, 0.0  ;;  %v951_v18 = vunpack.c.h.bf16 %v1046_v10  ;;  %v314_v19 = vmul.f32 %v1173_v9, %v903_v6  ;;  %v321_v20 = vmul.f32 %v1173_v9, %v918_v7 }
  0x29   : > { %1084 = vmatpush.bf16.msra.mxu2 %v880_v39  ;;  %1085 = vmatpush.bf16.msra.mxu3 %v880_v39  ;;  %v320_v39 = vmul.f32 %v1173_v9, %v915_v28  ;;  %v355_v48 = vadd.f32 %v1183_v17, %v319_v38  ;;  %v322_v21 = vmul.f32 %v1173_v9, %v919_v8 }
  0x2a   : > { %v338_v25 = vmul.f32 %v1173_v9, %v951_v18  ;;  %v349_v26 = vadd.f32 %v1183_v17, %v313_v14  ;;  %v350_v27 = vadd.f32 %v1183_v17, %v314_v19  ;;  %v357_v28 = vadd.f32 %v1183_v17, %v321_v20 }
  0x2b   : > { %495 = vmatmul.bf16.vlgmr.msra.gmra.mxu0 %v407_v49  ;;  %515 = vmatmul.bf16.vlgmr.msra.gmra.mxu1 %v411_v50  ;;  %v356_v49 = vadd.f32 %v1183_v17, %v320_v39  ;;  %v335_v50 = vmul.f32 %v1173_v9, %v946_v44  ;;  %v387_v58 = vmax.f32 %v355_v48, 0.0  ;;  %v358_v29 = vadd.f32 %v1183_v17, %v322_v21 }
  0x2c   : > { %535 = vmatmul.bf16.vlgmr.msra.gmra.mxu2 %v415_v52  ;;  %555 = vmatmul.bf16.vlgmr.msra.gmra.mxu3 %v419_v0  ;;  %v363_v52 = vadd.f32 %v1183_v17, %v327_v41  ;;  %v1042_v0 = vld [vmem:[%s1162_s30 + $0x58] sm:$0xff]   ;;  %v374_v33 = vadd.f32 %v1183_v17, %v338_v25  ;;  %v381_v34 = vmax.f32 %v349_v26, 0.0  ;;  %v382_v35 = vmax.f32 %v350_v27, 0.0 }
  0x2d   : > { %v371_v56 = vadd.f32 %v1183_v17, %v335_v50  ;;  %v388_v59 = vmax.f32 %v356_v49, 0.0  ;;  %v934_v12 = vunpack.c.l.bf16 %v1042_v0  ;;  %v935_v13 = vunpack.c.h.bf16 %v1042_v0 }
  0x2e   : > { %v395_v61 = vmax.f32 %v363_v52, 0.0  ;;  %v389_v36 = vmax.f32 %v357_v28, 0.0  ;;  %v410_v41 = vpack.c.bf16 %v382_v35, %v381_v34 }
  0x2f   : > { %v403_v3 = vmax.f32 %v371_v56, 0.0  ;;  %v413_v5 = vpack.c.bf16 %v388_v59, %v387_v58  ;;  %v329_v22 = vmul.f32 %v1173_v9, %v934_v12 }
  0x30   : > { %v417_v11 = vpack.c.bf16 %v396_v62, %v395_v61 }
  0x31   : > { %v421_v15 = vpack.c.bf16 %v404_v4, %v403_v3  ;;  %v365_v30 = vadd.f32 %v1183_v17, %v329_v22 }
  0x33   : > { %v397_v37 = vmax.f32 %v365_v30, 0.0 }
  0x3b   : > { %500 = vmatmul.bf16.gmra.mxu0 %v408_v23  ;;  %520 = vmatmul.bf16.gmra.mxu1 %v412_v24  ;;  %v330_v23 = vmul.f32 %v1173_v9, %v935_v13  ;;  %v337_v24 = vmul.f32 %v1173_v9, %v950_v16  ;;  %v390_v9 = vmax.f32 %v358_v29, 0.0 }
  0x3c   : > { %540 = vmatmul.bf16.gmra.mxu2 %v416_v31  ;;  %560 = vmatmul.bf16.gmra.mxu3 %v420_v40  ;;  %v406_v40 = vmax.f32 %v374_v33, 0.0 }
  0x3d   : > { %v366_v31 = vadd.f32 %v1183_v17, %v330_v23  ;;  %v373_v32 = vadd.f32 %v1183_v17, %v337_v24  ;;  %v414_v42 = vpack.c.bf16 %v390_v9, %v389_v36 }
  0x3f   : > { %v398_v38 = vmax.f32 %v366_v31, 0.0  ;;  %v405_v39 = vmax.f32 %v373_v32, 0.0 }
  0x41   : > { %v418_v43 = vpack.c.bf16 %v398_v38, %v397_v37  ;;  %v422_v44 = vpack.c.bf16 %v406_v40, %v405_v39 }
  0x4b   : > { %505 = vmatmul.bf16.gmra.mxu0 %v409_v1  ;;  %525 = vmatmul.bf16.gmra.mxu1 %v413_v5 }
  0x4c   : > { %545 = vmatmul.bf16.gmra.mxu2 %v417_v11  ;;  %565 = vmatmul.bf16.gmra.mxu3 %v421_v15 }
  0x5b   : > { %510 = vmatmul.bf16.gmra.mxu0 %v410_v41  ;;  %530 = vmatmul.bf16.gmra.mxu1 %v414_v42 }
  0x5c   : > { %550 = vmatmul.bf16.gmra.mxu2 %v418_v43  ;;  %570 = vmatmul.bf16.gmra.mxu3 %v422_v44 }
  0xa8   : > { %v496_v45 = vpop.f32.mrf.mxu0  ;;  %v1269_v46 = vpop.f32.mrf.mxu1 }
  0xa9   : > { %v677_v14 = vmul.f32 %v496_v45, %v496_v45 }
  0xaf   : > { %v1271_v17 = vpop.f32.mrf.mxu2  ;;  %v1284_v51 = vpop.f32.mrf.mxu3 }
  0xb0   : > { %v498_v47 = vpop.f32.mrf.mxu0  ;;  %v1280_v48 = vpop.f32.mrf.mxu1 }
  0xb1   : > { %v955_v49 = vpack.c.bf16 %v498_v47, %v496_v45  ;;  %v975_v50 = vpack.c.bf16 %v1280_v48, %v1269_v46  ;;  %v678_v13 = vmul.f32 %v498_v47, %v498_v47  ;;  %v640_v16 = vadd.f32 %v498_v47, %v496_v45 }
  0xb2   : > { %v685_v47 = vmul.f32 %v1269_v46, %v1269_v46 }
  0xb3   : > { %956 = vst [vmem:[%s1278_s26] sm:$0xff] %v955_v49   ;;  %v709_v18 = vadd.f32 %v678_v13, %v677_v14 }
  0xb4   : > { %1050 = vst [vmem:[%s1278_s26 + $0x20] sm:$0xff] %v975_v50  }
  0xb7   : > { %v1288_v52 = vpop.f32.mrf.mxu2  ;;  %v1294_v56 = vpop.f32.mrf.mxu3 }
  0xb8   : > { %v501_v53 = vpop.f32.mrf.mxu0  ;;  %v1290_v54 = vpop.f32.mrf.mxu1  ;;  %v995_v55 = vpack.c.bf16 %v1288_v52, %v1271_v17  ;;  %v1015_v57 = vpack.c.bf16 %v1294_v56, %v1284_v51 }
  0xb9   : > { %v679_v15 = vmul.f32 %v501_v53, %v501_v53  ;;  %v641_v20 = vadd.f32 %v640_v16, %v501_v53 }
  0xba   : > { %1054 = vst [vmem:[%s1278_s26 + $0x40] sm:$0xff] %v995_v55  }
  0xbb   : > { %1058 = vst [vmem:[%s1278_s26 + $0x60] sm:$0xff] %v1015_v57   ;;  %v710_v22 = vadd.f32 %v709_v18, %v679_v15 }
  0xbf   : > { %v1300_v58 = vpop.f32.mrf.mxu2  ;;  %v1306_v63 = vpop.f32.mrf.mxu3 }
  0xc0   : > { %v503_v59 = vpop.f32.mrf.mxu0  ;;  %v1302_v60 = vpop.f32.mrf.mxu1 }
  0xc1   : > { %v960_v61 = vpack.c.bf16 %v503_v59, %v501_v53  ;;  %v980_v62 = vpack.c.bf16 %v1302_v60, %v1290_v54  ;;  %v680_v19 = vmul.f32 %v503_v59, %v503_v59  ;;  %v642_v27 = vadd.f32 %v641_v20, %v503_v59 }
  0xc2   : > { %v686_v53 = vmul.f32 %v1280_v48, %v1280_v48  ;;  %v687_v59 = vmul.f32 %v1290_v54, %v1290_v54 }
  0xc3   : > { %1047 = vst [vmem:[%s1278_s26 + $0x8] sm:$0xff] %v960_v61   ;;  %v711_v29 = vadd.f32 %v710_v22, %v680_v19 }
  0xc4   : > { %1051 = vst [vmem:[%s1278_s26 + $0x28] sm:$0xff] %v980_v62  }
  0xc7   : > { %v1310_v0 = vpop.f32.mrf.mxu2  ;;  %v1316_v4 = vpop.f32.mrf.mxu3 }
  0xc8   : > { %v506_v1 = vpop.f32.mrf.mxu0  ;;  %v1312_v2 = vpop.f32.mrf.mxu1  ;;  %v1000_v3 = vpack.c.bf16 %v1310_v0, %v1300_v58  ;;  %v1020_v5 = vpack.c.bf16 %v1316_v4, %v1306_v63 }
  0xc9   : > { %v681_v23 = vmul.f32 %v506_v1, %v506_v1  ;;  %v643_v32 = vadd.f32 %v642_v27, %v506_v1  ;;  %v694_v27 = vmul.f32 %v1288_v52, %v1288_v52 }
  0xca   : > { %1055 = vst [vmem:[%s1278_s26 + $0x48] sm:$0xff] %v1000_v3  }
  0xcb   : > { %1059 = vst [vmem:[%s1278_s26 + $0x68] sm:$0xff] %v1020_v5   ;;  %v712_v33 = vadd.f32 %v711_v29, %v681_v23 }
  0xcf   : > { %v1322_v6 = vpop.f32.mrf.mxu2  ;;  %v1328_v12 = vpop.f32.mrf.mxu3 }
  0xd0   : > { %v508_v7 = vpop.f32.mrf.mxu0  ;;  %v1324_v8 = vpop.f32.mrf.mxu1 }
  0xd1   : > { %v965_v10 = vpack.c.bf16 %v508_v7, %v506_v1  ;;  %v985_v11 = vpack.c.bf16 %v1324_v8, %v1312_v2  ;;  %v682_v30 = vmul.f32 %v508_v7, %v508_v7  ;;  %v644_v35 = vadd.f32 %v643_v32, %v508_v7 }
  0xd2   : > { %v696_v32 = vmul.f32 %v1310_v0, %v1310_v0 }
  0xd3   : > { %1048 = vst [vmem:[%s1278_s26 + $0x10] sm:$0xff] %v965_v10   ;;  %v713_v36 = vadd.f32 %v712_v33, %v682_v30 }
  0xd4   : > { %1052 = vst [vmem:[%s1278_s26 + $0x30] sm:$0xff] %v985_v11   ;;  %v689_v11 = vmul.f32 %v1312_v2, %v1312_v2 }
  0xd7   : > { %v1332_v21 = vpop.f32.mrf.mxu2  ;;  %v1336_v28 = vpop.f32.mrf.mxu3 }
  0xd8   : > { %v511_v24 = vpop.f32.mrf.mxu0  ;;  %v531_v25 = vpop.f32.mrf.mxu1  ;;  %v1005_v26 = vpack.c.bf16 %v1332_v21, %v1322_v6  ;;  %v1025_v31 = vpack.c.bf16 %v1336_v28, %v1328_v12 }
  0xd9   : > { %v683_v34 = vmul.f32 %v511_v24, %v511_v24  ;;  %v645_v9 = vadd.f32 %v644_v35, %v511_v24  ;;  %v691_v19 = vmul.f32 %v531_v25, %v531_v25 }
  0xda   : > { %1056 = vst [vmem:[%s1278_s26 + $0x50] sm:$0xff] %v1005_v26  }
  0xdb   : > { %1060 = vst [vmem:[%s1278_s26 + $0x70] sm:$0xff] %v1025_v31   ;;  %v714_v38 = vadd.f32 %v713_v36, %v683_v34 }
  0xdf   : > { %v551_v37 = vpop.f32.mrf.mxu2  ;;  %v1342_v45 = vpop.f32.mrf.mxu3 }
  0xe0   : > { %v513_v39 = vpop.f32.mrf.mxu0  ;;  %v533_v40 = vpop.f32.mrf.mxu1 }
  0xe1   : > { %v970_v41 = vpack.c.bf16 %v513_v39, %v511_v24  ;;  %v646_v42 = vadd.f32 %v645_v9, %v513_v39  ;;  %v684_v43 = vmul.f32 %v513_v39, %v513_v39  ;;  %v990_v44 = vpack.c.bf16 %v533_v40, %v531_v25 }
  0xe2   : > { %v692_v23 = vmul.f32 %v533_v40, %v533_v40  ;;  %v693_v24 = vmul.f32 %v1271_v17, %v1271_v17  ;;  %v698_v9 = vmul.f32 %v1332_v21, %v1332_v21 }
  0xe3   : > { %1049 = vst [vmem:[%s1278_s26 + $0x18] sm:$0xff] %v970_v41   ;;  %v647_v49 = vadd.f32 %v646_v42, %v1269_v46  ;;  %v715_v50 = vadd.f32 %v714_v38, %v684_v43  ;;  %v688_v46 = vmul.f32 %v1302_v60, %v1302_v60 }
  0xe4   : > { %1053 = vst [vmem:[%s1278_s26 + $0x38] sm:$0xff] %v990_v44  }
  0xe5   : > { %v648_v55 = vadd.f32 %v647_v49, %v1280_v48  ;;  %v716_v57 = vadd.f32 %v715_v50, %v685_v47 }
  0xe7   : > { %v649_v61 = vadd.f32 %v648_v55, %v1290_v54  ;;  %v717_v62 = vadd.f32 %v716_v57, %v686_v53  ;;  %v553_v1 = vpop.f32.mrf.mxu2  ;;  %v573_v10 = vpop.f32.mrf.mxu3  ;;  %v690_v54 = vmul.f32 %v1324_v8, %v1324_v8  ;;  %v704_v55 = vmul.f32 %v1316_v4, %v1316_v4 }
  0xe8   : > { %v1010_v3 = vpack.c.bf16 %v553_v1, %v551_v37  ;;  %v1030_v48 = vpack.c.bf16 %v573_v10, %v1342_v45  ;;  %v700_v43 = vmul.f32 %v553_v1, %v553_v1 }
  0xe9   : > { %v718_v5 = vadd.f32 %v717_v62, %v687_v59  ;;  %v650_v7 = vadd.f32 %v649_v61, %v1302_v60  ;;  %v705_v59 = vmul.f32 %v1328_v12, %v1328_v12 }
  0xea   : > { %1057 = vst [vmem:[%s1278_s26 + $0x58] sm:$0xff] %v1010_v3  }
  0xeb   : > { %v651_v13 = vadd.f32 %v650_v7, %v1312_v2  ;;  %v719_v14 = vadd.f32 %v718_v5, %v688_v46  ;;  %1061 = vst [vmem:[%s1278_s26 + $0x78] sm:$0xff] %v1030_v48   ;;  %v707_v5 = vmul.f32 %v1342_v45, %v1342_v45  ;;  %v708_v48 = vmul.f32 %v573_v10, %v573_v10 }
  0xed   : > { %v652_v15 = vadd.f32 %v651_v13, %v1324_v8  ;;  %v720_v16 = vadd.f32 %v719_v14, %v689_v11  ;;  %v695_v8 = vmul.f32 %v1300_v58, %v1300_v58 }
  0xef   : > { %v653_v18 = vadd.f32 %v652_v15, %v531_v25  ;;  %v721_v60 = vadd.f32 %v720_v16, %v690_v54 }
  0xf1   : > { %v722_v20 = vadd.f32 %v721_v60, %v691_v19  ;;  %v654_v22 = vadd.f32 %v653_v18, %v533_v40  ;;  %v699_v40 = vmul.f32 %v551_v37, %v551_v37 }
  0xf3   : > { %v655_v26 = vadd.f32 %v654_v22, %v1271_v17  ;;  %v723_v2 = vadd.f32 %v722_v20, %v692_v23  ;;  %v697_v17 = vmul.f32 %v1322_v6, %v1322_v6 }
  0xf5   : > { %v656_v29 = vadd.f32 %v655_v26, %v1288_v52  ;;  %v724_v30 = vadd.f32 %v723_v2, %v693_v24 }
  0xf7   : > { %v657_v25 = vadd.f32 %v656_v29, %v1300_v58  ;;  %v725_v31 = vadd.f32 %v724_v30, %v694_v27 }
  0xf9   : > { %v726_v33 = vadd.f32 %v725_v31, %v695_v8  ;;  %v658_v34 = vadd.f32 %v657_v25, %v1310_v0  ;;  %v701_v0 = vmul.f32 %v1284_v51, %v1284_v51 }
  0xfb   : > { %v659_v35 = vadd.f32 %v658_v34, %v1322_v6  ;;  %v727_v36 = vadd.f32 %v726_v33, %v696_v32  ;;  %v702_v6 = vmul.f32 %v1294_v56, %v1294_v56 }
  0xfd   : > { %v660_v52 = vadd.f32 %v659_v35, %v1332_v21  ;;  %v728_v38 = vadd.f32 %v727_v36, %v697_v17  ;;  %v703_v21 = vmul.f32 %v1306_v63, %v1306_v63 }
  0xff   : > { %v729_v58 = vadd.f32 %v728_v38, %v698_v9  ;;  %v661_v39 = vadd.f32 %v660_v52, %v551_v37 }
 0x101   : > { %v730_v41 = vadd.f32 %v729_v58, %v699_v40  ;;  %v662_v42 = vadd.f32 %v661_v39, %v553_v1 }
 0x103   : > { %v663_v44 = vadd.f32 %v662_v42, %v1284_v51  ;;  %v731_v47 = vadd.f32 %v730_v41, %v700_v43 }
 0x105   : > { %v664_v49 = vadd.f32 %v663_v44, %v1294_v56  ;;  %v732_v50 = vadd.f32 %v731_v47, %v701_v0 }
 0x107   : > { %v665_v37 = vadd.f32 %v664_v49, %v1306_v63  ;;  %v733_v53 = vadd.f32 %v732_v50, %v702_v6  ;;  %v706_v63 = vmul.f32 %v1336_v28, %v1336_v28 }
 0x109   : > { %v734_v57 = vadd.f32 %v733_v53, %v703_v21  ;;  %v666_v51 = vadd.f32 %v665_v37, %v1316_v4 }
 0x10b   : > { %v667_v61 = vadd.f32 %v666_v51, %v1328_v12  ;;  %v735_v56 = vadd.f32 %v734_v57, %v704_v55 }
 0x10d   : > { %v668_v62 = vadd.f32 %v667_v61, %v1336_v28  ;;  %v736_v1 = vadd.f32 %v735_v56, %v705_v59 }
 0x10f   : > { %v737_v3 = vadd.f32 %v736_v1, %v706_v63  ;;  %v669_v46 = vadd.f32 %v668_v62, %v1342_v45 }
 0x111   : > { %v738_v4 = vadd.f32 %v737_v3, %v707_v5  ;;  %v670_v7 = vadd.f32 %v669_v46, %v573_v10 }
 0x113   : > { %v671_v11 = vrot.slane %v670_v7, 4  ;;  %v739_v13 = vadd.f32 %v738_v4, %v708_v48 }
 0x115   : > { %v672_v12 = vadd.f32 %v671_v11, %v670_v7  ;;  %v740_v14 = vrot.slane %v739_v13, 4 }
 0x117   : > { %v673_v54 = vrot.slane %v672_v12, 2  ;;  %v741_v15 = vadd.f32 %v740_v14, %v739_v13 }
 0x119   : > { %v674_v16 = vadd.f32 %v673_v54, %v672_v12  ;;  %v742_v28 = vrot.slane %v741_v15, 2 }
 0x11b   : > { %v675_v18 = vrot.slane %v674_v16, 1  ;;  %v743_v19 = vadd.f32 %v742_v28, %v741_v15 }
 0x11d   : > { %v744_v60 = vrot.slane %v743_v19, 1  ;;  %v676_v45 = vadd.f32 %v675_v18, %v674_v16 }
 0x11f   : > { %v745_v10 = vadd.f32 %v744_v60, %v743_v19 }
 0x121   : > { %v747_v20 = vsel %vm746_vm0, %v676_v45, %v745_v10 }
 0x122   : > { %748 = vst [vmem:[%s238_s28] sm:$0x3] %v747_v20 }
 0x123 PF: > { %s16_s18 = sadd.s32 1, %s1102_s18  }
 0x124   : > { %p13_p5 = scmp.ge.s32.totalorder %s16_s18, 4  }
 0x126   :  { %15 = sbr.rel (!%p13_p5) target bundleno = 1 (0x1), region = 78 }

// kernel: bottleneck_forward_nhwc.7
= control target key start
LH: loop header
LB: loop body
LE: loop exit
PB: predicated region body
PF: predicated region fallthrough
CT: control target
= control target key end

     0   :  { %9 = vsyncpa [#allocation3], 0  ;;  %s1058_s0 = inlined_call_operand.vmem [shape: bf16[512,128], index: 0, kind: input, shape index: {}]   ;;  %s1059_s1 = inlined_call_operand.vmem [shape: f32[512,128], index: 1, kind: input, shape index: {}]   ;;  %s1060_s2 = inlined_call_operand.vmem [shape: f32[1,128], index: 2, kind: input, shape index: {}]   ;;  %s1061_s3 = inlined_call_operand.vmem [shape: f32[1,128], index: 3, kind: input, shape index: {}]   ;;  %s1062_s4 = inlined_call_operand.hbm [shape: f32[512,128], index: 4, kind: output, shape index: {}]  }
   0x1   :  { %11 = vsyncpa [#allocation3 + $0x1], 0  ;;  %s803_s15 = smov 0   ;;  %s805_s16 = smov 0  }
   0x2   :  { %s807_s17 = smov 0   ;;  %s809_s18 = smov 0  }
   0x3 LB: > { %s824_s19 = sadd.s32 4294967295, %s774_s18   ;;  %s575_s20 = sadd.s32 4294967294, %s774_s18   ;;  %s774_s18 = sphi %s809_s18, %s1068_s18   ;;  %s770_s17 = sphi %s807_s17, %s1067_s17   ;;  %s766_s16 = sphi %s805_s16, %s1066_s16   ;;  %s762_s15 = sphi %s803_s15, %s1065_s15  }
   0x4   : > { %s828_s21 = sadd.s32 1, %s774_s18   ;;  %s118_s22 = sadd.s32 1, %s770_s17 }
   0x5   : > { %s115_s23 = ssub.s32 %s774_s18, %s828_s21  ;;  %p128_p0 = scmp.ne.s32.totalorder %s770_s17, %s766_s16 }
   0x6   : > { %p116_p1 = scmp.eq.s32.totalorder %s115_s23, 0  ;;  %p129_p2 = scmp.eq.s32.totalorder %s824_s19, 1 }
   0x7   : > { %p134_p3 = scmp.ne.s32.totalorder %s766_s16, %s762_s15  ;;  %p135_p4 = scmp.eq.s32.totalorder %s575_s20, 1 }
   0x8   : > { %s839_s24 = scalar_select %p116_p1, %s770_s17, %s118_s22  }
   0x9   : > { %p841_p5 = por %p129_p2, %p128_p0  ;;  %p845_p6 = por %p135_p4, %p134_p3 }
   0xa   : > { %p578_p7 = scmp.ge.s32.totalorder %s774_s18, 1  ;;  %p177_p8 = scmp.lt.s32.totalorder %s774_s18, 3 }
   0xc   : > { %p178_p9 = pnand %p578_p7, %p177_p8 }
   0xd   : > { %s580_s27 = sshll.u32 (!%p178_p9), %s824_s19, 5  ;;  %s205_s14 = sand.u32 (!%p178_p9), 1, %s766_s16  }
   0xe   : > { %181 = sbr.rel (%p178_p9) target bundleno = 73 (0x49), region = 36  ;;  %p209_p10 = scmp.lt.s32.totalorder (!%p178_p9), %s580_s27, 63 }
   0xf   : > { %s885_s20 = sshll.u32 (!%p178_p9), %s205_s14, 8  ;;  %s589_s23 = sshll.u32 (!%p178_p9), %s824_s19, 8 }
  0x10   : > { %s909_s22 = scalar_lea.vmem (!%p178_p9), [#allocation2], %s885_s20  ;;  %s486_s5 = scalar_lea.sflag (!%p178_p9), [#allocation3], %s205_s14 }
  0x11   : > { %s732_s10 = scalar_lea.hbm (!%p178_p9), %s1062_s4, 512 }
  0x13   : > { %s1070_s27 = smov (!%p209_p10, %s580_s27), 63  ;;  %v860_v0 = vld [vmem:[%s1060_s2] ss:$0 sm:$0xff] }
  0x14   : > { %s581_s28 = sshll.u32 %s1070_s27, 2  ;;  %s583_s29 = sshll.u32 %s1070_s27, 3  ;;  %v871_v3 = vld [vmem:[%s1061_s3] ss:$0 sm:$0xff] }
  0x15   : > { %s855_s6 = scalar_lea.vmem %s1058_s0, %s581_s28  ;;  %s866_s11 = scalar_lea.vmem %s1059_s1, %s583_s29 }
  0x16   : > { %v591_v1 = vld [vmem:[%s855_s6] sm:$0xff]   ;;  %v654_v5 = vld [vmem:[%s855_s6 + $0x8] sm:$0xff]   ;;  %v655_v8 = vld [vmem:[%s855_s6 + $0x10] sm:$0xff]   ;;  %s497_s28 = scalar_lea.hbm %s1062_s4, %s589_s23  ;;  %s498_s29 = sshll.u32 %s909_s22, 4  ;;  %s499_s29 = int_to_ptr.vmem [resolvable:$true] %s498_s29 }
  0x17   : > { %v592_v2 = vunpack.c.l.bf16 %v591_v1  ;;  %v593_v4 = vunpack.c.h.bf16 %v591_v1  ;;  %v596_v6 = vunpack.c.l.bf16 %v654_v5  ;;  %v597_v7 = vunpack.c.h.bf16 %v654_v5  ;;  %v656_v13 = vld [vmem:[%s855_s6 + $0x18] sm:$0xff]   ;;  %v357_v14 = vld [vmem:[%s866_s11] sm:$0xff]  ;;  %v358_v15 = vld [vmem:[%s866_s11 + $0x8] sm:$0xff]  ;;  %s500_s30 = sshll.u32 %s497_s28, 4  ;;  %s501_s30 = int_to_ptr.hbm [resolvable:$true] %s500_s30 }
  0x18   : > { %v600_v11 = vunpack.c.l.bf16 %v655_v8  ;;  %v601_v12 = vunpack.c.h.bf16 %v655_v8  ;;  %v604_v18 = vunpack.c.l.bf16 %v656_v13  ;;  %v605_v19 = vunpack.c.h.bf16 %v656_v13  ;;  %v359_v22 = vld [vmem:[%s866_s11 + $0x10] sm:$0xff]  ;;  %v360_v23 = vld [vmem:[%s866_s11 + $0x18] sm:$0xff]  ;;  %v361_v28 = vld [vmem:[%s866_s11 + $0x20] sm:$0xff] }
  0x19   : > { %v289_v9 = vmul.f32 %v860_v0, %v592_v2  ;;  %v290_v10 = vmul.f32 %v860_v0, %v593_v4  ;;  %v291_v16 = vmul.f32 %v860_v0, %v596_v6  ;;  %v292_v17 = vmul.f32 %v860_v0, %v597_v7  ;;  %v362_v29 = vld [vmem:[%s866_s11 + $0x28] sm:$0xff]  ;;  %v363_v36 = vld [vmem:[%s866_s11 + $0x30] sm:$0xff]  ;;  %v364_v37 = vld [vmem:[%s866_s11 + $0x38] sm:$0xff] }
  0x1a   : > { %v293_v24 = vmul.f32 %v860_v0, %v600_v11  ;;  %v294_v25 = vmul.f32 %v860_v0, %v601_v12  ;;  %v295_v30 = vmul.f32 %v860_v0, %v604_v18  ;;  %v296_v31 = vmul.f32 %v860_v0, %v605_v19  ;;  %v657_v42 = vld [vmem:[%s855_s6 + $0x20] sm:$0xff]   ;;  %v658_v47 = vld [vmem:[%s855_s6 + $0x28] sm:$0xff]   ;;  %v659_v52 = vld [vmem:[%s855_s6 + $0x30] sm:$0xff]  }
  0x1b   : > { %v325_v20 = vadd.f32 %v871_v3, %v289_v9  ;;  %v326_v21 = vadd.f32 %v871_v3, %v290_v10  ;;  %v327_v26 = vadd.f32 %v871_v3, %v291_v16  ;;  %v328_v27 = vadd.f32 %v871_v3, %v292_v17  ;;  %v660_v57 = vld [vmem:[%s855_s6 + $0x38] sm:$0xff]   ;;  %v365_v4 = vld [vmem:[%s866_s11 + $0x40] sm:$0xff]  ;;  %v366_v5 = vld [vmem:[%s866_s11 + $0x48] sm:$0xff] }
  0x1c   : > { %v329_v34 = vadd.f32 %v871_v3, %v293_v24  ;;  %v330_v35 = vadd.f32 %v871_v3, %v294_v25  ;;  %v331_v40 = vadd.f32 %v871_v3, %v295_v30  ;;  %v332_v41 = vadd.f32 %v871_v3, %v296_v31  ;;  %v367_v12 = vld [vmem:[%s866_s11 + $0x50] sm:$0xff]  ;;  %v368_v13 = vld [vmem:[%s866_s11 + $0x58] sm:$0xff]  ;;  %v369_v18 = vld [vmem:[%s866_s11 + $0x60] sm:$0xff] }
  0x1d   : > { %v389_v32 = vadd.f32 %v357_v14, %v325_v20  ;;  %v390_v33 = vadd.f32 %v358_v15, %v326_v21  ;;  %v391_v38 = vadd.f32 %v359_v22, %v327_v26  ;;  %v392_v39 = vadd.f32 %v360_v23, %v328_v27  ;;  %v370_v19 = vld [vmem:[%s866_s11 + $0x68] sm:$0xff]  ;;  %v371_v26 = vld [vmem:[%s866_s11 + $0x70] sm:$0xff]  ;;  %v372_v27 = vld [vmem:[%s866_s11 + $0x78] sm:$0xff] }
  0x1e   : > { %v393_v45 = vadd.f32 %v361_v28, %v329_v34  ;;  %v394_v46 = vadd.f32 %v362_v29, %v330_v35  ;;  %v395_v50 = vadd.f32 %v363_v36, %v331_v40  ;;  %v396_v51 = vadd.f32 %v364_v37, %v332_v41  ;;  %v662_v37 = vld [vmem:[%s855_s6 + $0x48] sm:$0xff]  }
  0x1f   : > { %v421_v43 = vmax.f32 %v389_v32, 0.0  ;;  %v422_v44 = vmax.f32 %v390_v33, 0.0  ;;  %v423_v48 = vmax.f32 %v391_v38, 0.0  ;;  %v424_v49 = vmax.f32 %v392_v39, 0.0  ;;  %v661_v32 = vld [vmem:[%s855_s6 + $0x40] sm:$0xff]  }
  0x20   : > { %v425_v53 = vmax.f32 %v393_v45, 0.0  ;;  %v426_v54 = vmax.f32 %v394_v46, 0.0  ;;  %v608_v55 = vunpack.c.l.bf16 %v657_v42  ;;  %v609_v56 = vunpack.c.h.bf16 %v657_v42  ;;  %v663_v42 = vld [vmem:[%s855_s6 + $0x50] sm:$0xff]  }
  0x21   : > { %453 = vst [vmem:[%s909_s22] sm:$0xff] %v421_v43  ;;  %v427_v58 = vmax.f32 %v395_v50, 0.0  ;;  %v428_v59 = vmax.f32 %v396_v51, 0.0  ;;  %v612_v60 = vunpack.c.l.bf16 %v658_v47  ;;  %v613_v61 = vunpack.c.h.bf16 %v658_v47  ;;  %v664_v47 = vld [vmem:[%s855_s6 + $0x58] sm:$0xff]  }
  0x22   : > { %454 = vst [vmem:[%s909_s22 + $0x8] sm:$0xff] %v422_v44  ;;  %v297_v62 = vmul.f32 %v860_v0, %v608_v55  ;;  %v298_v63 = vmul.f32 %v860_v0, %v609_v56  ;;  %v616_v1 = vunpack.c.l.bf16 %v659_v52  ;;  %v617_v2 = vunpack.c.h.bf16 %v659_v52  ;;  %v373_v56 = vld [vmem:[%s866_s11 + $0x80] sm:$0xff] }
  0x23   : > { %455 = vst [vmem:[%s909_s22 + $0x10] sm:$0xff] %v423_v48  ;;  %v299_v6 = vmul.f32 %v860_v0, %v612_v60  ;;  %v300_v7 = vmul.f32 %v860_v0, %v613_v61  ;;  %v620_v8 = vunpack.c.l.bf16 %v660_v57  ;;  %v621_v9 = vunpack.c.h.bf16 %v660_v57  ;;  %v374_v57 = vld [vmem:[%s866_s11 + $0x88] sm:$0xff] }
  0x24   : > { %456 = vst [vmem:[%s909_s22 + $0x18] sm:$0xff] %v424_v49  ;;  %v333_v10 = vadd.f32 %v871_v3, %v297_v62  ;;  %v334_v11 = vadd.f32 %v871_v3, %v298_v63  ;;  %v301_v14 = vmul.f32 %v860_v0, %v616_v1  ;;  %v302_v15 = vmul.f32 %v860_v0, %v617_v2  ;;  %v375_v1 = vld [vmem:[%s866_s11 + $0x90] sm:$0xff]  ;;  %v376_v2 = vld [vmem:[%s866_s11 + $0x98] sm:$0xff] }
  0x25   : > { %457 = vst [vmem:[%s909_s22 + $0x20] sm:$0xff] %v425_v53  ;;  %v335_v16 = vadd.f32 %v871_v3, %v299_v6  ;;  %v336_v17 = vadd.f32 %v871_v3, %v300_v7  ;;  %v303_v20 = vmul.f32 %v860_v0, %v620_v8  ;;  %v304_v21 = vmul.f32 %v860_v0, %v621_v9  ;;  %v377_v8 = vld [vmem:[%s866_s11 + $0xa0] sm:$0xff]  ;;  %v378_v9 = vld [vmem:[%s866_s11 + $0xa8] sm:$0xff] }
  0x26   : > { %458 = vst [vmem:[%s909_s22 + $0x28] sm:$0xff] %v426_v54  ;;  %v397_v22 = vadd.f32 %v365_v4, %v333_v10  ;;  %v398_v23 = vadd.f32 %v366_v5, %v334_v11  ;;  %v337_v24 = vadd.f32 %v871_v3, %v301_v14  ;;  %v338_v25 = vadd.f32 %v871_v3, %v302_v15 }
  0x27   : > { %459 = vst [vmem:[%s909_s22 + $0x30] sm:$0xff] %v427_v58  ;;  %v399_v28 = vadd.f32 %v367_v12, %v335_v16  ;;  %v400_v29 = vadd.f32 %v368_v13, %v336_v17  ;;  %v339_v30 = vadd.f32 %v871_v3, %v303_v20  ;;  %v340_v31 = vadd.f32 %v871_v3, %v304_v21  ;;  %v379_v16 = vld [vmem:[%s866_s11 + $0xb0] sm:$0xff]  ;;  %v380_v17 = vld [vmem:[%s866_s11 + $0xb8] sm:$0xff] }
  0x28   : > { %460 = vst [vmem:[%s909_s22 + $0x38] sm:$0xff] %v428_v59  ;;  %v429_v33 = vmax.f32 %v397_v22, 0.0  ;;  %v430_v34 = vmax.f32 %v398_v23, 0.0  ;;  %v401_v35 = vadd.f32 %v369_v18, %v337_v24  ;;  %v402_v36 = vadd.f32 %v370_v19, %v338_v25  ;;  %v665_v22 = vld [vmem:[%s855_s6 + $0x60] sm:$0xff]  }
  0x29   : > { %v431_v38 = vmax.f32 %v399_v28, 0.0  ;;  %v432_v39 = vmax.f32 %v400_v29, 0.0  ;;  %v403_v40 = vadd.f32 %v371_v26, %v339_v30  ;;  %v404_v41 = vadd.f32 %v372_v27, %v340_v31  ;;  %v666_v27 = vld [vmem:[%s855_s6 + $0x68] sm:$0xff]  }
  0x2a   : > { %461 = vst [vmem:[%s909_s22 + $0x40] sm:$0xff] %v429_v33  ;;  %v433_v43 = vmax.f32 %v401_v35, 0.0  ;;  %v434_v44 = vmax.f32 %v402_v36, 0.0  ;;  %v624_v45 = vunpack.c.l.bf16 %v661_v32  ;;  %v625_v46 = vunpack.c.h.bf16 %v661_v32  ;;  %v667_v32 = vld [vmem:[%s855_s6 + $0x70] sm:$0xff]  }
  0x2b   : > { %462 = vst [vmem:[%s909_s22 + $0x48] sm:$0xff] %v430_v34  ;;  %v435_v48 = vmax.f32 %v403_v40, 0.0  ;;  %v436_v49 = vmax.f32 %v404_v41, 0.0  ;;  %v628_v50 = vunpack.c.l.bf16 %v662_v37  ;;  %v629_v51 = vunpack.c.h.bf16 %v662_v37  ;;  %v668_v37 = vld [vmem:[%s855_s6 + $0x78] sm:$0xff]   ;;  %s726_s6 = sshra.s32 %s501_s30, 4  ;;  %s727_s6 = int_to_ptr.hbm [resolvable:$true] %s726_s6 }
  0x2c   : > { %463 = vst [vmem:[%s909_s22 + $0x50] sm:$0xff] %v431_v38  ;;  %v305_v52 = vmul.f32 %v860_v0, %v624_v45  ;;  %v306_v53 = vmul.f32 %v860_v0, %v625_v46  ;;  %v632_v54 = vunpack.c.l.bf16 %v663_v42  ;;  %v633_v55 = vunpack.c.h.bf16 %v663_v42  ;;  %v381_v46 = vld [vmem:[%s866_s11 + $0xc0] sm:$0xff]  ;;  %s728_s7 = scalar_lea.hbm %s727_s6, 256  ;;  %p733_p0 = scmp.lt.s32.totalorder %s727_s6, %s1062_s4 }
  0x2d   : > { %464 = vst [vmem:[%s909_s22 + $0x58] sm:$0xff] %v432_v39  ;;  %v307_v58 = vmul.f32 %v860_v0, %v628_v50  ;;  %v308_v59 = vmul.f32 %v860_v0, %v629_v51  ;;  %v636_v60 = vunpack.c.l.bf16 %v664_v47  ;;  %v637_v61 = vunpack.c.h.bf16 %v664_v47  ;;  %v382_v47 = vld [vmem:[%s866_s11 + $0xc8] sm:$0xff]  ;;  %p729_p11 = scmp.ne.s32.totalorder %s727_s6, %s728_s7  ;;  %p734_p1 = scmp.lt.s32.totalorder %s732_s10, %s728_s7 }
  0x2e   : > { %465 = vst [vmem:[%s909_s22 + $0x60] sm:$0xff] %v433_v43  ;;  %v341_v62 = vadd.f32 %v871_v3, %v305_v52  ;;  %v342_v63 = vadd.f32 %v871_v3, %v306_v53  ;;  %v309_v4 = vmul.f32 %v860_v0, %v632_v54  ;;  %v310_v5 = vmul.f32 %v860_v0, %v633_v55  ;;  %v383_v54 = vld [vmem:[%s866_s11 + $0xd0] sm:$0xff]  ;;  %v384_v55 = vld [vmem:[%s866_s11 + $0xd8] sm:$0xff] }
  0x2f   : > { %466 = vst [vmem:[%s909_s22 + $0x68] sm:$0xff] %v434_v44  ;;  %v343_v6 = vadd.f32 %v871_v3, %v307_v58  ;;  %v344_v7 = vadd.f32 %v871_v3, %v308_v59  ;;  %v311_v10 = vmul.f32 %v860_v0, %v636_v60  ;;  %v312_v11 = vmul.f32 %v860_v0, %v637_v61  ;;  %v385_v60 = vld [vmem:[%s866_s11 + $0xe0] sm:$0xff]  ;;  %v386_v61 = vld [vmem:[%s866_s11 + $0xe8] sm:$0xff]  ;;  %p730_p12 = pnand %p729_p11, %p841_p5  ;;  %p735_p2 = por %p734_p1, %p733_p0 }
  0x30   : > { %467 = vst [vmem:[%s909_s22 + $0x70] sm:$0xff] %v435_v48  ;;  %v405_v12 = vadd.f32 %v373_v56, %v341_v62  ;;  %v406_v13 = vadd.f32 %v374_v57, %v342_v63  ;;  %v345_v14 = vadd.f32 %v871_v3, %v309_v4  ;;  %v346_v15 = vadd.f32 %v871_v3, %v310_v5 }
  0x31   : > { %468 = vst [vmem:[%s909_s22 + $0x78] sm:$0xff] %v436_v49  ;;  %v407_v18 = vadd.f32 %v375_v1, %v343_v6  ;;  %v408_v19 = vadd.f32 %v376_v2, %v344_v7  ;;  %v347_v20 = vadd.f32 %v871_v3, %v311_v10  ;;  %v348_v21 = vadd.f32 %v871_v3, %v312_v11  ;;  %v387_v6 = vld [vmem:[%s866_s11 + $0xf0] sm:$0xff]  ;;  %v388_v7 = vld [vmem:[%s866_s11 + $0xf8] sm:$0xff]  ;;  %p731_p13 = pneg %p730_p12 }
  0x32   : > { %v437_v23 = vmax.f32 %v405_v12, 0.0  ;;  %v438_v24 = vmax.f32 %v406_v13, 0.0  ;;  %v409_v25 = vadd.f32 %v377_v8, %v345_v14  ;;  %v410_v26 = vadd.f32 %v378_v9, %v346_v15 }
  0x33   : > { %v439_v28 = vmax.f32 %v407_v18, 0.0  ;;  %v440_v29 = vmax.f32 %v408_v19, 0.0  ;;  %v411_v30 = vadd.f32 %v379_v16, %v347_v20  ;;  %v412_v31 = vadd.f32 %v380_v17, %v348_v21  ;;  %p736_p3 = pnand %p735_p2, %p731_p13 }
  0x34   : > { %469 = vst [vmem:[%s909_s22 + $0x80] sm:$0xff] %v437_v23  ;;  %v441_v33 = vmax.f32 %v409_v25, 0.0  ;;  %v442_v34 = vmax.f32 %v410_v26, 0.0  ;;  %v640_v35 = vunpack.c.l.bf16 %v665_v22  ;;  %v641_v36 = vunpack.c.h.bf16 %v665_v22 }
  0x35   : > { %470 = vst [vmem:[%s909_s22 + $0x88] sm:$0xff] %v438_v24  ;;  %v443_v38 = vmax.f32 %v411_v30, 0.0  ;;  %v444_v39 = vmax.f32 %v412_v31, 0.0  ;;  %v644_v40 = vunpack.c.l.bf16 %v666_v27  ;;  %v645_v41 = vunpack.c.h.bf16 %v666_v27 }
  0x36   : > { %471 = vst [vmem:[%s909_s22 + $0x90] sm:$0xff] %v439_v28  ;;  %v313_v42 = vmul.f32 %v860_v0, %v640_v35  ;;  %v314_v43 = vmul.f32 %v860_v0, %v641_v36  ;;  %v648_v44 = vunpack.c.l.bf16 %v667_v32  ;;  %v649_v45 = vunpack.c.h.bf16 %v667_v32 }
  0x37   : > { %472 = vst [vmem:[%s909_s22 + $0x98] sm:$0xff] %v440_v29  ;;  %v315_v48 = vmul.f32 %v860_v0, %v644_v40  ;;  %v316_v49 = vmul.f32 %v860_v0, %v645_v41  ;;  %v652_v50 = vunpack.c.l.bf16 %v668_v37  ;;  %v653_v51 = vunpack.c.h.bf16 %v668_v37 }
  0x38   : > { %473 = vst [vmem:[%s909_s22 + $0xa0] sm:$0xff] %v441_v33  ;;  %v349_v52 = vadd.f32 %v871_v3, %v313_v42  ;;  %v350_v53 = vadd.f32 %v871_v3, %v314_v43  ;;  %v317_v56 = vmul.f32 %v860_v0, %v648_v44  ;;  %v318_v57 = vmul.f32 %v860_v0, %v649_v45 }
  0x39   : > { %474 = vst [vmem:[%s909_s22 + $0xa8] sm:$0xff] %v442_v34  ;;  %v351_v58 = vadd.f32 %v871_v3, %v315_v48  ;;  %v352_v59 = vadd.f32 %v871_v3, %v316_v49  ;;  %v319_v62 = vmul.f32 %v860_v0, %v652_v50  ;;  %v320_v63 = vmul.f32 %v860_v0, %v653_v51 }
  0x3a   : > { %475 = vst [vmem:[%s909_s22 + $0xb0] sm:$0xff] %v443_v38  ;;  %v413_v1 = vadd.f32 %v381_v46, %v349_v52  ;;  %v414_v2 = vadd.f32 %v382_v47, %v350_v53  ;;  %v353_v4 = vadd.f32 %v871_v3, %v317_v56  ;;  %v354_v5 = vadd.f32 %v871_v3, %v318_v57 }
  0x3b   : > { %476 = vst [vmem:[%s909_s22 + $0xb8] sm:$0xff] %v444_v39  ;;  %v415_v8 = vadd.f32 %v383_v54, %v351_v58  ;;  %v416_v9 = vadd.f32 %v384_v55, %v352_v59  ;;  %v355_v10 = vadd.f32 %v871_v3, %v319_v62  ;;  %v356_v0 = vadd.f32 %v871_v3, %v320_v63 }
  0x3c   : > { %v445_v11 = vmax.f32 %v413_v1, 0.0  ;;  %v446_v12 = vmax.f32 %v414_v2, 0.0  ;;  %v417_v13 = vadd.f32 %v385_v60, %v353_v4  ;;  %v418_v14 = vadd.f32 %v386_v61, %v354_v5 }
  0x3d   : > { %v447_v15 = vmax.f32 %v415_v8, 0.0  ;;  %v448_v16 = vmax.f32 %v416_v9, 0.0  ;;  %v419_v17 = vadd.f32 %v387_v6, %v355_v10  ;;  %v420_v18 = vadd.f32 %v388_v7, %v356_v0 }
  0x3e   : > { %477 = vst [vmem:[%s909_s22 + $0xc0] sm:$0xff] %v445_v11  ;;  %v449_v3 = vmax.f32 %v417_v13, 0.0  ;;  %v450_v19 = vmax.f32 %v418_v14, 0.0 }
  0x3f   : > { %478 = vst [vmem:[%s909_s22 + $0xc8] sm:$0xff] %v446_v12  ;;  %v451_v20 = vmax.f32 %v419_v17, 0.0  ;;  %v452_v21 = vmax.f32 %v420_v18, 0.0 }
  0x40   : > { %479 = vst [vmem:[%s909_s22 + $0xd0] sm:$0xff] %v447_v15 }
  0x41   : > { %480 = vst [vmem:[%s909_s22 + $0xd8] sm:$0xff] %v448_v16 }
  0x42   : > { %481 = vst [vmem:[%s909_s22 + $0xe0] sm:$0xff] %v449_v3 }
  0x43   : > { %482 = vst [vmem:[%s909_s22 + $0xe8] sm:$0xff] %v450_v19 }
  0x44   : > { %483 = vst [vmem:[%s909_s22 + $0xf0] sm:$0xff] %v451_v20 }
  0x45   : > { %484 = vst [vmem:[%s909_s22 + $0xf8] sm:$0xff] %v452_v21 }
  0x46   : > { %739 = shalt.err (!%p736_p3)
}
  0x47   : > { %s776_s13 = smov 128   ;;  %s777_s14 = smov 8  }
  0x48   : > { %669 = dma.vmem_to_hbm [thread:$0]  (%p841_p5), %s499_s29, 4096, %s501_s30, %s486_s5, %s776_s13, %s776_s13, %s777_s14  }
  0x49 PF: > { %p675_p4 = scmp.ge.s32.totalorder %s774_s18, 2  ;;  %s515_s20 = sand.u32 1, %s762_s15  }
  0x4a   : > { %s516_s22 = scalar_lea.sflag [#allocation3], %s515_s20 }
  0x4b   : > { %p672_p7 = pnand %p675_p4, %p845_p6 }
  0x4d   : > { %p673_p8 = pneg %p672_p7 }
  0x4f   : > { %757 = dma.done.wait (%p673_p8), %s516_s22, 4096  }
  0x50   : > { %759 = vsyncadd (%p673_p8), %s516_s22, 4294963200  ;;  %p14_p9 = scmp.ge.s32.totalorder %s828_s21, 4   ;;  %s1065_s15 = smov %s766_s16 }
  0x51   : > { %s1066_s16 = smov %s770_s17  ;;  %s1067_s17 = smov %s839_s24 }
  0x52   : > { %s1068_s18 = smov %s828_s21  ;;  %16 = sbr.rel (!%p14_p9) target bundleno = 3 (0x3), region = 74 }
  0x57   :  { %522 = vsyncpa [#allocation3], 1 }
  0x58   :  { %524 = vsyncpa [#allocation3 + $0x1], 1 }

// kernel: bottleneck_forward_nhwc.5
= control target key start
LH: loop header
LB: loop body
LE: loop exit
PB: predicated region body
PF: predicated region fallthrough
CT: control target
= control target key end

     0   :  { %s5406_s18 = smov 0   ;;  %s6541_s0 = inlined_call_operand.vmem [shape: bf16[2,256,128], index: 0, kind: input, shape index: {}]   ;;  %s6542_s1 = inlined_call_operand.vmem [shape: f32[1,128], index: 1, kind: input, shape index: {}]   ;;  %s6543_s2 = inlined_call_operand.vmem [shape: f32[1,128], index: 2, kind: input, shape index: {}]   ;;  %s6544_s3 = inlined_call_operand.vmem [shape: bf16[3,384,128], index: 3, kind: input, shape index: {}]   ;;  %s6545_s4 = inlined_call_operand.vmem [shape: bf16[2,256,128], index: 4, kind: output, shape index: {0}]   ;;  %s6546_s5 = inlined_call_operand.vmem [shape: f32[2,2,128], index: 5, kind: output, shape index: {1}]  }
   0x1 LB: > { %s4206_s19 = sadd.s32 4294967295, %s5372_s18   ;;  %p4210_p0 = scmp.ge.s32.totalorder %s5372_s18, 1  ;;  %s5372_s18 = sphi %s5406_s18, %s16_s18  }
   0x2   : > { %p190_p1 = scmp.lt.s32.totalorder %s5372_s18, 3 }
   0x4   : > { %p191_p2 = pnand %p4210_p0, %p190_p1 }
   0x6   : > { %194 = sbr.rel (%p191_p2) target bundleno = 771 (0x303), region = 36 }
   0xb   : > { %v4979_v0 = vld [vmem:[%s6544_s3 + $0xf8] sm:$0xff]  ;;  %p222_p3 = scmp.lt.s32.totalorder %s4206_s19, 1  ;;  %v6547_v1 = vmov 0   ;;  %v4978_v2 = vld [vmem:[%s6544_s3 + $0xf0] sm:$0xff]  ;;  %v4977_v3 = vld [vmem:[%s6544_s3 + $0xe8] sm:$0xff]  ;;  %vm5375_vm0 = vmmov 1  }
   0xc   : > { %1477 = vst [vmem:[#allocation2 + $0xa0] sm:$0xf] %v6547_v1  ;;  %2618 = vmatpush.bf16.msra.mxu0 %v4979_v0  ;;  %5310 = vmatpush.bf16.msra.mxu1 %v4979_v0  ;;  %v5441_v4 = vld [vmem:[%s6542_s1] ss:$0 sm:$0xff]  ;;  %v4975_v34 = vld [vmem:[%s6544_s3 + $0xd8] sm:$0xff]  ;;  %v4974_v48 = vld [vmem:[%s6544_s3 + $0xd0] sm:$0xff] }
   0xd   : > { %1478 = vst [vmem:[#allocation2 + $0xa4] sm:$0xf] %v6547_v1  ;;  %s6591_s19 = smov (!%p222_p3, %s4206_s19), 1  ;;  %5311 = vmatpush.bf16.msra.mxu2 %v4979_v0  ;;  %5312 = vmatpush.bf16.msra.mxu3 %v4979_v0  ;;  %v5451_v10 = vld [vmem:[%s6543_s2] ss:$0 sm:$0xff]  ;;  %vm1085_vm1 = vmpackc.low %vm5375_vm0, %vm5375_vm0  ;;  %vm936_vm4 = vcmask 1040384  }
   0xe   : > { %1324 = vst [vmem:[#allocation2] sm:$0xf] %v6547_v1  ;;  %s4906_s24 = sshll.u32 %s6591_s19, 7  ;;  %v4976_v20 = vld [vmem:[%s6544_s3 + $0xe0] sm:$0xff] }
   0xf   : > { %1325 = vst [vmem:[#allocation2 + $0x4] sm:$0xf] %v6547_v1  ;;  %s5436_s29 = scalar_lea.vmem %s6541_s0, %s4906_s24  ;;  %s6452_s30 = scalar_lea.vmem %s6545_s4, %s4906_s24 }
  0x10   : > { %1326 = vst [vmem:[#allocation2 + $0x8] sm:$0xf] %v6547_v1  ;;  %2619 = vmatpush.bf16.msra.mxu0 %v4978_v2  ;;  %5313 = vmatpush.bf16.msra.mxu1 %v4978_v2  ;;  %v5265_v5 = vld [vmem:[%s5436_s29 + $0x10] sm:$0xff]   ;;  %v5266_v15 = vld [vmem:[%s5436_s29 + $0x18] sm:$0xff]   ;;  %s4215_s24 = sshll.u32 %s6591_s19, 1 }
  0x11   : > { %1327 = vst [vmem:[#allocation2 + $0xc] sm:$0xf] %v6547_v1  ;;  %v5269_v6 = vld [vmem:[%s5436_s29 + $0x30] sm:$0xff]   ;;  %5314 = vmatpush.bf16.msra.mxu2 %v4978_v2  ;;  %5315 = vmatpush.bf16.msra.mxu3 %v4978_v2  ;;  %v5050_v8 = vunpack.c.l.bf16 %v5265_v5  ;;  %v5051_v9 = vunpack.c.h.bf16 %v5265_v5  ;;  %v5054_v23 = vunpack.c.l.bf16 %v5266_v15  ;;  %v5055_v24 = vunpack.c.h.bf16 %v5266_v15  ;;  %v5270_v44 = vld [vmem:[%s5436_s29 + $0x38] sm:$0xff]   ;;  %v5041_v2 = vld [vmem:[%s5436_s29] sm:$0xff]   ;;  %s235_s8 = scalar_lea.vmem %s6546_s5, %s4215_s24 }
  0x12   : > { %v5273_v7 = vld [vmem:[%s5436_s29 + $0x50] sm:$0xff]   ;;  %1328 = vst [vmem:[#allocation2 + $0x90] sm:$0xf] %v6547_v1  ;;  %v5066_v11 = vunpack.c.l.bf16 %v5269_v6  ;;  %v5067_v12 = vunpack.c.h.bf16 %v5269_v6  ;;  %v5274_v47 = vld [vmem:[%s5436_s29 + $0x58] sm:$0xff]   ;;  %v5070_v56 = vunpack.c.l.bf16 %v5270_v44  ;;  %v5071_v59 = vunpack.c.h.bf16 %v5270_v44 }
  0x13   : > { %1329 = vst [vmem:[#allocation2 + $0x94] sm:$0xf] %v6547_v1  ;;  %v5082_v13 = vunpack.c.l.bf16 %v5273_v7  ;;  %v5083_v14 = vunpack.c.h.bf16 %v5273_v7  ;;  %v311_v16 = vmul.f32 %v5441_v4, %v5050_v8  ;;  %v312_v17 = vmul.f32 %v5441_v4, %v5051_v9 }
  0x14   : > { %1330 = vst [vmem:[#allocation2 + $0x98] sm:$0xf] %v6547_v1  ;;  %v319_v18 = vmul.f32 %v5441_v4, %v5066_v11  ;;  %v320_v19 = vmul.f32 %v5441_v4, %v5067_v12  ;;  %2620 = vmatpush.bf16.msra.mxu0 %v4977_v3  ;;  %5316 = vmatpush.bf16.msra.mxu1 %v4977_v3  ;;  %v5086_v60 = vunpack.c.l.bf16 %v5274_v47  ;;  %v5087_v11 = vunpack.c.h.bf16 %v5274_v47 }
  0x15   : > { %1331 = vst [vmem:[#allocation2 + $0x9c] sm:$0xf] %v6547_v1  ;;  %v327_v21 = vmul.f32 %v5441_v4, %v5082_v13  ;;  %v328_v22 = vmul.f32 %v5441_v4, %v5083_v14  ;;  %5317 = vmatpush.bf16.msra.mxu2 %v4977_v3  ;;  %5318 = vmatpush.bf16.msra.mxu3 %v4977_v3  ;;  %v4973_v3 = vld [vmem:[%s6544_s3 + $0xc8] sm:$0xff]  ;;  %v5267_v13 = vld [vmem:[%s5436_s29 + $0x20] sm:$0xff]  }
  0x16   : > { %1479 = vst [vmem:[#allocation2 + $0xa8] sm:$0xf] %v6547_v1  ;;  %v347_v25 = vadd.f32 %v5451_v10, %v311_v16  ;;  %v348_v26 = vadd.f32 %v5451_v10, %v312_v17  ;;  %v355_v27 = vadd.f32 %v5451_v10, %v319_v18  ;;  %v356_v28 = vadd.f32 %v5451_v10, %v320_v19 }
  0x17   : > { %1480 = vst [vmem:[#allocation2 + $0xac] sm:$0xf] %v6547_v1  ;;  %v363_v29 = vadd.f32 %v5451_v10, %v327_v21  ;;  %v364_v30 = vadd.f32 %v5451_v10, %v328_v22  ;;  %v313_v31 = vmul.f32 %v5441_v4, %v5054_v23  ;;  %v314_v38 = vmul.f32 %v5441_v4, %v5055_v24  ;;  %v5541_v21 = vld [vmem:[%s5436_s29 + $0x40] sm:$0xff]  }
  0x18   : > { %1481 = vst [vmem:[#allocation2 + $0x130] sm:$0xf] %v6547_v1  ;;  %v5476_v32 = vmax.f32 %v347_v25, 0.0  ;;  %v5478_v33 = vmax.f32 %v348_v26, 0.0  ;;  %2621 = vmatpush.bf16.msra.mxu0 %v4976_v20  ;;  %5319 = vmatpush.bf16.msra.mxu1 %v4976_v20  ;;  %v5484_v35 = vmax.f32 %v355_v27, 0.0  ;;  %v5486_v36 = vmax.f32 %v356_v28, 0.0 }
  0x19   : > { %1482 = vst [vmem:[#allocation2 + $0x134] sm:$0xf] %v6547_v1  ;;  %v5488_v37 = vmax.f32 %v363_v29, 0.0  ;;  %5320 = vmatpush.bf16.msra.mxu2 %v4976_v20  ;;  %5321 = vmatpush.bf16.msra.mxu3 %v4976_v20  ;;  %v5492_v39 = vmax.f32 %v364_v30, 0.0  ;;  %v349_v40 = vadd.f32 %v5451_v10, %v313_v31  ;;  %v350_v52 = vadd.f32 %v5451_v10, %v314_v38  ;;  %v4972_v22 = vld [vmem:[%s6544_s3 + $0xc0] sm:$0xff]  ;;  %v4995_v31 = vld [vmem:[%s6544_s3 + $0x178] sm:$0xff] }
  0x1a   : > { %1483 = vst [vmem:[#allocation2 + $0x138] sm:$0xf] %v6547_v1  ;;  %v419_v41 = vpack.c.bf16 %v5484_v35, %v5484_v35  ;;  %v420_v42 = vpack.c.bf16 %v5486_v36, %v5486_v36  ;;  %v5117_v45 = vpack.c.bf16 %v5478_v33, %v5476_v32  ;;  %v5137_v53 = vpack.c.bf16 %v5486_v36, %v5484_v35 }
  0x1b   : > { %1484 = vst [vmem:[#allocation2 + $0x13c] sm:$0xf] %v6547_v1  ;;  %v427_v43 = vpack.c.bf16 %v5488_v37, %v5488_v37  ;;  %v428_v46 = vpack.c.bf16 %v5492_v39, %v5492_v39  ;;  %v381_v55 = vmax.f32 %v349_v40, 0.0  ;;  %v382_v58 = vmax.f32 %v350_v52, 0.0  ;;  %v4987_v40 = vld [vmem:[%s6544_s3 + $0x138] sm:$0xff] }
  0x1c   : > { %1905 = vst [vmem:[#allocation2 + $0x140] sm:$0xf] %v6547_v1  ;;  %2622 = vmatpush.bf16.msra.mxu0 %v4975_v34  ;;  %5322 = vmatpush.bf16.msra.mxu1 %v4975_v34  ;;  %v900_v49 = vunpack.c.l.b16 %v419_v41  ;;  %v901_v50 = vunpack.c.l.b16 %v420_v42  ;;  %v5157_v62 = vpack.c.bf16 %v5492_v39, %v5488_v37  ;;  %v321_v0 = vmul.f32 %v5441_v4, %v5070_v56  ;;  %v4952_v39 = vld [vmem:[#allocation2 + $0xa0] sm:$0xff]  ;;  %v4994_v56 = vld [vmem:[%s6544_s3 + $0x170] sm:$0xff] }
  0x1d   : > { %1906 = vst [vmem:[#allocation2 + $0x144] sm:$0xf] %v6547_v1  ;;  %v908_v51 = vunpack.c.l.b16 %v427_v43  ;;  %5323 = vmatpush.bf16.msra.mxu2 %v4975_v34  ;;  %5324 = vmatpush.bf16.msra.mxu3 %v4975_v34  ;;  %v909_v54 = vunpack.c.l.b16 %v428_v46  ;;  %v413_v63 = vpack.c.bf16 %v381_v55, %v381_v55  ;;  %v414_v5 = vpack.c.bf16 %v382_v58, %v382_v58  ;;  %v4935_v34 = vld [vmem:[%s6544_s3 + $0x38] sm:$0xff] }
  0x1e   : > { %1907 = vst [vmem:[#allocation2 + $0x148] sm:$0xf] %v6547_v1  ;;  %v5518_v57 = vpack.c.b16 %v901_v50, %v900_v49  ;;  %v5122_v6 = vpack.c.bf16 %v382_v58, %v381_v55  ;;  %v322_v7 = vmul.f32 %v5441_v4, %v5071_v59  ;;  %v357_v9 = vadd.f32 %v5451_v10, %v321_v0  ;;  %v5275_v50 = vld [vmem:[%s5436_s29 + $0x60] sm:$0xff]   ;;  %v4934_v0 = vld [vmem:[%s6544_s3 + $0x30] sm:$0xff] }
  0x1f   : > { %1908 = vst [vmem:[#allocation2 + $0x14c] sm:$0xf] %v6547_v1  ;;  %v5521_v61 = vpack.c.b16 %v909_v54, %v908_v51  ;;  %v894_v8 = vunpack.c.l.b16 %v413_v63  ;;  %v329_v12 = vmul.f32 %v5441_v4, %v5086_v60  ;;  %v895_v14 = vunpack.c.l.b16 %v414_v5 }
  0x20   : > { %1909 = vst [vmem:[#allocation2 + $0x1d0] sm:$0xf] %v6547_v1  ;;  %2623 = vmatpush.bf16.msra.mxu0 %v4974_v48  ;;  %5325 = vmatpush.bf16.msra.mxu1 %v4974_v48  ;;  %v358_v15 = vadd.f32 %v5451_v10, %v322_v7  ;;  %v5042_v16 = vunpack.c.l.bf16 %v5041_v2  ;;  %v5043_v17 = vunpack.c.h.bf16 %v5041_v2  ;;  %v389_v18 = vmax.f32 %v357_v9, 0.0 }
  0x21   : > { %6553 = vst [vmem:[#allocation3_spill] sm:$0xff] %v5521_v61  ;;  %5326 = vmatpush.bf16.msra.mxu2 %v4974_v48  ;;  %5327 = vmatpush.bf16.msra.mxu3 %v4974_v48  ;;  %v330_v19 = vmul.f32 %v5441_v4, %v5087_v11  ;;  %v365_v20 = vadd.f32 %v5451_v10, %v329_v12  ;;  %v5058_v26 = vunpack.c.l.bf16 %v5267_v13  ;;  %v5059_v30 = vunpack.c.h.bf16 %v5267_v13  ;;  %v5264_v13 = vld [vmem:[%s5436_s29 + $0x8] sm:$0xff]  }
  0x22   : > { %1910 = vst [vmem:[#allocation2 + $0x1d4] sm:$0xf] %v6547_v1  ;;  %v5546_v23 = vpack.c.b16 %v895_v14, %v894_v8  ;;  %v390_v24 = vmax.f32 %v358_v15, 0.0  ;;  %v307_v25 = vmul.f32 %v5441_v4, %v5042_v16  ;;  %v421_v27 = vpack.c.bf16 %v389_v18, %v389_v18  ;;  %v4942_v8 = vld [vmem:[%s6544_s3 + $0x70] sm:$0xff] }
  0x23   : > { %1911 = vst [vmem:[#allocation2 + $0x1d8] sm:$0xf] %v6547_v1  ;;  %v366_v28 = vadd.f32 %v5451_v10, %v330_v19  ;;  %v397_v29 = vmax.f32 %v365_v20, 0.0  ;;  %v308_v37 = vmul.f32 %v5441_v4, %v5043_v17  ;;  %v5074_v38 = vunpack.c.l.bf16 %v5541_v21  ;;  %v4993_v17 = vld [vmem:[%s6544_s3 + $0x168] sm:$0xff] }
  0x24   : > { %1912 = vst [vmem:[#allocation2 + $0x1dc] sm:$0xf] %v6547_v1  ;;  %2624 = vmatpush.bf16.msra.mxu0 %v4973_v3  ;;  %5328 = vmatpush.bf16.msra.mxu1 %v4973_v3  ;;  %v422_v35 = vpack.c.bf16 %v390_v24, %v390_v24  ;;  %v5142_v36 = vpack.c.bf16 %v390_v24, %v389_v18  ;;  %v902_v41 = vunpack.c.l.b16 %v421_v27  ;;  %v5075_v49 = vunpack.c.h.bf16 %v5541_v21  ;;  %v4933_v21 = vld [vmem:[%s6544_s3 + $0x28] sm:$0xff] }
  0x25   : > { %5281 = vst [vmem:[#allocation2 + $0xc0] sm:$0xff] %v5117_v45   ;;  %5329 = vmatpush.bf16.msra.mxu2 %v4973_v3  ;;  %5330 = vmatpush.bf16.msra.mxu3 %v4973_v3  ;;  %v398_v42 = vmax.f32 %v366_v28, 0.0  ;;  %v429_v43 = vpack.c.bf16 %v397_v29, %v397_v29  ;;  %v343_v44 = vadd.f32 %v5451_v10, %v307_v25  ;;  %v4943_v45 = vld [vmem:[%s6544_s3 + $0x78] sm:$0xff]  ;;  %v4986_v3 = vld [vmem:[%s6544_s3 + $0x130] sm:$0xff]  ;;  %v5091_v20 = vunpack.c.h.bf16 %v5275_v50  ;;  %v4941_v28 = vld [vmem:[%s6544_s3 + $0x68] sm:$0xff] }
  0x26   : > { %5285 = vst [vmem:[#allocation2 + $0xe0] sm:$0xff] %v5137_v53   ;;  %v903_v46 = vunpack.c.l.b16 %v422_v35  ;;  %v344_v47 = vadd.f32 %v5451_v10, %v308_v37  ;;  %v315_v48 = vmul.f32 %v5441_v4, %v5058_v26  ;;  %v316_v60 = vmul.f32 %v5441_v4, %v5059_v30 }
  0x27   : > { %5289 = vst [vmem:[#allocation2 + $0x100] sm:$0xff] %v5157_v62   ;;  %v430_v51 = vpack.c.bf16 %v398_v42, %v398_v42  ;;  %v910_v52 = vunpack.c.l.b16 %v429_v43  ;;  %v5162_v53 = vpack.c.bf16 %v398_v42, %v397_v29  ;;  %v5569_v54 = vmax.f32 %v343_v44, 0.0  ;;  %v5268_v43 = vld [vmem:[%s5436_s29 + $0x28] sm:$0xff]   ;;  %v4932_v44 = vld [vmem:[%s6544_s3 + $0x20] sm:$0xff] }
  0x28   : > { %5282 = vst [vmem:[#allocation2 + $0xc8] sm:$0xff] %v5122_v6   ;;  %2625 = vmatpush.bf16.msra.mxu0 %v4972_v22  ;;  %5331 = vmatpush.bf16.msra.mxu1 %v4972_v22  ;;  %v5576_v58 = vpack.c.b16 %v903_v46, %v902_v41  ;;  %v5578_v59 = vmax.f32 %v344_v47, 0.0  ;;  %v351_v62 = vadd.f32 %v5451_v10, %v315_v48  ;;  %v5090_v6 = vunpack.c.l.bf16 %v5275_v50  ;;  %v5272_v50 = vld [vmem:[%s5436_s29 + $0x48] sm:$0xff]  }
  0x29   : > { %5286 = vst [vmem:[#allocation2 + $0xe8] sm:$0xff] %v5142_v36   ;;  %5332 = vmatpush.bf16.msra.mxu2 %v4972_v22  ;;  %5333 = vmatpush.bf16.msra.mxu3 %v4972_v22  ;;  %v911_v2 = vunpack.c.l.b16 %v430_v51  ;;  %v323_v5 = vmul.f32 %v5441_v4, %v5074_v38  ;;  %v352_v11 = vadd.f32 %v5451_v10, %v316_v60  ;;  %v4985_v22 = vld [vmem:[%s6544_s3 + $0x128] sm:$0xff]  ;;  %v5046_v27 = vunpack.c.l.bf16 %v5264_v13  ;;  %v4992_v38 = vld [vmem:[%s6544_s3 + $0x160] sm:$0xff] }
  0x2a   : > { %5290 = vst [vmem:[#allocation2 + $0x108] sm:$0xff] %v5162_v53   ;;  %v5107_v9 = vpack.c.bf16 %v5578_v59, %v5569_v54  ;;  %v383_v12 = vmax.f32 %v351_v62, 0.0  ;;  %v324_v15 = vmul.f32 %v5441_v4, %v5075_v49  ;;  %v331_v26 = vmul.f32 %v5441_v4, %v5090_v6  ;;  %v4984_v49 = vld [vmem:[%s6544_s3 + $0x120] sm:$0xff] }
  0x2b   : > { %2626 = vmatmul.bf16.vlgmr.msra.gmra.mxu0 %v4952_v39  ;;  %v5600_v14 = vpack.c.b16 %v911_v2, %v910_v52  ;;  %v359_v16 = vadd.f32 %v5451_v10, %v323_v5  ;;  %v384_v18 = vmax.f32 %v352_v11, 0.0  ;;  %v332_v36 = vmul.f32 %v5441_v4, %v5091_v20  ;;  %v4940_v53 = vld [vmem:[%s6544_s3 + $0x60] sm:$0xff]  ;;  %v4991_v5 = vld [vmem:[%s6544_s3 + $0x158] sm:$0xff] }
  0x2c   : > { %v5571_v55 = vld [vmem:[#allocation2 + $0xc0] sm:$0xff]  ;;  %2707 = vmatpush.bf16.msrb.mxu1 %v4987_v40  ;;  %3118 = vmatpush.bf16.msrb.mxu0 %v4943_v45  ;;  %5279 = vst [vmem:[#allocation2 + $0xb0] sm:$0xff] %v5107_v9   ;;  %v415_v19 = vpack.c.bf16 %v383_v12, %v383_v12  ;;  %v360_v24 = vadd.f32 %v5451_v10, %v324_v15  ;;  %v5047_v41 = vunpack.c.h.bf16 %v5264_v13  ;;  %v5063_v2 = vunpack.c.h.bf16 %v5268_v43  ;;  %v4953_v9 = vld [vmem:[#allocation2 + $0xa8] sm:$0xff]  ;;  %v4931_v15 = vld [vmem:[%s6544_s3 + $0x18] sm:$0xff] }
  0x2d   : > { %2796 = vmatpush.bf16.msrb.mxu2 %v4995_v31  ;;  %3029 = vmatpush.bf16.msrb.mxu3 %v4935_v34  ;;  %v5582_v63 = vld [vmem:[#allocation2 + $0xe0] sm:$0xff]  ;;  %6554 = vst [vmem:[#allocation4_spill] sm:$0xff] %v5600_v14  ;;  %v391_v25 = vmax.f32 %v359_v16, 0.0  ;;  %v416_v29 = vpack.c.bf16 %v384_v18, %v384_v18  ;;  %v5127_v31 = vpack.c.bf16 %v384_v18, %v383_v12  ;;  %v5079_v16 = vunpack.c.h.bf16 %v5272_v50 }
  0x2e   : > { %2646 = vmatmul.bf16.vlgmr.msra.gmra.mxu1 %v5571_v55  ;;  %v4964_v7 = vld [vmem:[#allocation2 + $0x100] sm:$0xff]  ;;  %2666 = vmatmul.bf16.vlgmr.msra.gmra.mxu2 %v5582_v63  ;;  %v896_v30 = vunpack.c.l.b16 %v415_v19  ;;  %v392_v34 = vmax.f32 %v360_v24, 0.0  ;;  %v367_v37 = vadd.f32 %v5451_v10, %v331_v26  ;;  %v407_v39 = vpack.c.bf16 %v5569_v54, %v5569_v54  ;;  %v4939_v19 = vld [vmem:[%s6544_s3 + $0x58] sm:$0xff] }
  0x2f   : > { %2686 = vmatmul.bf16.vlgmr.msra.gmra.mxu3 %v4964_v7  ;;  %v423_v35 = vpack.c.bf16 %v391_v25, %v391_v25  ;;  %v897_v40 = vunpack.c.l.b16 %v416_v29  ;;  %5283 = vst [vmem:[#allocation2 + $0xd0] sm:$0xff] %v5127_v31   ;;  %v309_v42 = vmul.f32 %v5441_v4, %v5046_v27  ;;  %v368_v48 = vadd.f32 %v5451_v10, %v332_v36  ;;  %v4983_v26 = vld [vmem:[%s6544_s3 + $0x118] sm:$0xff] }
  0x30   : > { %2708 = vmatpush.bf16.msrb.mxu1 %v4986_v3  ;;  %3119 = vmatpush.bf16.msrb.mxu0 %v4942_v8  ;;  %v424_v45 = vpack.c.bf16 %v392_v34, %v392_v34  ;;  %v5147_v47 = vpack.c.bf16 %v392_v34, %v391_v25  ;;  %v399_v52 = vmax.f32 %v367_v37, 0.0  ;;  %v310_v54 = vmul.f32 %v5441_v4, %v5047_v41  ;;  %v5662_v24 = vld [vmem:[#allocation2 + $0xe8] sm:$0xff] }
  0x31   : > { %2797 = vmatpush.bf16.msrb.mxu2 %v4994_v56  ;;  %3030 = vmatpush.bf16.msrb.mxu3 %v4934_v0  ;;  %v904_v46 = vunpack.c.l.b16 %v423_v35  ;;  %v5635_v51 = vpack.c.b16 %v897_v40, %v896_v30  ;;  %v345_v56 = vadd.f32 %v5451_v10, %v309_v42  ;;  %v400_v62 = vmax.f32 %v368_v48, 0.0  ;;  %v5670_v30 = vld [vmem:[#allocation2 + $0x108] sm:$0xff]  ;;  %v4990_v35 = vld [vmem:[%s6544_s3 + $0x150] sm:$0xff] }
  0x32   : > { %v905_v60 = vunpack.c.l.b16 %v424_v45  ;;  %5287 = vst [vmem:[#allocation2 + $0xf0] sm:$0xff] %v5147_v47   ;;  %v5062_v0 = vunpack.c.l.bf16 %v5268_v43  ;;  %v431_v3 = vpack.c.bf16 %v399_v52, %v399_v52  ;;  %v346_v6 = vadd.f32 %v5451_v10, %v310_v54  ;;  %v4982_v54 = vld [vmem:[%s6544_s3 + $0x110] sm:$0xff] }
  0x33   : > { %v5646_v7 = vmax.f32 %v345_v56, 0.0  ;;  %v5078_v8 = vunpack.c.l.bf16 %v5272_v50  ;;  %v432_v12 = vpack.c.bf16 %v400_v62, %v400_v62  ;;  %v5167_v13 = vpack.c.bf16 %v400_v62, %v399_v52  ;;  %v4989_v56 = vld [vmem:[%s6544_s3 + $0x148] sm:$0xff] }
  0x34   : > { %2709 = vmatpush.bf16.msrb.mxu1 %v4985_v22  ;;  %3120 = vmatpush.bf16.msrb.mxu0 %v4941_v28  ;;  %v5648_v11 = vpack.c.b16 %v905_v60, %v904_v46  ;;  %v912_v18 = vunpack.c.l.b16 %v431_v3  ;;  %v5658_v20 = vmax.f32 %v346_v6, 0.0  ;;  %v5276_v22 = vld [vmem:[%s5436_s29 + $0x68] sm:$0xff]   ;;  %v318_v27 = vmul.f32 %v5441_v4, %v5063_v2 }
  0x35   : > { %2798 = vmatpush.bf16.msrb.mxu2 %v4993_v17  ;;  %3031 = vmatpush.bf16.msrb.mxu3 %v4933_v21  ;;  %v5653_v17 = vld [vmem:[#allocation2 + $0xc8] sm:$0xff]  ;;  %v317_v21 = vmul.f32 %v5441_v4, %v5062_v0  ;;  %v913_v25 = vunpack.c.l.b16 %v432_v12  ;;  %5291 = vst [vmem:[#allocation2 + $0x110] sm:$0xff] %v5167_v13   ;;  %v325_v28 = vmul.f32 %v5441_v4, %v5078_v8  ;;  %v5674_v34 = vunpack.c.l.b16 %v407_v39 }
  0x36   : > { %v326_v29 = vmul.f32 %v5441_v4, %v5079_v16  ;;  %v408_v31 = vpack.c.bf16 %v5578_v59, %v5578_v59  ;;  %v5112_v36 = vpack.c.bf16 %v5658_v20, %v5646_v7  ;;  %v4930_v59 = vld [vmem:[%s6544_s3 + $0x10] sm:$0xff]  ;;  %v354_v39 = vadd.f32 %v5451_v10, %v318_v27 }
  0x37   : > { %v353_v37 = vadd.f32 %v5451_v10, %v317_v21  ;;  %v361_v40 = vadd.f32 %v5451_v10, %v325_v28  ;;  %v5094_v41 = vunpack.c.l.bf16 %v5276_v22  ;;  %v409_v42 = vpack.c.bf16 %v5646_v7, %v5646_v7 }
  0x38   : > { %2710 = vmatpush.bf16.msrb.mxu1 %v4984_v49  ;;  %3121 = vmatpush.bf16.msrb.mxu0 %v4940_v53  ;;  %5280 = vst [vmem:[#allocation2 + $0xb8] sm:$0xff] %v5112_v36   ;;  %v5095_v45 = vunpack.c.h.bf16 %v5276_v22  ;;  %v410_v46 = vpack.c.bf16 %v5658_v20, %v5658_v20  ;;  %v386_v47 = vmax.f32 %v354_v39, 0.0  ;;  %v439_v60 = vlaneseq }
  0x39   : > { %2799 = vmatpush.bf16.msrb.mxu2 %v4992_v38  ;;  %3032 = vmatpush.bf16.msrb.mxu3 %v4932_v44  ;;  %v5682_v38 = vpack.c.b16 %v913_v25, %v912_v18  ;;  %v385_v43 = vmax.f32 %v353_v37, 0.0  ;;  %v362_v44 = vadd.f32 %v5451_v10, %v326_v29  ;;  %v393_v48 = vmax.f32 %v361_v40, 0.0  ;;  %v4981_v18 = vld [vmem:[%s6544_s3 + $0x108] sm:$0xff]  ;;  %v4928_v29 = vld [vmem:[%s6544_s3] sm:$0xff] }
  0x3a   : > { %v333_v49 = vmul.f32 %v5441_v4, %v5094_v41  ;;  %v334_v53 = vmul.f32 %v5441_v4, %v5095_v45  ;;  %v418_v62 = vpack.c.bf16 %v386_v47, %v386_v47  ;;  %v4938_v4 = vld [vmem:[%s6544_s3 + $0x50] sm:$0xff]  ;;  %v889_v6 = vunpack.c.l.b16 %v408_v31  ;;  %v4980_v40 = vld [vmem:[%s6544_s3 + $0x100] sm:$0xff] }
  0x3b   : > { %2631 = vmatmul.bf16.gmra.mxu0 %v4953_v9  ;;  %6555 = vst [vmem:[#allocation5_spill] sm:$0xff] %v5682_v38  ;;  %v417_v50 = vpack.c.bf16 %v385_v43, %v385_v43  ;;  %v394_v52 = vmax.f32 %v362_v44, 0.0  ;;  %v5132_v0 = vpack.c.bf16 %v386_v47, %v385_v43  ;;  %v425_v2 = vpack.c.bf16 %v393_v48, %v393_v48  ;;  %v5743_v44 = vld [vmem:[#allocation2 + $0xb0] sm:$0xff] }
  0x3c   : > { %3122 = vmatpush.bf16.msrb.mxu0 %v4939_v19  ;;  %2711 = vmatpush.bf16.msrb.mxu1 %v4983_v26  ;;  %v369_v3 = vadd.f32 %v5451_v10, %v333_v49  ;;  %v899_v12 = vunpack.c.l.b16 %v418_v62  ;;  %v4937_v19 = vld [vmem:[%s6544_s3 + $0x48] sm:$0xff]  ;;  %v890_v20 = vunpack.c.l.b16 %v409_v42  ;;  %v891_v21 = vunpack.c.l.b16 %v410_v46 }
  0x3d   : > { %2800 = vmatpush.bf16.msrb.mxu2 %v4991_v5  ;;  %3033 = vmatpush.bf16.msrb.mxu3 %v4931_v15  ;;  %v4929_v5 = vld [vmem:[%s6544_s3 + $0x8] sm:$0xff]  ;;  %v898_v7 = vunpack.c.l.b16 %v417_v50  ;;  %v426_v8 = vpack.c.bf16 %v394_v52, %v394_v52  ;;  %v5152_v9 = vpack.c.bf16 %v394_v52, %v393_v48  ;;  %5284 = vst [vmem:[#allocation2 + $0xd8] sm:$0xff] %v5132_v0   ;;  %v906_v13 = vunpack.c.l.b16 %v425_v2  ;;  %v5750_v48 = vld [vmem:[#allocation2 + $0xd0] sm:$0xff] }
  0x3e   : > { %2651 = vmatmul.bf16.gmra.mxu1 %v5653_v17  ;;  %2671 = vmatmul.bf16.gmra.mxu2 %v5662_v24  ;;  %v370_v15 = vadd.f32 %v5451_v10, %v334_v53  ;;  %v401_v16 = vmax.f32 %v369_v3, 0.0  ;;  %v4988_v10 = vld [vmem:[%s6544_s3 + $0x140] sm:$0xff]  ;;  %v5722_v25 = vshrl.u32 %v439_v60, 7  ;;  %v5730_v31 = vpack.c.b16 %v889_v6, %v5674_v34  ;;  %v5763_v0 = vld [vmem:[#allocation2 + $0x110] sm:$0xff] }
  0x3f   : > { %2691 = vmatmul.bf16.gmra.mxu3 %v5670_v30  ;;  %v907_v22 = vunpack.c.l.b16 %v426_v8  ;;  %5288 = vst [vmem:[#allocation2 + $0xf8] sm:$0xff] %v5152_v9   ;;  %v5724_v26 = vpack.c.b16 %v899_v12, %v898_v7  ;;  %v4936_v34 = vld [vmem:[%s6544_s3 + $0x40] sm:$0xff]  ;;  %v1117_v41 = vsel %vm1085_vm1, 65537, %v6547_v1  ;;  %v5745_v45 = vpack.c.b16 %v891_v21, %v890_v20  ;;  %v5023_v8 = vld [vmem:[%s6544_s3 + $0x1b8] sm:$0xff] }
  0x40   : > { %2712 = vmatpush.bf16.msrb.mxu1 %v4982_v54  ;;  %3123 = vmatpush.bf16.msrb.mxu0 %v4938_v4  ;;  %v402_v27 = vmax.f32 %v370_v15, 0.0  ;;  %v433_v28 = vpack.c.bf16 %v401_v16, %v401_v16  ;;  %v476_v36 = vand.u32 15, %v5722_v25  ;;  %v1149_v42 = vunpack.c.l.b16 %v1117_v41  ;;  %v5756_v54 = vld [vmem:[#allocation2 + $0xf0] sm:$0xff]  ;;  %v5031_v12 = vld [vmem:[%s6544_s3 + $0x1f8] sm:$0xff]  ;;  %v5032_v3 = vld [vmem:[%s6544_s3 + $0x200] sm:$0xff] }
  0x41   : > { %2801 = vmatpush.bf16.msrb.mxu2 %v4990_v35  ;;  %3034 = vmatpush.bf16.msrb.mxu3 %v4930_v59  ;;  %v5732_v35 = vpack.c.b16 %v907_v22, %v906_v13  ;;  %v442_v43 = vadd.s32 16, %v5722_v25  ;;  %v5748_v47 = vunpack.c.h.b16 %v6547_v1  ;;  %v937_v49 = vrot.slane %v5730_v31, 7  ;;  %v4951_v13 = vld [vmem:[%s6544_s3 + $0xb8] sm:$0xff] }
  0x42   : > { %v434_v37 = vpack.c.bf16 %v402_v27, %v402_v27  ;;  %v914_v59 = vunpack.c.l.b16 %v433_v28  ;;  %v5172_v39 = vpack.c.bf16 %v402_v27, %v401_v16  ;;  %vm988_vm2 = vcmp.ge.s32.totalorder %v476_v36, 2  ;;  %v5039_v15 = vld [vmem:[%s6544_s3 + $0x238] sm:$0xff] }
  0x43   : > { %6556 = vst [vmem:[#allocation6_spill] sm:$0xff] %v5732_v35  ;;  %vm1084_vm3 = vmpackc.low %vm988_vm2, %vm988_vm2  ;;  %v5754_v52 = vunpack.i.l.s16 %v1149_v42  ;;  %v490_v53 = vand.u32 15, %v442_v43  ;;  %v5761_v62 = vunpack.c.l.b16 %v6547_v1  ;;  %v938_v6 = vrot.slane %v5745_v45, 7 }
  0x44   : > { %2713 = vmatpush.bf16.msrb.mxu1 %v4981_v18  ;;  %3124 = vmatpush.bf16.msrb.mxu0 %v4937_v19  ;;  %v915_v46 = vunpack.c.l.b16 %v434_v37  ;;  %5292 = vst [vmem:[#allocation2 + $0x118] sm:$0xff] %v5172_v39   ;;  %v1116_v50 = vsel %vm1084_vm3, 65537, %v6547_v1  ;;  %v411_v21 = vpack.c.bf16 %v5476_v32, %v5476_v32  ;;  %v412_v22 = vpack.c.bf16 %v5478_v33, %v5478_v33  ;;  %v5804_v41 = vld [vmem:[#allocation2 + $0xd8] sm:$0xff] }
  0x45   : > { %2802 = vmatpush.bf16.msrb.mxu2 %v4989_v56  ;;  %3035 = vmatpush.bf16.msrb.mxu3 %v4929_v5  ;;  %v1148_v60 = vunpack.c.l.b16 %v1116_v50  ;;  %vm990_vm5 = vcmp.ge.s32.totalorder %v490_v53, 2  ;;  %vm5768_vm6 = vcmp.ne.s32.totalorder %v5754_v52, %v5748_v47  ;;  %v986_v5 = vsel %vm936_vm4, 0, %v937_v49 }
  0x46   : > { %v5758_v56 = vpack.c.b16 %v915_v46, %v914_v59  ;;  %vm1086_vm7 = vmpackc.low %vm990_vm5, %vm990_vm5  ;;  %v939_v20 = vsel %vm936_vm4, %v937_v49, %v938_v6  ;;  %v892_v32 = vunpack.c.l.b16 %v411_v21  ;;  %v893_v59 = vunpack.c.l.b16 %v412_v22  ;;  %v5808_v43 = vld [vmem:[#allocation2 + $0xf8] sm:$0xff]  ;;  %v5022_v21 = vld [vmem:[%s6544_s3 + $0x1b0] sm:$0xff] }
  0x47   : > { %v4216_v2 = vunpack.i.l.s16 %v1148_v60  ;;  %v1118_v4 = vsel %vm1086_vm7, 65537, %v6547_v1  ;;  %v5030_v22 = vld [vmem:[%s6544_s3 + $0x1f0] sm:$0xff] }
  0x48   : > { %2714 = vmatpush.bf16.msrb.mxu1 %v4980_v40  ;;  %3125 = vmatpush.bf16.msrb.mxu0 %v4936_v34  ;;  %v1150_v7 = vunpack.c.l.b16 %v1118_v4  ;;  %v5802_v34 = vld [vmem:[#allocation2 + $0xb8] sm:$0xff]  ;;  %v5806_v42 = vpack.c.b16 %v893_v59, %v892_v32  ;;  %v448_v59 = vadd.s32 64, %v5722_v25 }
  0x49   : > { %2803 = vmatpush.bf16.msrb.mxu2 %v4988_v10  ;;  %3036 = vmatpush.bf16.msrb.mxu3 %v4928_v29  ;;  %vm1200_vm8 = vcmp.ne.s32.totalorder %v4216_v2, %v5761_v62  ;;  %v444_v29 = vadd.s32 32, %v5722_v25 }
  0x4a   : > { %vm1202_vm9 = vmpackc.low %vm5768_vm6, %vm1200_vm8  ;;  %v4218_v16 = vunpack.i.l.s16 %v1150_v7  ;;  %v940_v60 = vrot.slane %v5806_v42, 7 }
  0x4b   : > { %2636 = vmatmul.bf16.gmra.mxu0 %v5743_v44  ;;  %v1308_v9 = vsel %vm1202_vm9, %v986_v5, 0  ;;  %v504_v33 = vand.u32 15, %v444_v29  ;;  %v5811_v49 = vld [vmem:[#allocation2 + $0x118] sm:$0xff] }
  0x4c   : > { %v1348_v18 = vunpack.c.l.b16 %v1308_v9  ;;  %v1349_v19 = vunpack.c.h.b16 %v1308_v9  ;;  %3207 = vmatpush.bf16.msra.mxu1 %v4951_v13  ;;  %vm1207_vm10 = vcmp.ne.s32.totalorder %v4218_v16, %v5761_v62  ;;  %3827 = vmatpush.bf16.msra.mxu0 %v5039_v15  ;;  %v941_v2 = vsel %vm936_vm4, %v938_v6, %v940_v60  ;;  %v4908_v6 = vld [vmem:[#allocation2] sm:$0xff] }
  0x4d   : > { %3649 = vmatpush.bf16.msra.mxu2 %v5023_v8  ;;  %3738 = vmatpush.bf16.msra.mxu3 %v5031_v12  ;;  %vm1209_vm11 = vmpackc.low %vm5768_vm6, %vm1207_vm10  ;;  %vm992_vm12 = vcmp.ge.s32.totalorder %v504_v33, 2  ;;  %v446_v12 = vadd.s32 48, %v5722_v25  ;;  %v532_v33 = vand.u32 15, %v448_v59 }
  0x4e   : > { %2656 = vmatmul.bf16.gmra.mxu1 %v5750_v48  ;;  %2676 = vmatmul.bf16.gmra.mxu2 %v5756_v54  ;;  %v1380_v10 = vpack.c.b16 %v1348_v18, %v1348_v18  ;;  %v1381_v27 = vpack.c.b16 %v1349_v19, %v1349_v19  ;;  %v1309_v28 = vsel %vm1209_vm11, %v939_v20, 0  ;;  %vm1088_vm13 = vmpackc.low %vm992_vm12, %vm992_vm12  ;;  %v942_v20 = vrot.slane %v5546_v23, 7 }
  0x4f   : > { %2696 = vmatmul.bf16.gmra.mxu3 %v5763_v0  ;;  %v1350_v36 = vunpack.c.l.b16 %v1309_v28  ;;  %v1351_v37 = vunpack.c.h.b16 %v1309_v28  ;;  %v1120_v46 = vsel %vm1088_vm13, 65537, %v6547_v1  ;;  %v518_v13 = vand.u32 15, %v446_v12 }
  0x50   : > { %1444 = vst [vmem:[#allocation2 + $0x10] sm:$0xf] %v1380_v10  ;;  %v1152_v50 = vunpack.c.l.b16 %v1120_v46  ;;  %v4950_v10 = vld [vmem:[%s6544_s3 + $0xb0] sm:$0xff]  ;;  %vm996_vm5 = vcmp.ge.s32.totalorder %v532_v33, 2  ;;  %v4909_v46 = vld [vmem:[#allocation2 + $0x8] sm:$0xff] }
  0x51   : > { %1445 = vst [vmem:[#allocation2 + $0x14] sm:$0xf] %v1381_v27  ;;  %v1382_v39 = vpack.c.b16 %v1350_v36, %v1350_v36  ;;  %v1383_v40 = vpack.c.b16 %v1351_v37, %v1351_v37  ;;  %vm994_vm0 = vcmp.ge.s32.totalorder %v518_v13, 2  ;;  %v943_v27 = vsel %vm936_vm4, %v940_v60, %v942_v20  ;;  %3650 = vmatpush.bf16.msra.mxu2 %v5022_v21  ;;  %vm1092_vm7 = vmpackc.low %vm996_vm5, %vm996_vm5  ;;  %v5029_v21 = vld [vmem:[%s6544_s3 + $0x1e8] sm:$0xff] }
  0x52   : > { %v4220_v53 = vunpack.i.l.s16 %v1152_v50  ;;  %vm1090_vm1 = vmpackc.low %vm994_vm0, %vm994_vm0  ;;  %3739 = vmatpush.bf16.msra.mxu3 %v5030_v22  ;;  %3208 = vmatpush.bf16.msra.mxu1 %v4950_v10  ;;  %v944_v60 = vrot.slane %v5635_v51, 7  ;;  %v5037_v10 = vld [vmem:[%s6544_s3 + $0x228] sm:$0xff] }
  0x53   : > { %1446 = vst [vmem:[#allocation2 + $0x18] sm:$0xf] %v1382_v39  ;;  %v1122_v16 = vsel %vm1090_vm1, 65537, %v6547_v1 }
  0x54   : > { %1447 = vst [vmem:[#allocation2 + $0x1c] sm:$0xf] %v1383_v40  ;;  %vm1214_vm14 = vcmp.ne.s32.totalorder %v4220_v53, %v5761_v62  ;;  %v1154_v18 = vunpack.c.l.b16 %v1122_v16  ;;  %v1124_v40 = vsel %vm1092_vm7, 65537, %v6547_v1 }
  0x55   : > { %vm1216_vm15 = vmpackc.low %vm5768_vm6, %vm1214_vm14  ;;  %v1156_v50 = vunpack.c.l.b16 %v1124_v40 }
  0x56   : > { %v1310_v5 = vsel %vm1216_vm15, %v941_v2, 0  ;;  %v4222_v19 = vunpack.i.l.s16 %v1154_v18  ;;  %v945_v2 = vsel %vm936_vm4, %v942_v20, %v944_v60  ;;  %v5021_v20 = vld [vmem:[%s6544_s3 + $0x1a8] sm:$0xff]  ;;  %3740 = vmatpush.bf16.msra.mxu3 %v5029_v21 }
  0x57   : > { %v1352_v4 = vunpack.c.l.b16 %v1310_v5  ;;  %v1353_v7 = vunpack.c.h.b16 %v1310_v5  ;;  %v4224_v53 = vunpack.i.l.s16 %v1156_v50  ;;  %3651 = vmatpush.bf16.msra.mxu2 %v5021_v20 }
  0x58   : > { %v5823_v15 = vld [vmem:[#allocation2 + $0x10] sm:$0xff]  ;;  %vm1221_vm2 = vcmp.ne.s32.totalorder %v4222_v19, %v5761_v62  ;;  %v946_v19 = vrot.slane %v5724_v26, 7 }
  0x59   : > { %v1384_v8 = vpack.c.b16 %v1352_v4, %v1352_v4  ;;  %v1385_v9 = vpack.c.b16 %v1353_v7, %v1353_v7  ;;  %vm1223_vm3 = vmpackc.low %vm5768_vm6, %vm1221_vm2  ;;  %vm1228_vm8 = vcmp.ne.s32.totalorder %v4224_v53, %v5761_v62 }
  0x5a   : > { %v1311_v28 = vsel %vm1223_vm3, %v943_v27, 0  ;;  %vm1230_vm9 = vmpackc.low %vm5768_vm6, %vm1228_vm8  ;;  %v947_v22 = vsel %vm936_vm4, %v944_v60, %v946_v19 }
  0x5b   : > { %2641 = vmatmul.bf16.gmra.mxu0 %v5802_v34  ;;  %1448 = vst [vmem:[#allocation2 + $0x20] sm:$0xf] %v1384_v8  ;;  %v1354_v29 = vunpack.c.l.b16 %v1311_v28  ;;  %v1355_v36 = vunpack.c.h.b16 %v1311_v28  ;;  %v5847_v39 = vld [vmem:[#allocation2 + $0x18] sm:$0xff]  ;;  %v1312_v5 = vsel %vm1230_vm9, %v945_v2, 0 }
  0x5c   : > { %1449 = vst [vmem:[#allocation2 + $0x24] sm:$0xf] %v1385_v9  ;;  %v1356_v4 = vunpack.c.l.b16 %v1312_v5  ;;  %v1357_v7 = vunpack.c.h.b16 %v1312_v5 }
  0x5d   : > { %v1386_v37 = vpack.c.b16 %v1354_v29, %v1354_v29  ;;  %v1387_v32 = vpack.c.b16 %v1355_v36, %v1355_v36  ;;  %v452_v36 = vadd.s32 96, %v5722_v25 }
  0x5e   : > { %2661 = vmatmul.bf16.gmra.mxu1 %v5804_v41  ;;  %2681 = vmatmul.bf16.gmra.mxu2 %v5808_v43  ;;  %v1388_v8 = vpack.c.b16 %v1356_v4, %v1356_v4  ;;  %v1389_v9 = vpack.c.b16 %v1357_v7, %v1357_v7 }
  0x5f   : > { %2701 = vmatmul.bf16.gmra.mxu3 %v5811_v49  ;;  %1450 = vst [vmem:[#allocation2 + $0x28] sm:$0xf] %v1386_v37  ;;  %v560_v37 = vand.u32 15, %v452_v36  ;;  %v456_v36 = vadd.s32 128, %v5722_v25 }
  0x60   : > { %1451 = vst [vmem:[#allocation2 + $0x2c] sm:$0xf] %v1387_v32 }
  0x61   : > { %1452 = vst [vmem:[#allocation2 + $0x30] sm:$0xf] %v1388_v8  ;;  %vm1000_vm14 = vcmp.ge.s32.totalorder %v560_v37, 2  ;;  %v588_v37 = vand.u32 15, %v456_v36 }
  0x62   : > { %1453 = vst [vmem:[#allocation2 + $0x34] sm:$0xf] %v1389_v9  ;;  %vm1096_vm15 = vmpackc.low %vm1000_vm14, %vm1000_vm14 }
  0x63   : > { %v5859_v13 = vld [vmem:[#allocation2 + $0x20] sm:$0xff]  ;;  %v1128_v59 = vsel %vm1096_vm15, 65537, %v6547_v1  ;;  %vm1004_vm8 = vcmp.ge.s32.totalorder %v588_v37, 2  ;;  %v954_v37 = vrot.slane %v5732_v35, 7 }
  0x64   : > { %v1160_v33 = vunpack.c.l.b16 %v1128_v59  ;;  %vm1100_vm9 = vmpackc.low %vm1004_vm8, %vm1004_vm8 }
  0x66   : > { %v4228_v40 = vunpack.i.l.s16 %v1160_v33 }
  0x67   : > { %v5884_v32 = vld [vmem:[#allocation2 + $0x28] sm:$0xff] }
  0x68   : > { %vm1242_vm0 = vcmp.ne.s32.totalorder %v4228_v40, %v5761_v62 }
  0x69   : > { %vm1244_vm1 = vmpackc.low %vm5768_vm6, %vm1242_vm0  ;;  %v5897_v8 = vld [vmem:[#allocation2 + $0x30] sm:$0xff] }
  0x6b   : > { %3126 = vmatmul.bf16.vlgmr.msrb.gmra.mxu0 %v5823_v15 }
  0x6e   : > { %2715 = vmatmul.bf16.vlgmr.msrb.gmra.mxu1 %v5743_v44  ;;  %2804 = vmatmul.bf16.vlgmr.msrb.gmra.mxu2 %v5571_v55  ;;  %v5038_v44 = vld [vmem:[%s6544_s3 + $0x230] sm:$0xff] }
  0x6f   : > { %3037 = vmatmul.bf16.vlgmr.msrb.gmra.mxu3 %v4908_v6  ;;  %3828 = vmatpush.bf16.msra.mxu0 %v5038_v44 }
  0x73   : > { %3829 = vmatpush.bf16.msra.mxu0 %v5037_v10  ;;  %v5036_v10 = vld [vmem:[%s6544_s3 + $0x220] sm:$0xff] }
  0x77   : > { %3830 = vmatpush.bf16.msra.mxu0 %v5036_v10 }
  0x7b   : > { %3131 = vmatmul.bf16.gmra.mxu0 %v5847_v39 }
  0x7e   : > { %2720 = vmatmul.bf16.gmra.mxu1 %v5802_v34  ;;  %2809 = vmatmul.bf16.gmra.mxu2 %v5653_v17  ;;  %v450_v34 = vadd.s32 80, %v5722_v25 }
  0x7f   : > { %3042 = vmatmul.bf16.gmra.mxu3 %v4909_v46  ;;  %v948_v46 = vrot.slane %v5518_v57, 7 }
  0x80   : > { %v546_v12 = vand.u32 15, %v450_v34 }
  0x81   : > { %v949_v50 = vsel %vm936_vm4, %v946_v19, %v948_v46  ;;  %v5028_v19 = vld [vmem:[%s6544_s3 + $0x1e0] sm:$0xff] }
  0x82   : > { %vm998_vm10 = vcmp.ge.s32.totalorder %v546_v12, 2  ;;  %v1314_v53 = vsel %vm1244_vm1, %v949_v50, 0  ;;  %3741 = vmatpush.bf16.msra.mxu3 %v5028_v19 }
  0x83   : > { %vm1094_vm11 = vmpackc.low %vm998_vm10, %vm998_vm10  ;;  %v1360_v60 = vunpack.c.l.b16 %v1314_v53  ;;  %v1361_v2 = vunpack.c.h.b16 %v1314_v53  ;;  %v1132_v53 = vsel %vm1100_vm9, 65537, %v6547_v1 }
  0x84   : > { %v1126_v16 = vsel %vm1094_vm11, 65537, %v6547_v1 }
  0x85   : > { %v1158_v6 = vunpack.c.l.b16 %v1126_v16  ;;  %v1392_v5 = vpack.c.b16 %v1360_v60, %v1360_v60  ;;  %v1393_v4 = vpack.c.b16 %v1361_v2, %v1361_v2  ;;  %v1164_v60 = vunpack.c.l.b16 %v1132_v53  ;;  %v5019_v53 = vld [vmem:[%s6544_s3 + $0x198] sm:$0xff] }
  0x87   : > { %v4226_v18 = vunpack.i.l.s16 %v1158_v6  ;;  %1456 = vst [vmem:[#allocation2 + $0x40] sm:$0xf] %v1392_v5  ;;  %v950_v6 = vrot.slane %v5576_v58, 7  ;;  %v4232_v2 = vunpack.i.l.s16 %v1164_v60  ;;  %v952_v5 = vrot.slane %v5648_v11, 7  ;;  %v5027_v60 = vld [vmem:[%s6544_s3 + $0x1d8] sm:$0xff] }
  0x88   : > { %1457 = vst [vmem:[#allocation2 + $0x44] sm:$0xf] %v1393_v4  ;;  %3742 = vmatpush.bf16.msra.mxu3 %v5027_v60 }
  0x89   : > { %vm1235_vm12 = vcmp.ne.s32.totalorder %v4226_v18, %v5761_v62  ;;  %v5020_v18 = vld [vmem:[%s6544_s3 + $0x1a0] sm:$0xff]  ;;  %v951_v20 = vsel %vm936_vm4, %v948_v46, %v950_v6  ;;  %vm1256_vm10 = vcmp.ne.s32.totalorder %v4232_v2, %v5761_v62  ;;  %v953_v4 = vsel %vm936_vm4, %v950_v6, %v952_v5 }
  0x8a   : > { %vm1237_vm13 = vmpackc.low %vm5768_vm6, %vm1235_vm12  ;;  %3652 = vmatpush.bf16.msra.mxu2 %v5020_v18  ;;  %v955_v2 = vsel %vm936_vm4, %v952_v5, %v954_v37  ;;  %v4947_v5 = vld [vmem:[%s6544_s3 + $0x98] sm:$0xff] }
  0x8b   : > { %3136 = vmatmul.bf16.gmra.mxu0 %v5859_v13  ;;  %vm1258_vm11 = vmpackc.low %vm5768_vm6, %vm1256_vm10 }
  0x8e   : > { %2725 = vmatmul.bf16.gmra.mxu1 %v5571_v55  ;;  %2814 = vmatmul.bf16.gmra.mxu2 %v5750_v48  ;;  %v1313_v55 = vsel %vm1237_vm13, %v947_v22, 0 }
  0x8f   : > { %3047 = vmatmul.bf16.gmra.mxu3 %v5823_v15  ;;  %v4949_v15 = vld [vmem:[%s6544_s3 + $0xa8] sm:$0xff]  ;;  %v1358_v44 = vunpack.c.l.b16 %v1313_v55  ;;  %v1359_v27 = vunpack.c.h.b16 %v1313_v55  ;;  %3653 = vmatpush.bf16.msra.mxu2 %v5019_v53 }
  0x90   : > { %3209 = vmatpush.bf16.msra.mxu1 %v4949_v15  ;;  %v4948_v15 = vld [vmem:[%s6544_s3 + $0xa0] sm:$0xff] }
  0x91   : > { %v1390_v28 = vpack.c.b16 %v1358_v44, %v1358_v44  ;;  %v1391_v29 = vpack.c.b16 %v1359_v27, %v1359_v27 }
  0x93   : > { %1454 = vst [vmem:[#allocation2 + $0x38] sm:$0xf] %v1390_v28 }
  0x94   : > { %1455 = vst [vmem:[#allocation2 + $0x3c] sm:$0xf] %v1391_v29  ;;  %3210 = vmatpush.bf16.msra.mxu1 %v4948_v15 }
  0x98   : > { %3211 = vmatpush.bf16.msra.mxu1 %v4947_v5 }
  0x9b   : > { %3141 = vmatmul.bf16.gmra.mxu0 %v5884_v32  ;;  %v5934_v59 = vld [vmem:[#allocation2 + $0x38] sm:$0xff] }
  0x9e   : > { %2730 = vmatmul.bf16.gmra.mxu1 %v5653_v17  ;;  %2819 = vmatmul.bf16.gmra.mxu2 %v5804_v41  ;;  %v454_v17 = vadd.s32 112, %v5722_v25 }
  0x9f   : > { %3052 = vmatmul.bf16.gmra.mxu3 %v5847_v39 }
  0xa0   : > { %v574_v7 = vand.u32 15, %v454_v17 }
  0xa2   : > { %vm1002_vm2 = vcmp.ge.s32.totalorder %v574_v7, 2 }
  0xa3   : > { %vm1098_vm3 = vmpackc.low %vm1002_vm2, %vm1002_vm2 }
  0xa4   : > { %v1130_v34 = vsel %vm1098_vm3, 65537, %v6547_v1 }
  0xa5   : > { %v1162_v12 = vunpack.c.l.b16 %v1130_v34  ;;  %v1316_v34 = vsel %vm1258_vm11, %v953_v4, 0 }
  0xa6   : > { %v1365_v18 = vunpack.c.h.b16 %v1316_v34 }
  0xa7   : > { %v4230_v16 = vunpack.i.l.s16 %v1162_v12 }
  0xa8   : > { %v5899_v39 = vpop.f32.mrf.mxu0 }
  0xa9   : > { %vm1249_vm5 = vcmp.ne.s32.totalorder %v4230_v16, %v5761_v62  ;;  %v1364_v16 = vunpack.c.l.b16 %v1316_v34 }
  0xaa   : > { %vm1251_vm7 = vmpackc.low %vm5768_vm6, %vm1249_vm5 }
  0xab   : > { %v5901_v9 = vpop.f32.mrf.mxu1  ;;  %3146 = vmatmul.bf16.gmra.mxu0 %v5897_v8  ;;  %v1396_v19 = vpack.c.b16 %v1364_v16, %v1364_v16 }
  0xad   : > { %1460 = vst [vmem:[#allocation2 + $0x50] sm:$0xf] %v1396_v19 }
  0xae   : > { %2735 = vmatmul.bf16.gmra.mxu1 %v5750_v48  ;;  %2824 = vmatmul.bf16.gmra.mxu2 %v5582_v63 }
  0xaf   : > { %3057 = vmatmul.bf16.gmra.mxu3 %v5859_v13  ;;  %v1315_v13 = vsel %vm1251_vm7, %v951_v20, 0  ;;  %v458_v20 = vadd.s32 144, %v5722_v25 }
  0xb0   : > { %v5921_v21 = vpop.f32.mrf.mxu0  ;;  %v1362_v44 = vunpack.c.l.b16 %v1315_v13  ;;  %v1363_v27 = vunpack.c.h.b16 %v1315_v13  ;;  %v5963_v13 = vld [vmem:[#allocation2 + $0x40] sm:$0xff] }
  0xb1   : > { %v5919_v48 = vpop.f32.mrf.mxu2  ;;  %v602_v6 = vand.u32 15, %v458_v20 }
  0xb2   : > { %v5923_v22 = vpop.f32.mrf.mxu3  ;;  %v1394_v28 = vpack.c.b16 %v1362_v44, %v1362_v44  ;;  %v1395_v29 = vpack.c.b16 %v1363_v27, %v1363_v27 }
  0xb3   : > { %6559 = vst [vmem:[#allocation7_spill] sm:$0xff] %v5923_v22  ;;  %v5925_v55 = vpop.f32.mrf.mxu1  ;;  %vm1006_vm12 = vcmp.ge.s32.totalorder %v602_v6, 2 }
  0xb4   : > { %1458 = vst [vmem:[#allocation2 + $0x48] sm:$0xf] %v1394_v28  ;;  %vm1102_vm13 = vmpackc.low %vm1006_vm12, %vm1006_vm12 }
  0xb5   : > { %1459 = vst [vmem:[#allocation2 + $0x4c] sm:$0xf] %v1395_v29  ;;  %v1134_v28 = vsel %vm1102_vm13, 65537, %v6547_v1 }
  0xb6   : > { %v1166_v29 = vunpack.c.l.b16 %v1134_v28  ;;  %v460_v28 = vadd.s32 160, %v5722_v25 }
  0xb8   : > { %v5938_v40 = vpop.f32.mrf.mxu0  ;;  %v4234_v36 = vunpack.i.l.s16 %v1166_v29  ;;  %v616_v29 = vand.u32 15, %v460_v28 }
  0xb9   : > { %v5936_v33 = vpop.f32.mrf.mxu2 }
  0xba   : > { %v5940_v46 = vpop.f32.mrf.mxu3  ;;  %vm1263_vm14 = vcmp.ne.s32.totalorder %v4234_v36, %v5761_v62  ;;  %vm1008_vm0 = vcmp.ge.s32.totalorder %v616_v29, 2 }
  0xbb   : > { %6560 = vst [vmem:[#allocation8_spill] sm:$0xff] %v5940_v46  ;;  %v5942_v50 = vpop.f32.mrf.mxu1  ;;  %3151 = vmatmul.bf16.gmra.mxu0 %v5934_v59  ;;  %vm1265_vm15 = vmpackc.low %vm5768_vm6, %vm1263_vm14  ;;  %v6569_v46 = vmov 0  }
  0xbc   : > { %v6004_v36 = vld [vmem:[#allocation2 + $0x48] sm:$0xff]  ;;  %vm1104_vm1 = vmpackc.low %vm1008_vm0, %vm1008_vm0 }
  0xbe   : > { %2740 = vmatmul.bf16.gmra.mxu1 %v5804_v41  ;;  %2829 = vmatmul.bf16.gmra.mxu2 %v5662_v24 }
  0xbf   : > { %3062 = vmatmul.bf16.gmra.mxu3 %v5884_v32  ;;  %v1397_v32 = vpack.c.b16 %v1365_v18, %v1365_v18 }
  0xc0   : > { %v5956_v7 = vpop.f32.mrf.mxu0 }
  0xc1   : > { %v5954_v17 = vpop.f32.mrf.mxu2  ;;  %1461 = vst [vmem:[#allocation2 + $0x54] sm:$0xf] %v1397_v32  ;;  %v5035_v32 = vld [vmem:[%s6544_s3 + $0x218] sm:$0xff] }
  0xc2   : > { %v5958_v41 = vpop.f32.mrf.mxu3  ;;  %3831 = vmatpush.bf16.msra.mxu0 %v5035_v32  ;;  %v956_v32 = vrot.slane %v5521_v61, 7 }
  0xc3   : > { %6561 = vst [vmem:[#allocation9_spill] sm:$0xff] %v5958_v41  ;;  %v5960_v12 = vpop.f32.mrf.mxu1 }
  0xc8   : > { %v5967_v10 = vpop.f32.mrf.mxu0 }
  0xc9   : > { %v5965_v15 = vpop.f32.mrf.mxu2 }
  0xca   : > { %v5969_v44 = vpop.f32.mrf.mxu3 }
  0xcb   : > { %6562 = vst [vmem:[#allocation10_spill] sm:$0xff] %v5969_v44  ;;  %v5971_v27 = vpop.f32.mrf.mxu1  ;;  %3156 = vmatmul.bf16.gmra.mxu0 %v5963_v13 }
  0xce   : > { %2745 = vmatmul.bf16.gmra.mxu1 %v5582_v63  ;;  %2834 = vmatmul.bf16.gmra.mxu2 %v5756_v54 }
  0xcf   : > { %3067 = vmatmul.bf16.gmra.mxu3 %v5897_v8  ;;  %v1317_v8 = vsel %vm1265_vm15, %v955_v2, 0 }
  0xd0   : > { %v5991_v4 = vpop.f32.mrf.mxu0  ;;  %v1366_v18 = vunpack.c.l.b16 %v1317_v8  ;;  %v1367_v19 = vunpack.c.h.b16 %v1317_v8 }
  0xd1   : > { %v5989_v63 = vpop.f32.mrf.mxu2 }
  0xd2   : > { %v5993_v34 = vpop.f32.mrf.mxu3  ;;  %v1398_v20 = vpack.c.b16 %v1366_v18, %v1366_v18  ;;  %v1399_v6 = vpack.c.b16 %v1367_v19, %v1367_v19  ;;  %v1136_v18 = vsel %vm1104_vm1, 65537, %v6547_v1 }
  0xd3   : > { %6563 = vst [vmem:[#allocation11_spill] sm:$0xff] %v5993_v34  ;;  %v5995_v16 = vpop.f32.mrf.mxu1  ;;  %v1168_v19 = vunpack.c.l.b16 %v1136_v18  ;;  %v6033_v34 = vld [vmem:[#allocation2 + $0x50] sm:$0xff] }
  0xd4   : > { %1462 = vst [vmem:[#allocation2 + $0x58] sm:$0xf] %v1398_v20  ;;  %v957_v20 = vsel %vm936_vm4, %v954_v37, %v956_v32 }
  0xd5   : > { %1463 = vst [vmem:[#allocation2 + $0x5c] sm:$0xf] %v1399_v6  ;;  %v4236_v5 = vunpack.i.l.s16 %v1168_v19 }
  0xd7   : > { %vm1270_vm2 = vcmp.ne.s32.totalorder %v4236_v5, %v5761_v62  ;;  %v462_v5 = vadd.s32 176, %v5722_v25 }
  0xd8   : > { %v6008_v60 = vpop.f32.mrf.mxu0  ;;  %vm1272_vm3 = vmpackc.low %vm5768_vm6, %vm1270_vm2 }
  0xd9   : > { %v6006_v53 = vpop.f32.mrf.mxu2  ;;  %v1318_v29 = vsel %vm1272_vm3, %v957_v20, 0  ;;  %v630_v37 = vand.u32 15, %v462_v5  ;;  %v5018_v5 = vld [vmem:[%s6544_s3 + $0x190] sm:$0xff] }
  0xda   : > { %v6010_v2 = vpop.f32.mrf.mxu3  ;;  %v1368_v19 = vunpack.c.l.b16 %v1318_v29  ;;  %v1369_v1 = vunpack.c.h.b16 %v1318_v29  ;;  %3654 = vmatpush.bf16.msra.mxu2 %v5018_v5 }
  0xdb   : > { %6564 = vst [vmem:[#allocation12_spill] sm:$0xff] %v6010_v2  ;;  %v6012_v8 = vpop.f32.mrf.mxu1  ;;  %3161 = vmatmul.bf16.gmra.mxu0 %v6004_v36  ;;  %vm1010_vm5 = vcmp.ge.s32.totalorder %v630_v37, 2 }
  0xdc   : > { %v1400_v2 = vpack.c.b16 %v1368_v19, %v1368_v19  ;;  %vm1106_vm7 = vmpackc.low %vm1010_vm5, %vm1010_vm5  ;;  %v6043_v19 = vld [vmem:[#allocation2 + $0x100] sm:$0xff] }
  0xdd   : > { %v1138_v22 = vsel %vm1106_vm7, 65537, %v6569_v46 }
  0xde   : > { %2750 = vmatmul.bf16.gmra.mxu1 %v5662_v24  ;;  %2839 = vmatmul.bf16.gmra.mxu2 %v5808_v43  ;;  %1464 = vst [vmem:[#allocation2 + $0x60] sm:$0xf] %v1400_v2 }
  0xdf   : > { %3072 = vmatmul.bf16.gmra.mxu3 %v5934_v59  ;;  %v1401_v59 = vpack.c.b16 %v1369_v1, %v1369_v1  ;;  %v1170_v1 = vunpack.c.l.b16 %v1138_v22 }
  0xe0   : > { %v6026_v28 = vpop.f32.mrf.mxu0 }
  0xe1   : > { %v6024_v6 = vpop.f32.mrf.mxu2  ;;  %1465 = vst [vmem:[#allocation2 + $0x64] sm:$0xf] %v1401_v59  ;;  %v4238_v2 = vunpack.i.l.s16 %v1170_v1  ;;  %v958_v59 = vrot.slane %v5600_v14, 7 }
  0xe2   : > { %6565 = vst [vmem:[#allocation13_spill] sm:$0xff] %v6024_v6  ;;  %v6028_v24 = vpop.f32.mrf.mxu3 }
  0xe3   : > { %6566 = vst [vmem:[#allocation14_spill] sm:$0xff] %v6028_v24  ;;  %v6030_v18 = vpop.f32.mrf.mxu1  ;;  %vm1277_vm8 = vcmp.ne.s32.totalorder %v4238_v2, %v5761_v62  ;;  %v5034_v2 = vld [vmem:[%s6544_s3 + $0x210] sm:$0xff] }
  0xe4   : > { %vm1279_vm9 = vmpackc.low %vm5768_vm6, %vm1277_vm8  ;;  %3832 = vmatpush.bf16.msra.mxu0 %v5034_v2 }
  0xe8   : > { %v3127_v41 = vpop.f32.mrf.mxu0 }
  0xe9   : > { %v6035_v44 = vpop.f32.mrf.mxu2 }
  0xea   : > { %6567 = vst [vmem:[#allocation15_spill] sm:$0xff] %v6035_v44  ;;  %v6037_v20 = vpop.f32.mrf.mxu3 }
  0xeb   : > { %6568 = vst [vmem:[#allocation16_spill] sm:$0xff] %v6037_v20  ;;  %v2716_v24 = vpop.f32.mrf.mxu1  ;;  %3166 = vmatmul.bf16.gmra.mxu0 %v6033_v34 }
  0xec   : > { %v2717_v29 = vadd.f32 %v2716_v24, %v5899_v39  ;;  %v5026_v39 = vld [vmem:[%s6544_s3 + $0x1d0] sm:$0xff] }
  0xed   : > { %3743 = vmatpush.bf16.msra.mxu3 %v5026_v39  ;;  %v464_v39 = vadd.s32 192, %v5722_v25 }
  0xee   : > { %2755 = vmatmul.bf16.gmra.mxu1 %v5756_v54  ;;  %2844 = vmatmul.bf16.gmra.mxu2 %v6043_v19  ;;  %v959_v54 = vsel %vm936_vm4, %v956_v32, %v958_v59  ;;  %v4946_v32 = vld [vmem:[%s6544_s3 + $0x90] sm:$0xff] }
  0xef   : > { %3077 = vmatmul.bf16.gmra.mxu3 %v5963_v13  ;;  %v1319_v13 = vsel %vm1279_vm9, %v959_v54, 0  ;;  %3212 = vmatpush.bf16.msra.mxu1 %v4946_v32  ;;  %v5277_v32 = vld [vmem:[%s5436_s29 + $0x70] sm:$0xff]  }
  0xf0   : > { %v3129_v24 = vpop.f32.mrf.mxu0  ;;  %v1370_v14 = vunpack.c.l.b16 %v1319_v13  ;;  %v1371_v61 = vunpack.c.h.b16 %v1319_v13 }
  0xf1   : > { %v2805_v22 = vpop.f32.mrf.mxu2 }
  0xf2   : > { %v2806_v37 = vadd.f32 %v2805_v22, %v2717_v29  ;;  %v3038_v1 = vpop.f32.mrf.mxu3  ;;  %v1402_v35 = vpack.c.b16 %v1370_v14, %v1370_v14  ;;  %v1403_v5 = vpack.c.b16 %v1371_v61, %v1371_v61  ;;  %v644_v29 = vand.u32 15, %v464_v39 }
  0xf3   : > { %v2718_v20 = vpop.f32.mrf.mxu1 }
  0xf4   : > { %v2719_v44 = vadd.f32 %v2718_v20, %v5921_v21  ;;  %v3039_v6 = vadd.f32 %v3038_v1, %v2806_v37  ;;  %1466 = vst [vmem:[#allocation2 + $0x68] sm:$0xf] %v1402_v35  ;;  %v6068_v21 = vld [vmem:[#allocation2 + $0x58] sm:$0xff]  ;;  %vm1012_vm10 = vcmp.ge.s32.totalorder %v644_v29, 2 }
  0xf5   : > { %1467 = vst [vmem:[#allocation2 + $0x6c] sm:$0xf] %v1403_v5  ;;  %vm1108_vm11 = vmpackc.low %vm1012_vm10, %vm1012_vm10 }
  0xf6   : > { %v6066_v54 = vadd.f32 %v3127_v41, %v3039_v6  ;;  %v1140_v61 = vsel %vm1108_vm11, 65537, %v6569_v46  ;;  %v5098_v41 = vunpack.c.l.bf16 %v5277_v32  ;;  %v5099_v6 = vunpack.c.h.bf16 %v5277_v32 }
  0xf7   : > { %v1172_v2 = vunpack.c.l.b16 %v1140_v61 }
  0xf8   : > { %6570 = vst [vmem:[#allocation17_spill] sm:$0xff] %v6066_v54  ;;  %v3132_v22 = vpop.f32.mrf.mxu0  ;;  %v466_v54 = vadd.s32 208, %v5722_v25 }
  0xf9   : > { %v2807_v20 = vpop.f32.mrf.mxu2  ;;  %v4240_v5 = vunpack.i.l.s16 %v1172_v2 }
  0xfa   : > { %v2808_v13 = vadd.f32 %v2807_v20, %v2719_v44  ;;  %v3040_v37 = vpop.f32.mrf.mxu3  ;;  %v5347_v44 = vld [vmem:[%s6542_s1] ss:$0 sm:$0xff] }
  0xfb   : > { %v2721_v14 = vpop.f32.mrf.mxu1  ;;  %3171 = vmatmul.bf16.gmra.mxu0 %v6068_v21  ;;  %v335_v39 = vmul.f32 %v5347_v44, %v5098_v41  ;;  %v336_v29 = vmul.f32 %v5347_v44, %v5099_v6  ;;  %vm1284_vm12 = vcmp.ne.s32.totalorder %v4240_v5, %v5761_v62 }
  0xfc   : > { %v2722_v1 = vadd.f32 %v2721_v14, %v5938_v40  ;;  %v3041_v35 = vadd.f32 %v3040_v37, %v2808_v13  ;;  %v960_v40 = vrot.slane %v5682_v38, 7  ;;  %vm1286_vm13 = vmpackc.low %vm5768_vm6, %vm1284_vm12 }
  0xfe   : > { %2760 = vmatmul.bf16.gmra.mxu1 %v5808_v43  ;;  %2849 = vmatmul.bf16.gmra.mxu2 %v5670_v30  ;;  %v6080_v20 = vadd.f32 %v3129_v24, %v3041_v35  ;;  %v5348_v43 = vld [vmem:[%s6543_s2] ss:$0 sm:$0xff]  ;;  %v961_v37 = vsel %vm936_vm4, %v958_v59, %v960_v40 }
  0xff   : > { %3082 = vmatmul.bf16.gmra.mxu3 %v6004_v36  ;;  %v371_v13 = vadd.f32 %v5348_v43, %v335_v39  ;;  %v372_v30 = vadd.f32 %v5348_v43, %v336_v29  ;;  %v1320_v32 = vsel %vm1286_vm13, %v961_v37, 0 }
 0x100   : > { %6571 = vst [vmem:[#allocation18_spill] sm:$0xff] %v6080_v20  ;;  %v3134_v61 = vpop.f32.mrf.mxu0  ;;  %v1372_v6 = vunpack.c.l.b16 %v1320_v32  ;;  %v1373_v39 = vunpack.c.h.b16 %v1320_v32 }
 0x101   : > { %v2810_v14 = vpop.f32.mrf.mxu2  ;;  %v6090_v36 = vmax.f32 %v371_v13, 0.0  ;;  %v6092_v41 = vmax.f32 %v372_v30, 0.0  ;;  %v6100_v13 = vld [vmem:[#allocation2 + $0x60] sm:$0xff] }
 0x102   : > { %v2811_v24 = vadd.f32 %v2810_v14, %v2722_v1  ;;  %v3043_v2 = vpop.f32.mrf.mxu3  ;;  %v1404_v20 = vpack.c.b16 %v1372_v6, %v1372_v6  ;;  %v1405_v38 = vpack.c.b16 %v1373_v39, %v1373_v39  ;;  %v658_v1 = vand.u32 15, %v466_v54  ;;  %v5278_v6 = vld [vmem:[%s5436_s29 + $0x78] sm:$0xff]  }
 0x103   : > { %v2723_v35 = vpop.f32.mrf.mxu1  ;;  %v5177_v59 = vpack.c.bf16 %v6092_v41, %v6090_v36 }
 0x104   : > { %v2724_v5 = vadd.f32 %v2723_v35, %v5956_v7  ;;  %v3044_v29 = vadd.f32 %v3043_v2, %v2811_v24  ;;  %1468 = vst [vmem:[#allocation2 + $0x70] sm:$0xf] %v1404_v20  ;;  %vm1014_vm14 = vcmp.ge.s32.totalorder %v658_v1, 2  ;;  %v5103_v20 = vunpack.c.h.bf16 %v5278_v6 }
 0x105   : > { %5293 = vst [vmem:[#allocation2 + $0x120] sm:$0xff] %v5177_v59   ;;  %vm1110_vm15 = vmpackc.low %vm1014_vm14, %vm1014_vm14  ;;  %v962_v59 = vrot.slane %v5758_v56, 7 }
 0x106   : > { %v6098_v37 = vadd.f32 %v3132_v22, %v3044_v29  ;;  %1469 = vst [vmem:[#allocation2 + $0x74] sm:$0xf] %v1405_v38  ;;  %v1142_v2 = vsel %vm1110_vm15, 65537, %v6569_v46  ;;  %v5102_v22 = vunpack.c.l.bf16 %v5278_v6  ;;  %vm6208_vm15 = vcmp.ne.s32.totalorder %v5754_v52, %v5761_v62 }
 0x107   : > { %v1174_v39 = vunpack.c.l.b16 %v1142_v2 }
 0x108   : > { %v3137_v30 = vpop.f32.mrf.mxu0  ;;  %v337_v29 = vmul.f32 %v5347_v44, %v5102_v22 }
 0x109   : > { %v2812_v7 = vpop.f32.mrf.mxu2  ;;  %v4242_v38 = vunpack.i.l.s16 %v1174_v39 }
 0x10a   : > { %v2813_v14 = vadd.f32 %v2812_v7, %v2724_v5  ;;  %v3045_v32 = vpop.f32.mrf.mxu3  ;;  %v338_v5 = vmul.f32 %v5347_v44, %v5103_v20  ;;  %v5025_v7 = vld [vmem:[%s6544_s3 + $0x1c8] sm:$0xff]  ;;  %v963_v44 = vsel %vm936_vm4, %v960_v40, %v962_v59 }
 0x10b   : > { %v2726_v24 = vpop.f32.mrf.mxu1  ;;  %3176 = vmatmul.bf16.gmra.mxu0 %v6100_v13  ;;  %vm1291_vm0 = vcmp.ne.s32.totalorder %v4242_v38, %v5761_v62  ;;  %3744 = vmatpush.bf16.msra.mxu3 %v5025_v7 }
 0x10c   : > { %v2727_v35 = vadd.f32 %v2726_v24, %v5967_v10  ;;  %v3046_v54 = vadd.f32 %v3045_v32, %v2813_v14  ;;  %v5017_v10 = vld [vmem:[%s6544_s3 + $0x188] sm:$0xff]  ;;  %vm1293_vm1 = vmpackc.low %vm5768_vm6, %vm1291_vm0  ;;  %v435_v14 = vpack.c.bf16 %v6090_v36, %v6090_v36  ;;  %v436_v32 = vpack.c.bf16 %v6092_v41, %v6092_v41 }
 0x10d   : > { %3655 = vmatpush.bf16.msra.mxu2 %v5017_v10  ;;  %v1321_v24 = vsel %vm1293_vm1, %v963_v44, 0  ;;  %v4945_v36 = vld [vmem:[%s6544_s3 + $0x88] sm:$0xff]  ;;  %vm1517_vm0 = vcmask 1046528  }
 0x10e   : > { %2765 = vmatmul.bf16.gmra.mxu1 %v6043_v19  ;;  %2854 = vmatmul.bf16.gmra.mxu2 %v5763_v0  ;;  %v6109_v1 = vadd.f32 %v3134_v61, %v3046_v54  ;;  %v373_v19 = vadd.f32 %v5348_v43, %v337_v29  ;;  %v374_v0 = vadd.f32 %v5348_v43, %v338_v5  ;;  %v1374_v40 = vunpack.c.l.b16 %v1321_v24  ;;  %v5033_v41 = vld [vmem:[%s6544_s3 + $0x208] sm:$0xff] }
 0x10f   : > { %3087 = vmatmul.bf16.gmra.mxu3 %v6033_v34  ;;  %v1375_v20 = vunpack.c.h.b16 %v1321_v24  ;;  %v916_v7 = vunpack.c.l.b16 %v435_v14  ;;  %3213 = vmatpush.bf16.msra.mxu1 %v4945_v36  ;;  %v6138_v44 = vld [vmem:[#allocation2 + $0x68] sm:$0xff] }
 0x110   : > { %v3139_v61 = vpop.f32.mrf.mxu0  ;;  %v405_v39 = vmax.f32 %v373_v19, 0.0  ;;  %v406_v54 = vmax.f32 %v374_v0, 0.0  ;;  %v1406_v5 = vpack.c.b16 %v1374_v40, %v1374_v40  ;;  %v917_v19 = vunpack.c.l.b16 %v436_v32  ;;  %3833 = vmatpush.bf16.msra.mxu0 %v5033_v41 }
 0x111   : > { %v2815_v34 = vpop.f32.mrf.mxu2  ;;  %v1407_v10 = vpack.c.b16 %v1375_v20, %v1375_v20 }
 0x112   : > { %v2816_v2 = vadd.f32 %v2815_v34, %v2727_v35  ;;  %v3048_v43 = vpop.f32.mrf.mxu3  ;;  %v5182_v29 = vpack.c.bf16 %v406_v54, %v405_v39  ;;  %v468_v35 = vadd.s32 224, %v5722_v25  ;;  %1470 = vst [vmem:[#allocation2 + $0x78] sm:$0xf] %v1406_v5  ;;  %v6140_v40 = vpack.c.b16 %v917_v19, %v916_v7 }
 0x113   : > { %v2728_v6 = vpop.f32.mrf.mxu1  ;;  %1471 = vst [vmem:[#allocation2 + $0x7c] sm:$0xf] %v1407_v10 }
 0x114   : > { %v2729_v22 = vadd.f32 %v2728_v6, %v5991_v4  ;;  %v3049_v38 = vadd.f32 %v3048_v43, %v2816_v2  ;;  %5294 = vst [vmem:[#allocation2 + $0x128] sm:$0xff] %v5182_v29   ;;  %v672_v4 = vand.u32 15, %v468_v35  ;;  %v964_v41 = vrot.slane %v6140_v40, 7  ;;  %3834 = vmatpush.bf16.msra.mxu0 %v5032_v3 }
 0x115   : > { %v437_v35 = vpack.c.bf16 %v405_v39, %v405_v39  ;;  %v6160_v39 = vld [vmem:[#allocation2 + $0x70] sm:$0xff] }
 0x116   : > { %v6136_v0 = vadd.f32 %v3137_v30, %v3049_v38  ;;  %vm1016_vm2 = vcmp.ge.s32.totalorder %v672_v4, 2  ;;  %v5349_v38 = vld [vmem:[#allocation2 + $0x108] sm:$0xff] }
 0x117   : > { %vm1112_vm3 = vmpackc.low %vm1016_vm2, %vm1016_vm2 }
 0x118   : > { %v3142_v24 = vpop.f32.mrf.mxu0  ;;  %v1144_v14 = vsel %vm1112_vm3, 65537, %v6569_v46 }
 0x119   : > { %v2817_v34 = vpop.f32.mrf.mxu2  ;;  %v1176_v20 = vunpack.c.l.b16 %v1144_v14  ;;  %v918_v14 = vunpack.c.l.b16 %v437_v35 }
 0x11a   : > { %v2818_v2 = vadd.f32 %v2817_v34, %v2729_v22  ;;  %v3050_v43 = vpop.f32.mrf.mxu3 }
 0x11b   : > { %v2731_v6 = vpop.f32.mrf.mxu1  ;;  %3181 = vmatmul.bf16.gmra.mxu0 %v6138_v44  ;;  %v4244_v36 = vunpack.i.l.s16 %v1176_v20 }
 0x11c   : > { %v2732_v32 = vadd.f32 %v2731_v6, %v6008_v60  ;;  %v3051_v30 = vadd.f32 %v3050_v43, %v2818_v2  ;;  %v965_v60 = vsel %vm936_vm4, %v962_v59, %v964_v41  ;;  %v470_v59 = vadd.s32 240, %v5722_v25 }
 0x11d   : > { %vm1298_vm5 = vcmp.ne.s32.totalorder %v4244_v36, %v5761_v62 }
 0x11e   : > { %2770 = vmatmul.bf16.gmra.mxu1 %v5349_v38  ;;  %2859 = vmatmul.bf16.gmra.mxu2 %v5811_v49  ;;  %v6147_v22 = vadd.f32 %v3139_v61, %v3051_v30  ;;  %vm1300_vm7 = vmpackc.low %vm5768_vm6, %vm1298_vm5  ;;  %v438_v61 = vpack.c.bf16 %v406_v54, %v406_v54  ;;  %v686_v30 = vand.u32 15, %v470_v59 }
 0x11f   : > { %3092 = vmatmul.bf16.gmra.mxu3 %v6068_v21  ;;  %v1322_v10 = vsel %vm1300_vm7, %v965_v60, 0 }
 0x120   : > { %v3144_v5 = vpop.f32.mrf.mxu0  ;;  %v1376_v4 = vunpack.c.l.b16 %v1322_v10  ;;  %v1377_v34 = vunpack.c.h.b16 %v1322_v10  ;;  %v919_v20 = vunpack.c.l.b16 %v438_v61  ;;  %vm1018_vm8 = vcmp.ge.s32.totalorder %v686_v30, 2 }
 0x121   : > { %v2820_v29 = vpop.f32.mrf.mxu2  ;;  %vm1114_vm9 = vmpackc.low %vm1018_vm8, %vm1018_vm8 }
 0x122   : > { %v2821_v49 = vadd.f32 %v2820_v29, %v2732_v32  ;;  %v3053_v7 = vpop.f32.mrf.mxu3  ;;  %v1408_v43 = vpack.c.b16 %v1376_v4, %v1376_v4  ;;  %v1409_v6 = vpack.c.b16 %v1377_v34, %v1377_v34  ;;  %v6162_v29 = vld [vmem:[#allocation2 + $0x120] sm:$0xff]  ;;  %v6164_v10 = vpack.c.b16 %v919_v20, %v918_v14 }
 0x123   : > { %v2733_v19 = vpop.f32.mrf.mxu1  ;;  %v1146_v35 = vsel %vm1114_vm9, 65537, %v6569_v46  ;;  %v5016_v34 = vld [vmem:[%s6544_s3 + $0x180] sm:$0xff] }
 0x124   : > { %v2734_v21 = vadd.f32 %v2733_v19, %v6026_v28  ;;  %v3054_v2 = vadd.f32 %v3053_v7, %v2821_v49  ;;  %1472 = vst [vmem:[#allocation2 + $0x80] sm:$0xf] %v1408_v43  ;;  %v1178_v49 = vunpack.c.l.b16 %v1146_v35  ;;  %v966_v61 = vrot.slane %v6164_v10, 7  ;;  %3656 = vmatpush.bf16.msra.mxu2 %v5016_v34 }
 0x125   : > { %1473 = vst [vmem:[#allocation2 + $0x84] sm:$0xf] %v1409_v6  ;;  %v445_v35 = vadd.s32 40, %v5722_v25 }
 0x126   : > { %v6158_v38 = vadd.f32 %v3142_v24, %v3054_v2  ;;  %v5350_v24 = vld [vmem:[#allocation2 + $0x110] sm:$0xff]  ;;  %v4246_v19 = vunpack.i.l.s16 %v1178_v49  ;;  %v967_v43 = vsel %vm936_vm4, %v964_v41, %v966_v61  ;;  %v6195_v61 = vld [vmem:[#allocation2 + $0x78] sm:$0xff] }
 0x128   : > { %v3147_v32 = vpop.f32.mrf.mxu0  ;;  %vm1305_vm10 = vcmp.ne.s32.totalorder %v4246_v19, %v5761_v62 }
 0x129   : > { %v2822_v54 = vpop.f32.mrf.mxu2  ;;  %vm1307_vm11 = vmpackc.low %vm5768_vm6, %vm1305_vm10 }
 0x12a   : > { %v2823_v36 = vadd.f32 %v2822_v54, %v2734_v21  ;;  %v3055_v28 = vpop.f32.mrf.mxu3  ;;  %v5024_v21 = vld [vmem:[%s6544_s3 + $0x1c0] sm:$0xff] }
 0x12b   : > { %v2736_v60 = vpop.f32.mrf.mxu1  ;;  %3186 = vmatmul.bf16.gmra.mxu0 %v6160_v39  ;;  %3745 = vmatpush.bf16.msra.mxu3 %v5024_v21 }
 0x12c   : > { %v3056_v7 = vadd.f32 %v3055_v28, %v2823_v36  ;;  %v2737_v2 = vadd.f32 %v2736_v60, %v5901_v9  ;;  %v4944_v9 = vld [vmem:[%s6544_s3 + $0x80] sm:$0xff]  ;;  %v441_v60 = vadd.s32 8, %v5722_v25 }
 0x12d   : > { %3214 = vmatpush.bf16.msra.mxu1 %v4944_v9 }
 0x12e   : > { %2775 = vmatmul.bf16.gmra.mxu1 %v5350_v24  ;;  %2864 = vmatmul.bf16.gmra.mxu2 %v6162_v29  ;;  %v6170_v4 = vadd.f32 %v3144_v5, %v3056_v7  ;;  %v483_v49 = vand.u32 15, %v441_v60  ;;  %v511_v24 = vand.u32 15, %v445_v35 }
 0x12f   : > { %3097 = vmatmul.bf16.gmra.mxu3 %v6100_v13  ;;  %v1323_v13 = vsel %vm1307_vm11, %v967_v43, 0 }
 0x130   : > { %v3149_v6 = vpop.f32.mrf.mxu0  ;;  %v1378_v30 = vunpack.c.l.b16 %v1323_v13  ;;  %v1379_v54 = vunpack.c.h.b16 %v1323_v13  ;;  %vm1569_vm6 = vcmp.lt.s32.totalorder %v483_v49, 14  ;;  %vm1573_vm13 = vcmp.lt.s32.totalorder %v511_v24, 14  ;;  %v6197_v13 = vld [vmem:[#allocation2 + $0x128] sm:$0xff] }
 0x131   : > { %v2825_v5 = vpop.f32.mrf.mxu2  ;;  %vm1665_vm12 = vmpackc.low %vm1569_vm6, %vm1569_vm6 }
 0x132   : > { %v2826_v59 = vadd.f32 %v2825_v5, %v2737_v2  ;;  %v3058_v14 = vpop.f32.mrf.mxu3  ;;  %v1410_v41 = vpack.c.b16 %v1378_v30, %v1378_v30  ;;  %v1411_v28 = vpack.c.b16 %v1379_v54, %v1379_v54  ;;  %vm1669_vm14 = vmpackc.low %vm1573_vm13, %vm1573_vm13  ;;  %v1518_v30 = vrot.slane %v5730_v31, 1 }
 0x133   : > { %v2738_v20 = vpop.f32.mrf.mxu1  ;;  %v1519_v54 = vrot.slane %v5745_v45, 1 }
 0x134   : > { %v3059_v36 = vadd.f32 %v3058_v14, %v2826_v59  ;;  %1474 = vst [vmem:[#allocation2 + $0x88] sm:$0xf] %v1410_v41  ;;  %v2739_v19 = vadd.f32 %v2738_v20, %v5925_v55  ;;  %v1697_v59 = vsel %vm1665_vm12, 65537, %v6569_v46  ;;  %v1523_v14 = vrot.slane %v5546_v23, 1  ;;  %v5351_v41 = vld [vmem:[#allocation2 + $0x118] sm:$0xff] }
 0x135   : > { %1475 = vst [vmem:[#allocation2 + $0x8c] sm:$0xf] %v1411_v28  ;;  %v1729_v55 = vunpack.c.l.b16 %v1697_v59  ;;  %v1701_v20 = vsel %vm1669_vm14, 65537, %v6569_v46  ;;  %v1520_v52 = vsel %vm1517_vm0, %v1518_v30, %v1519_v54 }
 0x136   : > { %v6192_v7 = vadd.f32 %v3147_v32, %v3059_v36  ;;  %v1521_v32 = vrot.slane %v5806_v42, 1  ;;  %v1733_v9 = vunpack.c.l.b16 %v1701_v20 }
 0x137   : > { %v4249_v28 = vunpack.i.l.s16 %v1729_v55 }
 0x138   : > { %v3152_v21 = vpop.f32.mrf.mxu0  ;;  %v4253_v60 = vunpack.i.l.s16 %v1733_v9  ;;  %v1524_v62 = vsel %vm1517_vm0, %v1521_v32, %v1523_v14 }
 0x139   : > { %v2827_v34 = vpop.f32.mrf.mxu2  ;;  %vm1781_vm1 = vcmp.ne.s32.totalorder %v4249_v28, %v5748_v47  ;;  %v447_v28 = vadd.s32 56, %v5722_v25 }
 0x13a   : > { %v2828_v2 = vadd.f32 %v2827_v34, %v2739_v19  ;;  %v3060_v43 = vpop.f32.mrf.mxu3  ;;  %vm1782_vm2 = vmpackc.low %vm1781_vm1, %vm6208_vm15  ;;  %vm1795_vm3 = vcmp.ne.s32.totalorder %v4253_v60, %v5748_v47 }
 0x13b   : > { %v2741_v5 = vpop.f32.mrf.mxu1  ;;  %3191 = vmatmul.bf16.gmra.mxu0 %v6195_v61  ;;  %v1888_v49 = vsel %vm1782_vm2, %v1520_v52, 0  ;;  %vm1796_vm5 = vmpackc.low %vm1795_vm3, %vm6208_vm15 }
 0x13c   : > { %v3061_v36 = vadd.f32 %v3060_v43, %v2828_v2  ;;  %v2742_v31 = vadd.f32 %v2741_v5, %v5942_v50  ;;  %v1929_v34 = vunpack.c.l.b16 %v1888_v49  ;;  %v1930_v2 = vunpack.c.h.b16 %v1888_v49 }
 0x13d   : > { %v1890_v43 = vsel %vm1796_vm5, %v1524_v62, 0  ;;  %v4924_v62 = vld [vmem:[#allocation2 + $0x80] sm:$0xff] }
 0x13e   : > { %2780 = vmatmul.bf16.gmra.mxu1 %v5351_v41  ;;  %2869 = vmatmul.bf16.gmra.mxu2 %v6197_v13  ;;  %v6213_v35 = vadd.f32 %v3149_v6, %v3061_v36  ;;  %v1933_v5 = vunpack.c.l.b16 %v1890_v43  ;;  %v1934_v59 = vunpack.c.h.b16 %v1890_v43  ;;  %v1961_v20 = vpack.c.b16 %v1929_v34, %v1929_v34  ;;  %v4970_v43 = vld [vmem:[#allocation2 + $0x130] sm:$0xff] }
 0x13f   : > { %3102 = vmatmul.bf16.gmra.mxu3 %v6138_v44  ;;  %v1962_v30 = vpack.c.b16 %v1930_v2, %v1930_v2  ;;  %v443_v36 = vadd.s32 24, %v5722_v25 }
 0x140   : > { %v3154_v6 = vpop.f32.mrf.mxu0  ;;  %v1965_v9 = vpack.c.b16 %v1933_v5, %v1933_v5  ;;  %v1966_v41 = vpack.c.b16 %v1934_v59, %v1934_v59  ;;  %2025 = vst [vmem:[#allocation2 + $0x150] sm:$0xf] %v1961_v20  ;;  %v1525_v20 = vrot.slane %v5635_v51, 1 }
 0x141   : > { %v2830_v44 = vpop.f32.mrf.mxu2  ;;  %v497_v60 = vand.u32 15, %v443_v36  ;;  %2026 = vst [vmem:[#allocation2 + $0x154] sm:$0xf] %v1962_v30 }
 0x142   : > { %v2831_v50 = vadd.f32 %v2830_v44, %v2742_v31  ;;  %v3063_v24 = vpop.f32.mrf.mxu3  ;;  %v525_v31 = vand.u32 15, %v447_v28  ;;  %2029 = vst [vmem:[#allocation2 + $0x160] sm:$0xf] %v1965_v9  ;;  %v1526_v51 = vsel %vm1517_vm0, %v1523_v14, %v1525_v20  ;;  %v449_v14 = vadd.s32 72, %v5722_v25 }
 0x143   : > { %v2743_v19 = vpop.f32.mrf.mxu1  ;;  %vm1571_vm7 = vcmp.lt.s32.totalorder %v497_v60, 14  ;;  %2030 = vst [vmem:[#allocation2 + $0x164] sm:$0xf] %v1966_v41  ;;  %v1522_v41 = vsel %vm1517_vm0, %v1519_v54, %v1521_v32 }
 0x144   : > { %v3064_v55 = vadd.f32 %v3063_v24, %v2831_v50  ;;  %v2744_v44 = vadd.f32 %v2743_v19, %v5960_v12  ;;  %vm1667_vm8 = vmpackc.low %vm1571_vm7, %vm1571_vm7  ;;  %vm1575_vm9 = vcmp.lt.s32.totalorder %v525_v31, 14 }
 0x145   : > { %v1699_v5 = vsel %vm1667_vm8, 65537, %v6569_v46  ;;  %vm1671_vm10 = vmpackc.low %vm1575_vm9, %vm1575_vm9 }
 0x146   : > { %v6233_v52 = vadd.f32 %v3152_v21, %v3064_v55  ;;  %v1731_v21 = vunpack.c.l.b16 %v1699_v5  ;;  %v1703_v59 = vsel %vm1671_vm10, 65537, %v6569_v46  ;;  %v4925_v5 = vld [vmem:[#allocation2 + $0x88] sm:$0xff] }
 0x147   : > { %v1735_v12 = vunpack.c.l.b16 %v1703_v59 }
 0x148   : > { %v3157_v50 = vpop.f32.mrf.mxu0  ;;  %v4251_v19 = vunpack.i.l.s16 %v1731_v21 }
 0x149   : > { %v2832_v49 = vpop.f32.mrf.mxu2  ;;  %v4255_v30 = vunpack.i.l.s16 %v1735_v12 }
 0x14a   : > { %v2833_v24 = vadd.f32 %v2832_v49, %v2744_v44  ;;  %v3065_v34 = vpop.f32.mrf.mxu3  ;;  %vm1788_vm11 = vcmp.ne.s32.totalorder %v4251_v19, %v5748_v47 }
 0x14b   : > { %v2746_v2 = vpop.f32.mrf.mxu1  ;;  %3196 = vmatmul.bf16.gmra.mxu0 %v4924_v62  ;;  %vm1789_vm6 = vmpackc.low %vm1788_vm11, %vm6208_vm15  ;;  %vm1802_vm12 = vcmp.ne.s32.totalorder %v4255_v30, %v5748_v47  ;;  %v4971_v30 = vld [vmem:[#allocation2 + $0x138] sm:$0xff] }
 0x14c   : > { %v3066_v55 = vadd.f32 %v3065_v34, %v2833_v24  ;;  %v2747_v9 = vadd.f32 %v2746_v2, %v5971_v27  ;;  %vm1803_vm13 = vmpackc.low %vm1802_vm12, %vm6208_vm15  ;;  %v539_v34 = vand.u32 15, %v449_v14 }
 0x14d   : > { %v1891_v54 = vsel %vm1803_vm13, %v1526_v51, 0 }
 0x14e   : > { %2785 = vmatmul.bf16.gmra.mxu1 %v6162_v29  ;;  %2874 = vmatmul.bf16.gmra.mxu2 %v4970_v43  ;;  %v6240_v36 = vadd.f32 %v3154_v6, %v3066_v55  ;;  %v1889_v6 = vsel %vm1789_vm6, %v1522_v41, 0  ;;  %v1935_v60 = vunpack.c.l.b16 %v1891_v54  ;;  %v1936_v31 = vunpack.c.h.b16 %v1891_v54 }
 0x14f   : > { %3107 = vmatmul.bf16.gmra.mxu3 %v6160_v39  ;;  %v1931_v28 = vunpack.c.l.b16 %v1889_v6  ;;  %v1932_v32 = vunpack.c.h.b16 %v1889_v6  ;;  %vm1577_vm14 = vcmp.lt.s32.totalorder %v539_v34, 14 }
 0x150   : > { %v3159_v29 = vpop.f32.mrf.mxu0  ;;  %v1967_v49 = vpack.c.b16 %v1935_v60, %v1935_v60  ;;  %v1968_v24 = vpack.c.b16 %v1936_v31, %v1936_v31  ;;  %vm1673_vm1 = vmpackc.low %vm1577_vm14, %vm1577_vm14 }
 0x151   : > { %v2835_v39 = vpop.f32.mrf.mxu2  ;;  %v1963_v23 = vpack.c.b16 %v1931_v28, %v1931_v28  ;;  %v1964_v62 = vpack.c.b16 %v1932_v32, %v1932_v32 }
 0x152   : > { %v2836_v42 = vadd.f32 %v2835_v39, %v2747_v9  ;;  %v3068_v27 = vpop.f32.mrf.mxu3  ;;  %2031 = vst [vmem:[#allocation2 + $0x168] sm:$0xf] %v1967_v49  ;;  %v1705_v9 = vsel %vm1673_vm1, 65537, %v6569_v46 }
 0x153   : > { %v2748_v45 = vpop.f32.mrf.mxu1  ;;  %2027 = vst [vmem:[#allocation2 + $0x158] sm:$0xf] %v1963_v23  ;;  %v1737_v41 = vunpack.c.l.b16 %v1705_v9 }
 0x154   : > { %v3069_v44 = vadd.f32 %v3068_v27, %v2836_v42  ;;  %2028 = vst [vmem:[#allocation2 + $0x15c] sm:$0xf] %v1964_v62  ;;  %v2749_v43 = vadd.f32 %v2748_v45, %v5995_v16  ;;  %v1527_v16 = vrot.slane %v5724_v26, 1  ;;  %v6277_v62 = vld [vmem:[#allocation2 + $0x160] sm:$0xff] }
 0x155   : > { %2032 = vst [vmem:[#allocation2 + $0x16c] sm:$0xf] %v1968_v24 }
 0x156   : > { %v6259_v2 = vadd.f32 %v3157_v50, %v3069_v44  ;;  %v4257_v50 = vunpack.i.l.s16 %v1737_v41  ;;  %v1528_v42 = vsel %vm1517_vm0, %v1525_v20, %v1527_v16  ;;  %v451_v44 = vadd.s32 88, %v5722_v25 }
 0x158   : > { %v3162_v59 = vpop.f32.mrf.mxu0  ;;  %vm1809_vm2 = vcmp.ne.s32.totalorder %v4257_v50, %v5748_v47 }
 0x159   : > { %v2837_v21 = vpop.f32.mrf.mxu2  ;;  %vm1810_vm3 = vmpackc.low %vm1809_vm2, %vm6208_vm15 }
 0x15a   : > { %v2838_v55 = vadd.f32 %v2837_v21, %v2749_v43  ;;  %v3070_v12 = vpop.f32.mrf.mxu3 }
 0x15b   : > { %v2751_v19 = vpop.f32.mrf.mxu1  ;;  %3201 = vmatmul.bf16.gmra.mxu0 %v4925_v5  ;;  %v4996_v5 = vld [vmem:[#allocation2 + $0x140] sm:$0xff] }
 0x15c   : > { %v3071_v51 = vadd.f32 %v3070_v12, %v2838_v55  ;;  %v2752_v6 = vadd.f32 %v2751_v19, %v6012_v8  ;;  %v553_v8 = vand.u32 15, %v451_v44  ;;  %v6280_v55 = vld [vmem:[#allocation2 + $0x150] sm:$0xff]  ;;  %v5352_v19 = vld [vmem:[#allocation2 + $0x20] sm:$0xff] }
 0x15e   : > { %2790 = vmatmul.bf16.gmra.mxu1 %v6197_v13  ;;  %2879 = vmatmul.bf16.gmra.mxu2 %v4971_v30  ;;  %v6265_v39 = vadd.f32 %v3159_v29, %v3071_v51  ;;  %v1892_v13 = vsel %vm1810_vm3, %v1528_v42, 0  ;;  %vm1579_vm5 = vcmp.lt.s32.totalorder %v553_v8, 14  ;;  %v1529_v30 = vrot.slane %v5518_v57, 1 }
 0x15f   : > { %3112 = vmatmul.bf16.gmra.mxu3 %v6195_v61  ;;  %v1937_v26 = vunpack.c.l.b16 %v1892_v13  ;;  %v1938_v29 = vunpack.c.h.b16 %v1892_v13  ;;  %vm1675_vm7 = vmpackc.low %vm1579_vm5, %vm1579_vm5 }
 0x160   : > { %v3164_v45 = vpop.f32.mrf.mxu0  ;;  %v1707_v21 = vsel %vm1675_vm7, 65537, %v6569_v46  ;;  %v1530_v51 = vsel %vm1517_vm0, %v1527_v16, %v1529_v30 }
 0x161   : > { %v2840_v27 = vpop.f32.mrf.mxu2  ;;  %v1969_v31 = vpack.c.b16 %v1937_v26, %v1937_v26  ;;  %v1970_v61 = vpack.c.b16 %v1938_v29, %v1938_v29  ;;  %v1739_v12 = vunpack.c.l.b16 %v1707_v21  ;;  %v453_v29 = vadd.s32 104, %v5722_v25  ;;  %v5353_v21 = vld [vmem:[#allocation2 + $0x28] sm:$0xff] }
 0x162   : > { %v2841_v28 = vadd.f32 %v2840_v27, %v2752_v6  ;;  %v3073_v32 = vpop.f32.mrf.mxu3 }
 0x163   : > { %v2753_v54 = vpop.f32.mrf.mxu1  ;;  %2033 = vst [vmem:[#allocation2 + $0x170] sm:$0xf] %v1969_v31  ;;  %v6296_v31 = vld [vmem:[#allocation2 + $0x168] sm:$0xff] }
 0x164   : > { %v3074_v60 = vadd.f32 %v3073_v32, %v2841_v28  ;;  %2034 = vst [vmem:[#allocation2 + $0x174] sm:$0xf] %v1970_v61  ;;  %v2754_v20 = vadd.f32 %v2753_v54, %v6030_v18  ;;  %v4259_v18 = vunpack.i.l.s16 %v1739_v12  ;;  %v1531_v12 = vrot.slane %v5576_v58, 1 }
 0x166   : > { %v6274_v23 = vadd.f32 %v3162_v59, %v3074_v60  ;;  %vm1816_vm8 = vcmp.ne.s32.totalorder %v4259_v18, %v5748_v47  ;;  %v1532_v18 = vsel %vm1517_vm0, %v1529_v30, %v1531_v12 }
 0x167   : > { %vm1817_vm9 = vmpackc.low %vm1816_vm8, %vm6208_vm15 }
 0x168   : > { %v3167_v49 = vpop.f32.mrf.mxu0  ;;  %v1893_v42 = vsel %vm1817_vm9, %v1530_v51, 0 }
 0x169   : > { %v2842_v14 = vpop.f32.mrf.mxu2  ;;  %v1939_v57 = vunpack.c.l.b16 %v1893_v42 }
 0x16a   : > { %v2843_v24 = vadd.f32 %v2842_v14, %v2754_v20  ;;  %v3075_v34 = vpop.f32.mrf.mxu3 }
 0x16b   : > { %v2756_v43 = vpop.f32.mrf.mxu1  ;;  %3835 = vmatmul.bf16.vlgmr.msra.gmra.mxu0 %v6277_v62  ;;  %v1971_v54 = vpack.c.b16 %v1939_v57, %v1939_v57 }
 0x16c   : > { %v3076_v59 = vadd.f32 %v3075_v34, %v2843_v24  ;;  %v2757_v41 = vadd.f32 %v2756_v43, %v5919_v48  ;;  %v567_v48 = vand.u32 15, %v453_v29  ;;  %v4997_v24 = vld [vmem:[#allocation2 + $0x148] sm:$0xff]  ;;  %v6299_v43 = vld [vmem:[#allocation2 + $0x158] sm:$0xff] }
 0x16d   : > { %2035 = vst [vmem:[#allocation2 + $0x178] sm:$0xf] %v1971_v54 }
 0x16e   : > { %3215 = vmatmul.bf16.vlgmr.msra.gmra.mxu1 %v5352_v19  ;;  %3657 = vmatmul.bf16.vlgmr.msra.gmra.mxu2 %v4996_v5  ;;  %v6284_v9 = vadd.f32 %v3164_v45, %v3076_v59  ;;  %v1940_v45 = vunpack.c.h.b16 %v1893_v42  ;;  %vm1581_vm10 = vcmp.lt.s32.totalorder %v567_v48, 14 }
 0x16f   : > { %3746 = vmatmul.bf16.vlgmr.msra.gmra.mxu3 %v6280_v55  ;;  %vm1677_vm11 = vmpackc.low %vm1581_vm10, %vm1581_vm10 }
 0x170   : > { %v3169_v6 = vpop.f32.mrf.mxu0  ;;  %v1972_v26 = vpack.c.b16 %v1940_v45, %v1940_v45  ;;  %v1709_v34 = vsel %vm1677_vm11, 65537, %v6569_v46 }
 0x171   : > { %v2845_v50 = vpop.f32.mrf.mxu2  ;;  %v1741_v5 = vunpack.c.l.b16 %v1709_v34 }
 0x172   : > { %v2846_v27 = vadd.f32 %v2845_v50, %v2757_v41  ;;  %v3078_v13 = vpop.f32.mrf.mxu3  ;;  %2036 = vst [vmem:[#allocation2 + $0x17c] sm:$0xf] %v1972_v26  ;;  %v6315_v26 = vld [vmem:[#allocation2 + $0x170] sm:$0xff] }
 0x173   : > { %v2758_v28 = vpop.f32.mrf.mxu1 }
 0x174   : > { %v3079_v32 = vadd.f32 %v3078_v13, %v2846_v27  ;;  %v2759_v16 = vadd.f32 %v2758_v28, %v5936_v33  ;;  %v4261_v33 = vunpack.i.l.s16 %v1741_v5 }
 0x176   : > { %v6293_v60 = vadd.f32 %v3167_v49, %v3079_v32  ;;  %vm1823_vm6 = vcmp.ne.s32.totalorder %v4261_v33, %v5748_v47  ;;  %v455_v32 = vadd.s32 120, %v5722_v25 }
 0x177   : > { %vm1824_vm12 = vmpackc.low %vm1823_vm6, %vm6208_vm15 }
 0x178   : > { %v3172_v44 = vpop.f32.mrf.mxu0  ;;  %v1894_v50 = vsel %vm1824_vm12, %v1532_v18, 0 }
 0x179   : > { %v2847_v61 = vpop.f32.mrf.mxu2  ;;  %v1941_v58 = vunpack.c.l.b16 %v1894_v50 }
 0x17a   : > { %v2848_v8 = vadd.f32 %v2847_v61, %v2759_v16  ;;  %v3080_v20 = vpop.f32.mrf.mxu3 }
 0x17b   : > { %v2761_v14 = vpop.f32.mrf.mxu1  ;;  %3840 = vmatmul.bf16.gmra.mxu0 %v6296_v31  ;;  %v1973_v57 = vpack.c.b16 %v1941_v58, %v1941_v58  ;;  %v457_v58 = vadd.s32 136, %v5722_v25 }
 0x17c   : > { %v3081_v49 = vadd.f32 %v3080_v20, %v2848_v8  ;;  %v2762_v19 = vadd.f32 %v2761_v14, %v5954_v17  ;;  %v581_v17 = vand.u32 15, %v455_v32 }
 0x17d   : > { %2037 = vst [vmem:[#allocation2 + $0x180] sm:$0xf] %v1973_v57 }
 0x17e   : > { %3220 = vmatmul.bf16.gmra.mxu1 %v5353_v21  ;;  %3662 = vmatmul.bf16.gmra.mxu2 %v4997_v24  ;;  %v6303_v59 = vadd.f32 %v3169_v6, %v3081_v49  ;;  %v1942_v6 = vunpack.c.h.b16 %v1894_v50  ;;  %vm1583_vm13 = vcmp.lt.s32.totalorder %v581_v17, 14 }
 0x17f   : > { %3751 = vmatmul.bf16.gmra.mxu3 %v6299_v43  ;;  %vm1679_vm14 = vmpackc.low %vm1583_vm13, %vm1583_vm13 }
 0x180   : > { %v3174_v51 = vpop.f32.mrf.mxu0  ;;  %v1974_v45 = vpack.c.b16 %v1942_v6, %v1942_v6  ;;  %v1711_v20 = vsel %vm1679_vm14, 65537, %v6569_v46 }
 0x181   : > { %v2850_v41 = vpop.f32.mrf.mxu2  ;;  %v1743_v14 = vunpack.c.l.b16 %v1711_v20 }
 0x182   : > { %v2851_v42 = vadd.f32 %v2850_v41, %v2762_v19  ;;  %v3083_v27 = vpop.f32.mrf.mxu3  ;;  %2038 = vst [vmem:[#allocation2 + $0x184] sm:$0xf] %v1974_v45 }
 0x183   : > { %v2763_v13 = vpop.f32.mrf.mxu1  ;;  %v4263_v34 = vunpack.i.l.s16 %v1743_v14 }
 0x184   : > { %v3084_v28 = vadd.f32 %v3083_v27, %v2851_v42  ;;  %v2764_v30 = vadd.f32 %v2763_v13, %v5965_v15  ;;  %v1533_v15 = vrot.slane %v5648_v11, 1 }
 0x185   : > { %vm1830_vm1 = vcmp.ne.s32.totalorder %v4263_v34, %v5748_v47 }
 0x186   : > { %v6312_v54 = vadd.f32 %v3172_v44, %v3084_v28  ;;  %v5354_v44 = vld [vmem:[#allocation2 + $0x30] sm:$0xff]  ;;  %v1534_v21 = vsel %vm1517_vm0, %v1531_v12, %v1533_v15  ;;  %vm1831_vm2 = vmpackc.low %vm1830_vm1, %vm6208_vm15  ;;  %v6333_v28 = vld [vmem:[#allocation2 + $0x178] sm:$0xff] }
 0x187   : > { %v1895_v18 = vsel %vm1831_vm2, %v1534_v21, 0 }
 0x188   : > { %v3177_v48 = vpop.f32.mrf.mxu0  ;;  %v1943_v11 = vunpack.c.l.b16 %v1895_v18 }
 0x189   : > { %v2852_v29 = vpop.f32.mrf.mxu2 }
 0x18a   : > { %v2853_v16 = vadd.f32 %v2852_v29, %v2764_v30  ;;  %v3085_v61 = vpop.f32.mrf.mxu3  ;;  %v1975_v27 = vpack.c.b16 %v1943_v11, %v1943_v11 }
 0x18b   : > { %v2766_v8 = vpop.f32.mrf.mxu1  ;;  %3845 = vmatmul.bf16.gmra.mxu0 %v6315_v26 }
 0x18c   : > { %v3086_v24 = vadd.f32 %v3085_v61, %v2853_v16  ;;  %v2767_v49 = vadd.f32 %v2766_v8, %v5989_v63  ;;  %2039 = vst [vmem:[#allocation2 + $0x188] sm:$0xf] %v1975_v27  ;;  %v595_v63 = vand.u32 15, %v457_v58 }
 0x18e   : > { %3225 = vmatmul.bf16.gmra.mxu1 %v5354_v44  ;;  %3667 = vmatmul.bf16.gmra.mxu2 %v6280_v55  ;;  %v6321_v5 = vadd.f32 %v3174_v51, %v3086_v24  ;;  %v1944_v51 = vunpack.c.h.b16 %v1895_v18  ;;  %vm1585_vm3 = vcmp.lt.s32.totalorder %v595_v63, 14  ;;  %v6575_v24 = vld [vmem:[#allocation13_spill] sm:$0xff]  ;;  %v6351_v63 = vld [vmem:[#allocation2 + $0x180] sm:$0xff] }
 0x18f   : > { %3756 = vmatmul.bf16.gmra.mxu3 %v6277_v62  ;;  %vm1681_vm5 = vmpackc.low %vm1585_vm3, %vm1585_vm3 }
 0x190   : > { %v3179_v19 = vpop.f32.mrf.mxu0  ;;  %v1976_v13 = vpack.c.b16 %v1944_v51, %v1944_v51  ;;  %v1713_v29 = vsel %vm1681_vm5, 65537, %v6569_v46 }
 0x191   : > { %v2855_v33 = vpop.f32.mrf.mxu2  ;;  %v1745_v16 = vunpack.c.l.b16 %v1713_v29 }
 0x192   : > { %v2856_v41 = vadd.f32 %v2855_v33, %v2767_v49  ;;  %v3088_v55 = vpop.f32.mrf.mxu3  ;;  %2040 = vst [vmem:[#allocation2 + $0x18c] sm:$0xf] %v1976_v13 }
 0x193   : > { %v2768_v50 = vpop.f32.mrf.mxu1  ;;  %v4265_v8 = vunpack.i.l.s16 %v1745_v16 }
 0x194   : > { %v3089_v42 = vadd.f32 %v3088_v55, %v2856_v41  ;;  %v2769_v12 = vadd.f32 %v2768_v50, %v6006_v53  ;;  %v6574_v53 = vld [vmem:[#allocation6_spill] sm:$0xff] }
 0x195   : > { %v1535_v20 = vrot.slane %v6574_v53, 1  ;;  %vm1837_vm7 = vcmp.ne.s32.totalorder %v4265_v8, %v5748_v47  ;;  %v6577_v8 = vld [vmem:[#allocation3_spill] sm:$0xff] }
 0x196   : > { %v6330_v6 = vadd.f32 %v3177_v48, %v3089_v42  ;;  %v5355_v48 = vld [vmem:[#allocation2 + $0x38] sm:$0xff]  ;;  %vm1838_vm8 = vmpackc.low %vm1837_vm7, %vm6208_vm15  ;;  %v459_v42 = vadd.s32 152, %v5722_v25  ;;  %v1537_v53 = vrot.slane %v6577_v8, 1 }
 0x197   : > { %v1536_v34 = vsel %vm1517_vm0, %v1533_v15, %v1535_v20  ;;  %v6576_v15 = vld [vmem:[#allocation15_spill] sm:$0xff] }
 0x198   : > { %v3182_v45 = vpop.f32.mrf.mxu0  ;;  %v1896_v33 = vsel %vm1838_vm8, %v1536_v34, 0  ;;  %v609_v27 = vand.u32 15, %v459_v42  ;;  %v461_v42 = vadd.s32 168, %v5722_v25 }
 0x199   : > { %v2857_v57 = vpop.f32.mrf.mxu2  ;;  %v1945_v55 = vunpack.c.l.b16 %v1896_v33 }
 0x19a   : > { %v2858_v32 = vadd.f32 %v2857_v57, %v2769_v12  ;;  %v3090_v17 = vpop.f32.mrf.mxu3  ;;  %vm1587_vm9 = vcmp.lt.s32.totalorder %v609_v27, 14  ;;  %v623_v27 = vand.u32 15, %v461_v42 }
 0x19b   : > { %v2771_v30 = vpop.f32.mrf.mxu1  ;;  %3850 = vmatmul.bf16.gmra.mxu0 %v6333_v28  ;;  %v1977_v11 = vpack.c.b16 %v1945_v55, %v1945_v55  ;;  %vm1683_vm10 = vmpackc.low %vm1587_vm9, %vm1587_vm9 }
 0x19c   : > { %v3091_v61 = vadd.f32 %v3090_v17, %v2858_v32  ;;  %v2772_v44 = vadd.f32 %v2771_v30, %v6575_v24  ;;  %v1715_v29 = vsel %vm1683_vm10, 65537, %v6569_v46  ;;  %vm1589_vm12 = vcmp.lt.s32.totalorder %v623_v27, 14 }
 0x19d   : > { %2041 = vst [vmem:[#allocation2 + $0x190] sm:$0xf] %v1977_v11  ;;  %v1747_v16 = vunpack.c.l.b16 %v1715_v29  ;;  %vm1685_vm13 = vmpackc.low %vm1589_vm12, %vm1589_vm12 }
 0x19e   : > { %3230 = vmatmul.bf16.gmra.mxu1 %v5355_v48  ;;  %3672 = vmatmul.bf16.gmra.mxu2 %v6299_v43  ;;  %v6339_v14 = vadd.f32 %v3179_v19, %v3091_v61  ;;  %v1946_v19 = vunpack.c.h.b16 %v1896_v33 }
 0x19f   : > { %3761 = vmatmul.bf16.gmra.mxu3 %v6296_v31  ;;  %v4267_v48 = vunpack.i.l.s16 %v1747_v16 }
 0x1a0   : > { %v3184_v21 = vpop.f32.mrf.mxu0  ;;  %v1978_v51 = vpack.c.b16 %v1946_v19, %v1946_v19 }
 0x1a1   : > { %v2860_v49 = vpop.f32.mrf.mxu2  ;;  %vm1844_vm11 = vcmp.ne.s32.totalorder %v4267_v48, %v5748_v47 }
 0x1a2   : > { %v2861_v18 = vadd.f32 %v2860_v49, %v2772_v44  ;;  %v3093_v43 = vpop.f32.mrf.mxu3  ;;  %2042 = vst [vmem:[#allocation2 + $0x194] sm:$0xf] %v1978_v51  ;;  %v6578_v44 = vld [vmem:[#allocation7_spill] sm:$0xff]  ;;  %v1538_v49 = vsel %vm1517_vm0, %v1535_v20, %v1537_v53  ;;  %vm1845_vm6 = vmpackc.low %vm1844_vm11, %vm6208_vm15  ;;  %v6579_v20 = vld [vmem:[#allocation8_spill] sm:$0xff] }
 0x1a3   : > { %v2773_v41 = vpop.f32.mrf.mxu1 }
 0x1a4   : > { %v3094_v50 = vadd.f32 %v3093_v43, %v2861_v18  ;;  %v2774_v58 = vadd.f32 %v2773_v41, %v6576_v15  ;;  %v1897_v43 = vsel %vm1845_vm6, %v1538_v49, 0 }
 0x1a5   : > { %v1947_v19 = vunpack.c.l.b16 %v1897_v43 }
 0x1a6   : > { %v6348_v13 = vadd.f32 %v3182_v45, %v3094_v50  ;;  %v5356_v45 = vld [vmem:[#allocation2 + $0x40] sm:$0xff] }
 0x1a7   : > { %v1979_v11 = vpack.c.b16 %v1947_v19, %v1947_v19 }
 0x1a8   : > { %v3187_v57 = vpop.f32.mrf.mxu0 }
 0x1a9   : > { %v2862_v12 = vpop.f32.mrf.mxu2  ;;  %2043 = vst [vmem:[#allocation2 + $0x198] sm:$0xf] %v1979_v11 }
 0x1aa   : > { %v2863_v32 = vadd.f32 %v2862_v12, %v2774_v58  ;;  %v3095_v17 = vpop.f32.mrf.mxu3  ;;  %v6369_v12 = vld [vmem:[#allocation2 + $0x188] sm:$0xff] }
 0x1ab   : > { %v2776_v30 = vpop.f32.mrf.mxu1  ;;  %3855 = vmatmul.bf16.gmra.mxu0 %v6351_v63 }
 0x1ac   : > { %v3096_v61 = vadd.f32 %v3095_v17, %v2863_v32  ;;  %v2777_v34 = vadd.f32 %v2776_v30, %v6578_v44  ;;  %v6580_v44 = vld [vmem:[#allocation4_spill] sm:$0xff] }
 0x1ae   : > { %3235 = vmatmul.bf16.gmra.mxu1 %v5356_v45  ;;  %3677 = vmatmul.bf16.gmra.mxu2 %v6277_v62  ;;  %v6357_v24 = vadd.f32 %v3184_v21, %v3096_v61  ;;  %v1948_v21 = vunpack.c.h.b16 %v1897_v43  ;;  %v1717_v61 = vsel %vm1685_vm13, 65537, %v6569_v46 }
 0x1af   : > { %3766 = vmatmul.bf16.gmra.mxu3 %v6315_v26  ;;  %v1749_v45 = vunpack.c.l.b16 %v1717_v61 }
 0x1b0   : > { %v3189_v18 = vpop.f32.mrf.mxu0  ;;  %v1980_v51 = vpack.c.b16 %v1948_v21, %v1948_v21 }
 0x1b1   : > { %v2865_v33 = vpop.f32.mrf.mxu2  ;;  %v4269_v8 = vunpack.i.l.s16 %v1749_v45 }
 0x1b2   : > { %v2866_v41 = vadd.f32 %v2865_v33, %v2777_v34  ;;  %v3098_v62 = vpop.f32.mrf.mxu3  ;;  %2044 = vst [vmem:[#allocation2 + $0x19c] sm:$0xf] %v1980_v51  ;;  %v1539_v34 = vrot.slane %v6580_v44, 1  ;;  %v6581_v33 = vld [vmem:[#allocation9_spill] sm:$0xff] }
 0x1b3   : > { %v2778_v55 = vpop.f32.mrf.mxu1  ;;  %vm1851_vm14 = vcmp.ne.s32.totalorder %v4269_v8, %v5748_v47 }
 0x1b4   : > { %v3099_v50 = vadd.f32 %v3098_v62, %v2866_v41  ;;  %v2779_v58 = vadd.f32 %v2778_v55, %v6579_v20  ;;  %v1540_v41 = vsel %vm1517_vm0, %v1537_v53, %v1539_v34  ;;  %vm1852_vm1 = vmpackc.low %vm1851_vm14, %vm6208_vm15  ;;  %v463_v20 = vadd.s32 184, %v5722_v25  ;;  %v6582_v53 = vld [vmem:[#allocation10_spill] sm:$0xff] }
 0x1b5   : > { %v1898_v19 = vsel %vm1852_vm1, %v1540_v41, 0  ;;  %v6583_v41 = vld [vmem:[#allocation5_spill] sm:$0xff] }
 0x1b6   : > { %v6366_v15 = vadd.f32 %v3187_v57, %v3099_v50  ;;  %v5357_v57 = vld [vmem:[#allocation2 + $0x48] sm:$0xff]  ;;  %v1949_v11 = vunpack.c.l.b16 %v1898_v19 }
 0x1b8   : > { %v3192_v17 = vpop.f32.mrf.mxu0  ;;  %v1981_v42 = vpack.c.b16 %v1949_v11, %v1949_v11 }
 0x1b9   : > { %v2867_v32 = vpop.f32.mrf.mxu2 }
 0x1ba   : > { %v2868_v30 = vadd.f32 %v2867_v32, %v2779_v58  ;;  %v3100_v29 = vpop.f32.mrf.mxu3  ;;  %2045 = vst [vmem:[#allocation2 + $0x1a0] sm:$0xf] %v1981_v42  ;;  %v637_v58 = vand.u32 15, %v463_v20 }
 0x1bb   : > { %v2781_v16 = vpop.f32.mrf.mxu1  ;;  %3860 = vmatmul.bf16.gmra.mxu0 %v6369_v12 }
 0x1bc   : > { %v3101_v48 = vadd.f32 %v3100_v29, %v2868_v30  ;;  %v2782_v43 = vadd.f32 %v2781_v16, %v6581_v33  ;;  %v6387_v29 = vld [vmem:[#allocation2 + $0x190] sm:$0xff]  ;;  %vm1591_vm2 = vcmp.lt.s32.totalorder %v637_v58, 14 }
 0x1bd   : > { %vm1687_vm3 = vmpackc.low %vm1591_vm2, %vm1591_vm2 }
 0x1be   : > { %3240 = vmatmul.bf16.gmra.mxu1 %v5357_v57  ;;  %3682 = vmatmul.bf16.gmra.mxu2 %v6296_v31  ;;  %v6375_v49 = vadd.f32 %v3189_v18, %v3101_v48  ;;  %v1950_v18 = vunpack.c.h.b16 %v1898_v19  ;;  %v1719_v8 = vsel %vm1687_vm3, 65537, %v6569_v46 }
 0x1bf   : > { %3771 = vmatmul.bf16.gmra.mxu3 %v6333_v28  ;;  %v1751_v44 = vunpack.c.l.b16 %v1719_v8  ;;  %v6405_v8 = vld [vmem:[#allocation2 + $0x198] sm:$0xff] }
 0x1c0   : > { %v3194_v55 = vpop.f32.mrf.mxu0  ;;  %v1982_v27 = vpack.c.b16 %v1950_v18, %v1950_v18 }
 0x1c1   : > { %v2870_v62 = vpop.f32.mrf.mxu2 }
 0x1c2   : > { %v2871_v21 = vadd.f32 %v2870_v62, %v2782_v43  ;;  %v3103_v31 = vpop.f32.mrf.mxu3  ;;  %2046 = vst [vmem:[#allocation2 + $0x1a4] sm:$0xf] %v1982_v27  ;;  %v4271_v43 = vunpack.i.l.s16 %v1751_v44  ;;  %v1541_v62 = vrot.slane %v6583_v41, 1 }
 0x1c3   : > { %v2783_v50 = vpop.f32.mrf.mxu1 }
 0x1c4   : > { %v3104_v51 = vadd.f32 %v3103_v31, %v2871_v21  ;;  %v2784_v30 = vadd.f32 %v2783_v50, %v6582_v53  ;;  %vm1858_vm5 = vcmp.ne.s32.totalorder %v4271_v43, %v5748_v47  ;;  %v6584_v21 = vld [vmem:[#allocation11_spill] sm:$0xff]  ;;  %v1542_v50 = vsel %vm1517_vm0, %v1539_v34, %v1541_v62  ;;  %v6585_v34 = vld [vmem:[#allocation12_spill] sm:$0xff] }
 0x1c5   : > { %vm1859_vm7 = vmpackc.low %vm1858_vm5, %vm6208_vm15 }
 0x1c6   : > { %v6384_v32 = vadd.f32 %v3192_v17, %v3104_v51  ;;  %v5358_v17 = vld [vmem:[#allocation2 + $0x50] sm:$0xff]  ;;  %v1899_v51 = vsel %vm1859_vm7, %v1542_v50, 0 }
 0x1c7   : > { %v1951_v20 = vunpack.c.l.b16 %v1899_v51 }
 0x1c8   : > { %v3197_v61 = vpop.f32.mrf.mxu0 }
 0x1c9   : > { %v2872_v16 = vpop.f32.mrf.mxu2  ;;  %v1983_v53 = vpack.c.b16 %v1951_v20, %v1951_v20 }
 0x1ca   : > { %v2873_v45 = vadd.f32 %v2872_v16, %v2784_v30  ;;  %v3105_v48 = vpop.f32.mrf.mxu3  ;;  %v465_v16 = vadd.s32 200, %v5722_v25 }
 0x1cb   : > { %v2786_v57 = vpop.f32.mrf.mxu1  ;;  %3865 = vmatmul.bf16.gmra.mxu0 %v6387_v29  ;;  %2047 = vst [vmem:[#allocation2 + $0x1a8] sm:$0xf] %v1983_v53 }
 0x1cc   : > { %v3106_v33 = vadd.f32 %v3105_v48, %v2873_v45  ;;  %v2787_v31 = vadd.f32 %v2786_v57, %v6584_v21  ;;  %v651_v45 = vand.u32 15, %v465_v16 }
 0x1ce   : > { %3245 = vmatmul.bf16.gmra.mxu1 %v5358_v17  ;;  %3687 = vmatmul.bf16.gmra.mxu2 %v6315_v26  ;;  %v6393_v19 = vadd.f32 %v3194_v55, %v3106_v33  ;;  %v1952_v55 = vunpack.c.h.b16 %v1899_v51  ;;  %vm1593_vm8 = vcmp.lt.s32.totalorder %v651_v45, 14  ;;  %v1543_v51 = vrot.slane %v5758_v56, 1 }
 0x1cf   : > { %3776 = vmatmul.bf16.gmra.mxu3 %v6351_v63  ;;  %vm1689_vm9 = vmpackc.low %vm1593_vm8, %vm1593_vm8 }
 0x1d0   : > { %v3199_v18 = vpop.f32.mrf.mxu0  ;;  %v1984_v30 = vpack.c.b16 %v1952_v55, %v1952_v55  ;;  %v1721_v21 = vsel %vm1689_vm9, 65537, %v6569_v46  ;;  %v1544_v20 = vsel %vm1517_vm0, %v1541_v62, %v1543_v51  ;;  %v6587_v62 = vld [vmem:[#allocation16_spill] sm:$0xff] }
 0x1d1   : > { %v2875_v11 = vpop.f32.mrf.mxu2 }
 0x1d2   : > { %v2876_v42 = vadd.f32 %v2875_v11, %v2787_v31  ;;  %v3108_v26 = vpop.f32.mrf.mxu3  ;;  %2048 = vst [vmem:[#allocation2 + $0x1ac] sm:$0xf] %v1984_v30  ;;  %v1753_v31 = vunpack.c.l.b16 %v1721_v21  ;;  %v6423_v21 = vld [vmem:[#allocation2 + $0x1a0] sm:$0xff] }
 0x1d3   : > { %v2788_v27 = vpop.f32.mrf.mxu1 }
 0x1d4   : > { %v3109_v58 = vadd.f32 %v3108_v26, %v2876_v42  ;;  %v2789_v57 = vadd.f32 %v2788_v27, %v6585_v34  ;;  %v4273_v11 = vunpack.i.l.s16 %v1753_v31  ;;  %v6586_v26 = vld [vmem:[#allocation14_spill] sm:$0xff] }
 0x1d6   : > { %v6402_v48 = vadd.f32 %v3197_v61, %v3109_v58  ;;  %v5359_v61 = vld [vmem:[#allocation2 + $0x58] sm:$0xff]  ;;  %vm1865_vm10 = vcmp.ne.s32.totalorder %v4273_v11, %v5748_v47 }
 0x1d7   : > { %vm1866_vm11 = vmpackc.low %vm1865_vm10, %vm6208_vm15 }
 0x1d8   : > { %v3202_v33 = vpop.f32.mrf.mxu0  ;;  %v1900_v53 = vsel %vm1866_vm11, %v1544_v20, 0 }
 0x1d9   : > { %v2877_v44 = vpop.f32.mrf.mxu2  ;;  %v1953_v56 = vunpack.c.l.b16 %v1900_v53 }
 0x1da   : > { %v2878_v17 = vadd.f32 %v2877_v44, %v2789_v57  ;;  %v3110_v43 = vpop.f32.mrf.mxu3  ;;  %v467_v44 = vadd.s32 216, %v5722_v25 }
 0x1db   : > { %v2791_v41 = vpop.f32.mrf.mxu1  ;;  %3870 = vmatmul.bf16.gmra.mxu0 %v6405_v8  ;;  %v1985_v34 = vpack.c.b16 %v1953_v56, %v1953_v56 }
 0x1dc   : > { %v3111_v50 = vadd.f32 %v3110_v43, %v2878_v17  ;;  %v2792_v27 = vadd.f32 %v2791_v41, %v6586_v26  ;;  %v665_v17 = vand.u32 15, %v467_v44 }
 0x1dd   : > { %2049 = vst [vmem:[#allocation2 + $0x1b0] sm:$0xf] %v1985_v34 }
 0x1de   : > { %3250 = vmatmul.bf16.gmra.mxu1 %v5359_v61  ;;  %3692 = vmatmul.bf16.gmra.mxu2 %v6333_v28  ;;  %v6411_v42 = vadd.f32 %v3199_v18, %v3111_v50  ;;  %v1954_v18 = vunpack.c.h.b16 %v1900_v53  ;;  %vm1595_vm6 = vcmp.lt.s32.totalorder %v665_v17, 14 }
 0x1df   : > { %3781 = vmatmul.bf16.gmra.mxu3 %v6369_v12  ;;  %vm1691_vm12 = vmpackc.low %vm1595_vm6, %vm1595_vm6 }
 0x1e0   : > { %v3204_v58 = vpop.f32.mrf.mxu0  ;;  %v1986_v57 = vpack.c.b16 %v1954_v18, %v1954_v18 }
 0x1e1   : > { %v2880_v55 = vpop.f32.mrf.mxu2 }
 0x1e2   : > { %v2881_v30 = vadd.f32 %v2880_v55, %v2792_v27  ;;  %v3113_v28 = vpop.f32.mrf.mxu3  ;;  %2050 = vst [vmem:[#allocation2 + $0x1b4] sm:$0xf] %v1986_v57  ;;  %v1723_v27 = vsel %vm1691_vm12, 65537, %v6569_v46 }
 0x1e3   : > { %v2793_v16 = vpop.f32.mrf.mxu1  ;;  %v1755_v20 = vunpack.c.l.b16 %v1723_v27  ;;  %v6588_v27 = vld [vmem:[#allocation17_spill] sm:$0xff] }
 0x1e4   : > { %v3114_v45 = vadd.f32 %v3113_v28, %v2881_v30  ;;  %v2794_v41 = vadd.f32 %v2793_v16, %v6587_v62  ;;  %v1545_v30 = vrot.slane %v6140_v40, 1  ;;  %v469_v62 = vadd.s32 232, %v5722_v25 }
 0x1e5   : > { %v4275_v53 = vunpack.i.l.s16 %v1755_v20 }
 0x1e6   : > { %v6420_v43 = vadd.f32 %v3202_v33, %v3114_v45  ;;  %v5360_v33 = vld [vmem:[#allocation2 + $0x60] sm:$0xff]  ;;  %v1546_v16 = vsel %vm1517_vm0, %v1543_v51, %v1545_v30  ;;  %v6437_v51 = vld [vmem:[#allocation2 + $0x1a8] sm:$0xff] }
 0x1e7   : > { %vm1872_vm13 = vcmp.ne.s32.totalorder %v4275_v53, %v5748_v47 }
 0x1e8   : > { %v3836_v50 = vpop.f32.mrf.mxu0  ;;  %vm1873_vm14 = vmpackc.low %vm1872_vm13, %vm6208_vm15 }
 0x1e9   : > { %v2882_v31 = vpop.f32.mrf.mxu2  ;;  %v1901_v45 = vsel %vm1873_vm14, %v1546_v16, 0 }
 0x1ea   : > { %v2883_v61 = vadd.f32 %v2882_v31, %v2794_v41  ;;  %v3115_v11 = vpop.f32.mrf.mxu3  ;;  %v1955_v44 = vunpack.c.l.b16 %v1901_v45  ;;  %v679_v41 = vand.u32 15, %v469_v62 }
 0x1eb   : > { %v3216_v26 = vpop.f32.mrf.mxu1  ;;  %3875 = vmatmul.bf16.gmra.mxu0 %v6423_v21 }
 0x1ec   : > { %v3116_v55 = vadd.f32 %v3115_v11, %v2883_v61  ;;  %v1987_v40 = vpack.c.b16 %v1955_v44, %v1955_v44  ;;  %vm1597_vm1 = vcmp.lt.s32.totalorder %v679_v41, 14  ;;  %v3217_v20 = vadd.f32 %v3216_v26, %v6588_v27 }
 0x1ed   : > { %vm1693_vm2 = vmpackc.low %vm1597_vm1, %vm1597_vm1  ;;  %v1547_v26 = vrot.slane %v6164_v10, 1 }
 0x1ee   : > { %3255 = vmatmul.bf16.gmra.mxu1 %v5360_v33  ;;  %3697 = vmatmul.bf16.gmra.mxu2 %v6351_v63  ;;  %v6429_v28 = vadd.f32 %v3204_v58, %v3116_v55  ;;  %v1956_v63 = vunpack.c.h.b16 %v1901_v45  ;;  %2051 = vst [vmem:[#allocation2 + $0x1b8] sm:$0xf] %v1987_v40  ;;  %v1725_v53 = vsel %vm1693_vm2, 65537, %v6569_v46 }
 0x1ef   : > { %3786 = vmatmul.bf16.gmra.mxu3 %v6387_v29 }
 0x1f0   : > { %v3838_v18 = vpop.f32.mrf.mxu0  ;;  %v1988_v58 = vpack.c.b16 %v1956_v63, %v1956_v63  ;;  %v5361_v63 = vld [vmem:[#allocation2 + $0x68] sm:$0xff] }
 0x1f1   : > { %v3658_v56 = vpop.f32.mrf.mxu2 }
 0x1f2   : > { %v3747_v34 = vpop.f32.mrf.mxu3  ;;  %2052 = vst [vmem:[#allocation2 + $0x1bc] sm:$0xf] %v1988_v58 }
 0x1f3   : > { %v3218_v57 = vpop.f32.mrf.mxu1  ;;  %v3748_v17 = vadd.f32 %v3747_v34, %v3658_v56  ;;  %v1757_v56 = vunpack.c.l.b16 %v1725_v53  ;;  %v6589_v34 = vld [vmem:[#allocation18_spill] sm:$0xff] }
 0x1f5   : > { %v3837_v31 = vadd.f32 %v3836_v50, %v3748_v17  ;;  %v3219_v50 = vadd.f32 %v3218_v57, %v6589_v34  ;;  %v4277_v17 = vunpack.i.l.s16 %v1757_v56 }
 0x1f7   : > { %v3916_v45 = vadd.f32 %v3837_v31, %v3217_v20  ;;  %vm1879_vm3 = vcmp.ne.s32.totalorder %v4277_v17, %v5748_v47  ;;  %v6460_v17 = vld [vmem:[#allocation2 + $0x1b0] sm:$0xff] }
 0x1f8   : > { %v3841_v11 = vpop.f32.mrf.mxu0  ;;  %vm1880_vm5 = vmpackc.low %vm1879_vm3, %vm6208_vm15 }
 0x1f9   : > { %v3660_v61 = vpop.f32.mrf.mxu2  ;;  %v4049_v58 = vmul.f32 %v3916_v45, %v3916_v45 }
 0x1fa   : > { %v3749_v55 = vpop.f32.mrf.mxu3 }
 0x1fb   : > { %v3221_v33 = vpop.f32.mrf.mxu1  ;;  %v3750_v16 = vadd.f32 %v3749_v55, %v3660_v61  ;;  %3880 = vmatmul.bf16.gmra.mxu0 %v6437_v51 }
 0x1fd   : > { %v3839_v44 = vadd.f32 %v3838_v18, %v3750_v16  ;;  %v1548_v18 = vsel %vm1517_vm0, %v1545_v30, %v1547_v26  ;;  %v471_v30 = vadd.s32 248, %v5722_v25 }
 0x1fe   : > { %3260 = vmatmul.bf16.gmra.mxu1 %v5361_v63  ;;  %3702 = vmatmul.bf16.gmra.mxu2 %v6369_v12  ;;  %v1902_v31 = vsel %vm1880_vm5, %v1548_v18, 0 }
 0x1ff   : > { %v3917_v40 = vadd.f32 %v3839_v44, %v3219_v50  ;;  %3791 = vmatmul.bf16.gmra.mxu3 %v6405_v8  ;;  %v1957_v20 = vunpack.c.l.b16 %v1902_v31  ;;  %v1958_v55 = vunpack.c.h.b16 %v1902_v31  ;;  %v3222_v50 = vadd.f32 %v3221_v33, %v6098_v37 }
 0x200   : > { %v3843_v41 = vpop.f32.mrf.mxu0 }
 0x201   : > { %v5187_v12 = vpack.c.bf16 %v3917_v40, %v3916_v45  ;;  %v4012_v10 = vadd.f32 %v3917_v40, %v3916_v45  ;;  %v4050_v57 = vmul.f32 %v3917_v40, %v3917_v40  ;;  %v3663_v62 = vpop.f32.mrf.mxu2  ;;  %v1989_v56 = vpack.c.b16 %v1957_v20, %v1957_v20  ;;  %v5362_v20 = vld [vmem:[#allocation2 + $0x70] sm:$0xff] }
 0x202   : > { %v3752_v61 = vpop.f32.mrf.mxu3  ;;  %v1990_v34 = vpack.c.b16 %v1958_v55, %v1958_v55  ;;  %v693_v45 = vand.u32 15, %v471_v30 }
 0x203   : > { %v3223_v27 = vpop.f32.mrf.mxu1  ;;  %5188 = vst [vmem:[%s6452_s30] sm:$0xff] %v5187_v12   ;;  %v4081_v53 = vadd.f32 %v4050_v57, %v4049_v58  ;;  %v3753_v16 = vadd.f32 %v3752_v61, %v3663_v62 }
 0x204   : > { %2053 = vst [vmem:[#allocation2 + $0x1c0] sm:$0xf] %v1989_v56  ;;  %vm1599_vm7 = vcmp.lt.s32.totalorder %v693_v45, 14 }
 0x205   : > { %v3842_v44 = vadd.f32 %v3841_v11, %v3753_v16  ;;  %2054 = vst [vmem:[#allocation2 + $0x1c4] sm:$0xf] %v1990_v34  ;;  %vm1695_vm8 = vmpackc.low %vm1599_vm7, %vm1599_vm7  ;;  %v3224_v11 = vadd.f32 %v3223_v27, %v6109_v1 }
 0x206   : > { %v1727_v62 = vsel %vm1695_vm8, 65537, %v6569_v46  ;;  %v1566_v46 = vsel %vm1517_vm0, %v1547_v26, 0 }
 0x207   : > { %v3918_v63 = vadd.f32 %v3842_v44, %v3222_v50  ;;  %v1759_v37 = vunpack.c.l.b16 %v1727_v62 }
 0x208   : > { %v3846_v12 = vpop.f32.mrf.mxu0 }
 0x209   : > { %v4013_v40 = vadd.f32 %v4012_v10, %v3918_v63  ;;  %v4051_v18 = vmul.f32 %v3918_v63, %v3918_v63  ;;  %v3665_v31 = vpop.f32.mrf.mxu2  ;;  %v4279_v55 = vunpack.i.l.s16 %v1759_v37 }
 0x20a   : > { %v3754_v58 = vpop.f32.mrf.mxu3 }
 0x20b   : > { %v3226_v57 = vpop.f32.mrf.mxu1  ;;  %v4082_v25 = vadd.f32 %v4081_v53, %v4051_v18  ;;  %v3755_v61 = vadd.f32 %v3754_v58, %v3665_v31  ;;  %3885 = vmatmul.bf16.gmra.mxu0 %v6460_v17  ;;  %vm1886_vm9 = vcmp.ne.s32.totalorder %v4279_v55, %v5748_v47 }
 0x20c   : > { %vm1887_vm10 = vmpackc.low %vm1886_vm9, %vm6208_vm15  ;;  %v3227_v26 = vadd.f32 %v3226_v57, %v6136_v0 }
 0x20d   : > { %v3844_v33 = vadd.f32 %v3843_v41, %v3755_v61  ;;  %v1903_v56 = vsel %vm1887_vm10, %v1566_v46, 0 }
 0x20e   : > { %3265 = vmatmul.bf16.gmra.mxu1 %v5362_v20  ;;  %3707 = vmatmul.bf16.gmra.mxu2 %v6387_v29  ;;  %v1959_v29 = vunpack.c.l.b16 %v1903_v56  ;;  %v1960_v50 = vunpack.c.h.b16 %v1903_v56 }
 0x20f   : > { %v3919_v10 = vadd.f32 %v3844_v33, %v3224_v11  ;;  %3796 = vmatmul.bf16.gmra.mxu3 %v6423_v21 }
 0x210   : > { %v3848_v27 = vpop.f32.mrf.mxu0  ;;  %v1991_v18 = vpack.c.b16 %v1959_v29, %v1959_v29  ;;  %v1992_v47 = vpack.c.b16 %v1960_v50, %v1960_v50  ;;  %v6481_v29 = vld [vmem:[#allocation2 + $0x1c0] sm:$0xff] }
 0x211   : > { %v5192_v53 = vpack.c.bf16 %v3919_v10, %v3918_v63  ;;  %v4014_v16 = vadd.f32 %v4013_v40, %v3919_v10  ;;  %v4052_v1 = vmul.f32 %v3919_v10, %v3919_v10  ;;  %v3668_v41 = vpop.f32.mrf.mxu2  ;;  %v6473_v63 = vld [vmem:[#allocation2 + $0x1b8] sm:$0xff] }
 0x212   : > { %v3757_v34 = vpop.f32.mrf.mxu3  ;;  %2055 = vst [vmem:[#allocation2 + $0x1c8] sm:$0xf] %v1991_v18 }
 0x213   : > { %v3228_v30 = vpop.f32.mrf.mxu1  ;;  %5295 = vst [vmem:[%s6452_s30 + $0x8] sm:$0xff] %v5192_v53   ;;  %v4083_v44 = vadd.f32 %v4082_v25, %v4052_v1  ;;  %v3758_v45 = vadd.f32 %v3757_v34, %v3668_v41 }
 0x214   : > { %2056 = vst [vmem:[#allocation2 + $0x1cc] sm:$0xf] %v1992_v47  ;;  %v3229_v25 = vadd.f32 %v3228_v30, %v6147_v22 }
 0x215   : > { %v3847_v31 = vadd.f32 %v3846_v12, %v3758_v45  ;;  %v5363_v12 = vld [vmem:[#allocation2 + $0x78] sm:$0xff] }
 0x217   : > { %v3920_v3 = vadd.f32 %v3847_v31, %v3227_v26 }
 0x218   : > { %v3851_v61 = vpop.f32.mrf.mxu0 }
 0x219   : > { %v4015_v40 = vadd.f32 %v4014_v16, %v3920_v3  ;;  %v4053_v58 = vmul.f32 %v3920_v3, %v3920_v3  ;;  %v3670_v62 = vpop.f32.mrf.mxu2 }
 0x21a   : > { %v3759_v37 = vpop.f32.mrf.mxu3 }
 0x21b   : > { %v3231_v11 = vpop.f32.mrf.mxu1  ;;  %v4084_v33 = vadd.f32 %v4083_v44, %v4053_v58  ;;  %v3760_v20 = vadd.f32 %v3759_v37, %v3670_v62  ;;  %3890 = vmatmul.bf16.gmra.mxu0 %v6473_v63  ;;  %v5364_v58 = vld [vmem:[#allocation2 + $0x80] sm:$0xff] }
 0x21c   : > { %v3232_v22 = vadd.f32 %v3231_v11, %v6158_v38 }
 0x21d   : > { %v3849_v0 = vadd.f32 %v3848_v27, %v3760_v20 }
 0x21e   : > { %3270 = vmatmul.bf16.gmra.mxu1 %v5363_v12  ;;  %3712 = vmatmul.bf16.gmra.mxu2 %v6405_v8 }
 0x21f   : > { %v3921_v57 = vadd.f32 %v3849_v0, %v3229_v25  ;;  %3801 = vmatmul.bf16.gmra.mxu3 %v6437_v51 }
 0x220   : > { %v3853_v16 = vpop.f32.mrf.mxu0 }
 0x221   : > { %v5197_v55 = vpack.c.bf16 %v3921_v57, %v3920_v3  ;;  %v4016_v10 = vadd.f32 %v4015_v40, %v3921_v57  ;;  %v4054_v46 = vmul.f32 %v3921_v57, %v3921_v57  ;;  %v3673_v53 = vpop.f32.mrf.mxu2 }
 0x222   : > { %v3762_v1 = vpop.f32.mrf.mxu3 }
 0x223   : > { %v3233_v41 = vpop.f32.mrf.mxu1  ;;  %5296 = vst [vmem:[%s6452_s30 + $0x10] sm:$0xff] %v5197_v55   ;;  %v4085_v56 = vadd.f32 %v4084_v33, %v4054_v46  ;;  %v3763_v34 = vadd.f32 %v3762_v1, %v3673_v53 }
 0x224   : > { %v3234_v3 = vadd.f32 %v3233_v41, %v6170_v4 }
 0x225   : > { %v3852_v27 = vadd.f32 %v3851_v61, %v3763_v34 }
 0x227   : > { %v3922_v30 = vadd.f32 %v3852_v27, %v3232_v22 }
 0x228   : > { %v3856_v45 = vpop.f32.mrf.mxu0 }
 0x229   : > { %v4017_v8 = vadd.f32 %v4016_v10, %v3922_v30  ;;  %v4055_v50 = vmul.f32 %v3922_v30, %v3922_v30  ;;  %v3675_v44 = vpop.f32.mrf.mxu2  ;;  %v6489_v10 = vld [vmem:[#allocation2 + $0x1c8] sm:$0xff] }
 0x22a   : > { %v3764_v18 = vpop.f32.mrf.mxu3 }
 0x22b   : > { %v3236_v47 = vpop.f32.mrf.mxu1  ;;  %v4086_v26 = vadd.f32 %v4085_v56, %v4055_v50  ;;  %v3765_v31 = vadd.f32 %v3764_v18, %v3675_v44  ;;  %3895 = vmatmul.bf16.gmra.mxu0 %v6481_v29 }
 0x22c   : > { %v3237_v4 = vadd.f32 %v3236_v47, %v6192_v7 }
 0x22d   : > { %v3854_v40 = vadd.f32 %v3853_v16, %v3765_v31 }
 0x22e   : > { %3275 = vmatmul.bf16.gmra.mxu1 %v5364_v58  ;;  %3717 = vmatmul.bf16.gmra.mxu2 %v6423_v21 }
 0x22f   : > { %v3923_v38 = vadd.f32 %v3854_v40, %v3234_v3  ;;  %3806 = vmatmul.bf16.gmra.mxu3 %v6460_v17 }
 0x230   : > { %v3858_v33 = vpop.f32.mrf.mxu0 }
 0x231   : > { %v5202_v62 = vpack.c.bf16 %v3923_v38, %v3922_v30  ;;  %v4018_v61 = vadd.f32 %v4017_v8, %v3923_v38  ;;  %v4056_v37 = vmul.f32 %v3923_v38, %v3923_v38  ;;  %v3678_v11 = vpop.f32.mrf.mxu2  ;;  %v5365_v30 = vld [vmem:[#allocation2 + $0x88] sm:$0xff]  ;;  %v5014_v38 = vld [vmem:[#allocation2 + $0x1d0] sm:$0xff] }
 0x232   : > { %v3767_v20 = vpop.f32.mrf.mxu3 }
 0x233   : > { %v3238_v25 = vpop.f32.mrf.mxu1  ;;  %5297 = vst [vmem:[%s6452_s30 + $0x18] sm:$0xff] %v5202_v62   ;;  %v4087_v0 = vadd.f32 %v4086_v26, %v4056_v37  ;;  %v3768_v12 = vadd.f32 %v3767_v20, %v3678_v11  ;;  %v4926_v11 = vld [vmem:[#allocation2 + $0x90] sm:$0xff] }
 0x234   : > { %v3239_v22 = vadd.f32 %v3238_v25, %v6213_v35 }
 0x235   : > { %v3857_v57 = vadd.f32 %v3856_v45, %v3768_v12 }
 0x237   : > { %v3924_v55 = vadd.f32 %v3857_v57, %v3237_v4 }
 0x238   : > { %v3861_v16 = vpop.f32.mrf.mxu0 }
 0x239   : > { %v4019_v21 = vadd.f32 %v4018_v61, %v3924_v55  ;;  %v4057_v46 = vmul.f32 %v3924_v55, %v3924_v55  ;;  %v3680_v53 = vpop.f32.mrf.mxu2 }
 0x23a   : > { %v3769_v1 = vpop.f32.mrf.mxu3 }
 0x23b   : > { %v3241_v41 = vpop.f32.mrf.mxu1  ;;  %v4088_v56 = vadd.f32 %v4087_v0, %v4057_v46  ;;  %v3770_v34 = vadd.f32 %v3769_v1, %v3680_v53  ;;  %3900 = vmatmul.bf16.gmra.mxu0 %v6489_v10 }
 0x23c   : > { %v3242_v35 = vadd.f32 %v3241_v41, %v6233_v52 }
 0x23d   : > { %v3859_v27 = vadd.f32 %v3858_v33, %v3770_v34 }
 0x23e   : > { %3280 = vmatmul.bf16.gmra.mxu1 %v5365_v30  ;;  %3722 = vmatmul.bf16.gmra.mxu2 %v6437_v51 }
 0x23f   : > { %v3925_v7 = vadd.f32 %v3859_v27, %v3239_v22  ;;  %3811 = vmatmul.bf16.gmra.mxu3 %v6473_v63  ;;  %v5015_v27 = vld [vmem:[#allocation2 + $0x1d8] sm:$0xff] }
 0x240   : > { %v3863_v18 = vpop.f32.mrf.mxu0 }
 0x241   : > { %v5207_v8 = vpack.c.bf16 %v3925_v7, %v3924_v55  ;;  %v4020_v50 = vadd.f32 %v4019_v21, %v3925_v7  ;;  %v4058_v44 = vmul.f32 %v3925_v7, %v3925_v7  ;;  %v3683_v45 = vpop.f32.mrf.mxu2 }
 0x242   : > { %v3772_v47 = vpop.f32.mrf.mxu3 }
 0x243   : > { %v3243_v26 = vpop.f32.mrf.mxu1  ;;  %5298 = vst [vmem:[%s6452_s30 + $0x20] sm:$0xff] %v5207_v8   ;;  %v4089_v31 = vadd.f32 %v4088_v56, %v4058_v44  ;;  %v3773_v3 = vadd.f32 %v3772_v47, %v3683_v45 }
 0x244   : > { %v3244_v12 = vadd.f32 %v3243_v26, %v6240_v36 }
 0x245   : > { %v3862_v40 = vadd.f32 %v3861_v16, %v3773_v3 }
 0x247   : > { %v3926_v58 = vadd.f32 %v3862_v40, %v3242_v35 }
 0x248   : > { %v3866_v37 = vpop.f32.mrf.mxu0 }
 0x249   : > { %v4021_v62 = vadd.f32 %v4020_v50, %v3926_v58  ;;  %v4059_v51 = vmul.f32 %v3926_v58, %v3926_v58  ;;  %v3685_v61 = vpop.f32.mrf.mxu2 }
 0x24a   : > { %v3774_v33 = vpop.f32.mrf.mxu3 }
 0x24b   : > { %v3246_v20 = vpop.f32.mrf.mxu1  ;;  %v4090_v25 = vadd.f32 %v4089_v31, %v4059_v51  ;;  %v3775_v0 = vadd.f32 %v3774_v33, %v3685_v61  ;;  %3905 = vmatmul.bf16.gmra.mxu0 %v5014_v38 }
 0x24c   : > { %v3247_v34 = vadd.f32 %v3246_v20, %v6259_v2 }
 0x24d   : > { %v3864_v4 = vadd.f32 %v3863_v18, %v3775_v0 }
 0x24e   : > { %3285 = vmatmul.bf16.gmra.mxu1 %v4926_v11  ;;  %3727 = vmatmul.bf16.gmra.mxu2 %v6460_v17 }
 0x24f   : > { %v3927_v52 = vadd.f32 %v3864_v4, %v3244_v12  ;;  %3816 = vmatmul.bf16.gmra.mxu3 %v6481_v29  ;;  %v4927_v29 = vld [vmem:[#allocation2 + $0x98] sm:$0xff] }
 0x250   : > { %v3868_v53 = vpop.f32.mrf.mxu0 }
 0x251   : > { %v5212_v57 = vpack.c.bf16 %v3927_v52, %v3926_v58  ;;  %v4022_v55 = vadd.f32 %v4021_v62, %v3927_v52  ;;  %v4060_v21 = vmul.f32 %v3927_v52, %v3927_v52  ;;  %v3688_v46 = vpop.f32.mrf.mxu2 }
 0x252   : > { %v3777_v16 = vpop.f32.mrf.mxu3 }
 0x253   : > { %v3248_v1 = vpop.f32.mrf.mxu1  ;;  %5299 = vst [vmem:[%s6452_s30 + $0x28] sm:$0xff] %v5212_v57   ;;  %v4091_v41 = vadd.f32 %v4090_v25, %v4060_v21  ;;  %v3778_v56 = vadd.f32 %v3777_v16, %v3688_v46 }
 0x254   : > { %v3249_v47 = vadd.f32 %v3248_v1, %v6265_v39 }
 0x255   : > { %v3867_v36 = vadd.f32 %v3866_v37, %v3778_v56 }
 0x257   : > { %v3928_v22 = vadd.f32 %v3867_v36, %v3247_v34 }
 0x258   : > { %v3871_v8 = vpop.f32.mrf.mxu0 }
 0x259   : > { %v4023_v30 = vadd.f32 %v4022_v55, %v3928_v22  ;;  %v4061_v17 = vmul.f32 %v3928_v22, %v3928_v22  ;;  %v3690_v7 = vpop.f32.mrf.mxu2 }
 0x25a   : > { %v3779_v50 = vpop.f32.mrf.mxu3 }
 0x25b   : > { %v3251_v44 = vpop.f32.mrf.mxu1  ;;  %v4092_v45 = vadd.f32 %v4091_v41, %v4061_v17  ;;  %v3780_v18 = vadd.f32 %v3779_v50, %v3690_v7  ;;  %3910 = vmatmul.bf16.gmra.mxu0 %v5015_v27 }
 0x25c   : > { %v3252_v37 = vadd.f32 %v3251_v44, %v6274_v23 }
 0x25d   : > { %v3869_v26 = vadd.f32 %v3868_v53, %v3780_v18 }
 0x25e   : > { %3290 = vmatmul.bf16.gmra.mxu1 %v4927_v29  ;;  %3732 = vmatmul.bf16.gmra.mxu2 %v6473_v63 }
 0x25f   : > { %v3929_v2 = vadd.f32 %v3869_v26, %v3249_v47  ;;  %3821 = vmatmul.bf16.gmra.mxu3 %v6489_v10 }
 0x260   : > { %v3873_v58 = vpop.f32.mrf.mxu0 }
 0x261   : > { %v5217_v31 = vpack.c.bf16 %v3929_v2, %v3928_v22  ;;  %v4024_v3 = vadd.f32 %v4023_v30, %v3929_v2  ;;  %v4062_v35 = vmul.f32 %v3929_v2, %v3929_v2  ;;  %v3693_v40 = vpop.f32.mrf.mxu2 }
 0x262   : > { %v3782_v38 = vpop.f32.mrf.mxu3 }
 0x263   : > { %v3253_v62 = vpop.f32.mrf.mxu1  ;;  %5300 = vst [vmem:[%s6452_s30 + $0x30] sm:$0xff] %v5217_v31   ;;  %v4093_v51 = vadd.f32 %v4092_v45, %v4062_v35  ;;  %v3783_v61 = vadd.f32 %v3782_v38, %v3693_v40 }
 0x264   : > { %v3254_v52 = vadd.f32 %v3253_v62, %v6284_v9 }
 0x265   : > { %v3872_v39 = vadd.f32 %v3871_v8, %v3783_v61 }
 0x267   : > { %v3930_v11 = vadd.f32 %v3872_v39, %v3252_v37 }
 0x268   : > { %v3876_v25 = vpop.f32.mrf.mxu0 }
 0x269   : > { %v4025_v33 = vadd.f32 %v4024_v3, %v3930_v11  ;;  %v4063_v20 = vmul.f32 %v3930_v11, %v3930_v11  ;;  %v3695_v63 = vpop.f32.mrf.mxu2 }
 0x26a   : > { %v3784_v10 = vpop.f32.mrf.mxu3 }
 0x26b   : > { %v3256_v0 = vpop.f32.mrf.mxu1  ;;  %v4094_v12 = vadd.f32 %v4093_v51, %v4063_v20  ;;  %v3785_v4 = vadd.f32 %v3784_v10, %v3695_v63 }
 0x26c   : > { %v3257_v36 = vadd.f32 %v3256_v0, %v6293_v60 }
 0x26d   : > { %v3874_v57 = vadd.f32 %v3873_v58, %v3785_v4 }
 0x26f   : > { %v3931_v55 = vadd.f32 %v3874_v57, %v3254_v52 }
 0x270   : > { %v3878_v23 = vpop.f32.mrf.mxu0 }
 0x271   : > { %v5222_v21 = vpack.c.bf16 %v3931_v55, %v3930_v11  ;;  %v4026_v46 = vadd.f32 %v4025_v33, %v3931_v55  ;;  %v4064_v53 = vmul.f32 %v3931_v55, %v3931_v55  ;;  %v3698_v16 = vpop.f32.mrf.mxu2 }
 0x272   : > { %v3787_v1 = vpop.f32.mrf.mxu3 }
 0x273   : > { %v3258_v41 = vpop.f32.mrf.mxu1  ;;  %5301 = vst [vmem:[%s6452_s30 + $0x38] sm:$0xff] %v5222_v21   ;;  %v4095_v56 = vadd.f32 %v4094_v12, %v4064_v53  ;;  %v3788_v34 = vadd.f32 %v3787_v1, %v3698_v16 }
 0x274   : > { %v3259_v45 = vadd.f32 %v3258_v41, %v6303_v59 }
 0x275   : > { %v3877_v22 = vadd.f32 %v3876_v25, %v3788_v34 }
 0x277   : > { %v3932_v27 = vadd.f32 %v3877_v22, %v3257_v36 }
 0x278   : > { %v3881_v9 = vpop.f32.mrf.mxu0 }
 0x279   : > { %v4027_v30 = vadd.f32 %v4026_v46, %v3932_v27  ;;  %v4065_v17 = vmul.f32 %v3932_v27, %v3932_v27  ;;  %v3700_v7 = vpop.f32.mrf.mxu2 }
 0x27a   : > { %v3789_v8 = vpop.f32.mrf.mxu3 }
 0x27b   : > { %v3261_v29 = vpop.f32.mrf.mxu1  ;;  %v4096_v50 = vadd.f32 %v4095_v56, %v4065_v17  ;;  %v3790_v44 = vadd.f32 %v3789_v8, %v3700_v7 }
 0x27c   : > { %v3262_v62 = vadd.f32 %v3261_v29, %v6312_v54 }
 0x27d   : > { %v3879_v18 = vadd.f32 %v3878_v23, %v3790_v44 }
 0x27f   : > { %v3933_v47 = vadd.f32 %v3879_v18, %v3259_v45 }
 0x280   : > { %v3883_v60 = vpop.f32.mrf.mxu0 }
 0x281   : > { %v5227_v26 = vpack.c.bf16 %v3933_v47, %v3932_v27  ;;  %v4028_v2 = vadd.f32 %v4027_v30, %v3933_v47  ;;  %v4066_v31 = vmul.f32 %v3933_v47, %v3933_v47  ;;  %v3703_v3 = vpop.f32.mrf.mxu2 }
 0x282   : > { %v3792_v35 = vpop.f32.mrf.mxu3 }
 0x283   : > { %v3263_v40 = vpop.f32.mrf.mxu1  ;;  %5302 = vst [vmem:[%s6452_s30 + $0x40] sm:$0xff] %v5227_v26   ;;  %v4097_v58 = vadd.f32 %v4096_v50, %v4066_v31  ;;  %v3793_v38 = vadd.f32 %v3792_v35, %v3703_v3 }
 0x284   : > { %v3264_v10 = vadd.f32 %v3263_v40, %v6321_v5 }
 0x285   : > { %v3882_v51 = vadd.f32 %v3881_v9, %v3793_v38 }
 0x287   : > { %v3934_v61 = vadd.f32 %v3882_v51, %v3262_v62 }
 0x288   : > { %v3886_v59 = vpop.f32.mrf.mxu0 }
 0x289   : > { %v4029_v37 = vadd.f32 %v4028_v2, %v3934_v61  ;;  %v4067_v39 = vmul.f32 %v3934_v61, %v3934_v61  ;;  %v3705_v11 = vpop.f32.mrf.mxu2 }
 0x28a   : > { %v3794_v33 = vpop.f32.mrf.mxu3 }
 0x28b   : > { %v3266_v20 = vpop.f32.mrf.mxu1  ;;  %v4098_v63 = vadd.f32 %v4097_v58, %v4067_v39  ;;  %v3795_v25 = vadd.f32 %v3794_v33, %v3705_v11 }
 0x28c   : > { %v3267_v23 = vadd.f32 %v3266_v20, %v6330_v6 }
 0x28d   : > { %v3884_v0 = vadd.f32 %v3883_v60, %v3795_v25 }
 0x28f   : > { %v3935_v12 = vadd.f32 %v3884_v0, %v3264_v10 }
 0x290   : > { %v3888_v54 = vpop.f32.mrf.mxu0 }
 0x291   : > { %v5232_v4 = vpack.c.bf16 %v3935_v12, %v3934_v61  ;;  %v4030_v52 = vadd.f32 %v4029_v37, %v3935_v12  ;;  %v4068_v57 = vmul.f32 %v3935_v12, %v3935_v12  ;;  %v3708_v55 = vpop.f32.mrf.mxu2 }
 0x292   : > { %v3797_v21 = vpop.f32.mrf.mxu3 }
 0x293   : > { %v3268_v46 = vpop.f32.mrf.mxu1  ;;  %5303 = vst [vmem:[%s6452_s30 + $0x48] sm:$0xff] %v5232_v4   ;;  %v4099_v53 = vadd.f32 %v4098_v63, %v4068_v57  ;;  %v3798_v16 = vadd.f32 %v3797_v21, %v3708_v55 }
 0x294   : > { %v3269_v7 = vadd.f32 %v3268_v46, %v6339_v14 }
 0x295   : > { %v3887_v1 = vadd.f32 %v3886_v59, %v3798_v16 }
 0x297   : > { %v3936_v41 = vadd.f32 %v3887_v1, %v3267_v23 }
 0x298   : > { %v3891_v5 = vpop.f32.mrf.mxu0 }
 0x299   : > { %v4031_v56 = vadd.f32 %v4030_v52, %v3936_v41  ;;  %v4069_v34 = vmul.f32 %v3936_v41, %v3936_v41  ;;  %v3710_v36 = vpop.f32.mrf.mxu2 }
 0x29a   : > { %v3799_v22 = vpop.f32.mrf.mxu3 }
 0x29b   : > { %v3271_v27 = vpop.f32.mrf.mxu1  ;;  %v4100_v30 = vadd.f32 %v4099_v53, %v4069_v34  ;;  %v3800_v17 = vadd.f32 %v3799_v22, %v3710_v36 }
 0x29c   : > { %v3272_v31 = vadd.f32 %v3271_v27, %v6348_v13 }
 0x29d   : > { %v3889_v9 = vadd.f32 %v3888_v54, %v3800_v17 }
 0x29f   : > { %v3937_v8 = vadd.f32 %v3889_v9, %v3269_v7 }
 0x2a0   : > { %v3893_v6 = vpop.f32.mrf.mxu0 }
 0x2a1   : > { %v5237_v29 = vpack.c.bf16 %v3937_v8, %v3936_v41  ;;  %v4032_v50 = vadd.f32 %v4031_v56, %v3937_v8  ;;  %v4070_v44 = vmul.f32 %v3937_v8, %v3937_v8  ;;  %v3713_v45 = vpop.f32.mrf.mxu2 }
 0x2a2   : > { %v3802_v18 = vpop.f32.mrf.mxu3 }
 0x2a3   : > { %v3273_v47 = vpop.f32.mrf.mxu1  ;;  %5304 = vst [vmem:[%s6452_s30 + $0x50] sm:$0xff] %v5237_v29   ;;  %v4101_v26 = vadd.f32 %v4100_v30, %v4070_v44  ;;  %v3803_v2 = vadd.f32 %v3802_v18, %v3713_v45 }
 0x2a4   : > { %v3274_v37 = vadd.f32 %v3273_v47, %v6357_v24 }
 0x2a5   : > { %v3892_v3 = vadd.f32 %v3891_v5, %v3803_v2 }
 0x2a7   : > { %v3938_v60 = vadd.f32 %v3892_v3, %v3272_v31 }
 0x2a8   : > { %v3896_v14 = vpop.f32.mrf.mxu0 }
 0x2a9   : > { %v4033_v35 = vadd.f32 %v4032_v50, %v3938_v60  ;;  %v4071_v40 = vmul.f32 %v3938_v60, %v3938_v60  ;;  %v3715_v58 = vpop.f32.mrf.mxu2 }
 0x2aa   : > { %v3804_v38 = vpop.f32.mrf.mxu3 }
 0x2ab   : > { %v3276_v62 = vpop.f32.mrf.mxu1  ;;  %v4102_v51 = vadd.f32 %v4101_v26, %v4071_v40  ;;  %v3805_v61 = vadd.f32 %v3804_v38, %v3715_v58 }
 0x2ac   : > { %v3277_v4 = vadd.f32 %v3276_v62, %v6366_v15 }
 0x2ad   : > { %v3894_v39 = vadd.f32 %v3893_v6, %v3805_v61 }
 0x2af   : > { %v3939_v11 = vadd.f32 %v3894_v39, %v3274_v37 }
 0x2b0   : > { %v3898_v13 = vpop.f32.mrf.mxu0 }
 0x2b1   : > { %v5242_v59 = vpack.c.bf16 %v3939_v11, %v3938_v60  ;;  %v4034_v33 = vadd.f32 %v4033_v35, %v3939_v11  ;;  %v4072_v20 = vmul.f32 %v3939_v11, %v3939_v11  ;;  %v3718_v63 = vpop.f32.mrf.mxu2 }
 0x2b2   : > { %v3807_v25 = vpop.f32.mrf.mxu3 }
 0x2b3   : > { %v3278_v10 = vpop.f32.mrf.mxu1  ;;  %5305 = vst [vmem:[%s6452_s30 + $0x58] sm:$0xff] %v5242_v59   ;;  %v4103_v0 = vadd.f32 %v4102_v51, %v4072_v20  ;;  %v3808_v12 = vadd.f32 %v3807_v25, %v3718_v63 }
 0x2b4   : > { %v3279_v1 = vadd.f32 %v3278_v10, %v6375_v49 }
 0x2b5   : > { %v3897_v52 = vadd.f32 %v3896_v14, %v3808_v12 }
 0x2b7   : > { %v3940_v57 = vadd.f32 %v3897_v52, %v3277_v4 }
 0x2b8   : > { %v3901_v21 = vpop.f32.mrf.mxu0 }
 0x2b9   : > { %v4035_v55 = vadd.f32 %v4034_v33, %v3940_v57  ;;  %v4073_v54 = vmul.f32 %v3940_v57, %v3940_v57  ;;  %v3720_v24 = vpop.f32.mrf.mxu2 }
 0x2ba   : > { %v3809_v46 = vpop.f32.mrf.mxu3 }
 0x2bb   : > { %v3281_v53 = vpop.f32.mrf.mxu1  ;;  %v4104_v16 = vadd.f32 %v4103_v0, %v4073_v54  ;;  %v3810_v23 = vadd.f32 %v3809_v46, %v3720_v24 }
 0x2bc   : > { %v3282_v9 = vadd.f32 %v3281_v53, %v6384_v32 }
 0x2bd   : > { %v3899_v41 = vadd.f32 %v3898_v13, %v3810_v23 }
 0x2bf   : > { %v3941_v56 = vadd.f32 %v3899_v41, %v3279_v1 }
 0x2c0   : > { %v3903_v7 = vpop.f32.mrf.mxu0 }
 0x2c1   : > { %v5247_v34 = vpack.c.bf16 %v3941_v56, %v3940_v57  ;;  %v4036_v36 = vadd.f32 %v4035_v55, %v3941_v56  ;;  %v4074_v5 = vmul.f32 %v3941_v56, %v3941_v56  ;;  %v3723_v22 = vpop.f32.mrf.mxu2 }
 0x2c2   : > { %v3812_v15 = vpop.f32.mrf.mxu3 }
 0x2c3   : > { %v3283_v27 = vpop.f32.mrf.mxu1  ;;  %5306 = vst [vmem:[%s6452_s30 + $0x60] sm:$0xff] %v5247_v34   ;;  %v4105_v30 = vadd.f32 %v4104_v16, %v4074_v5  ;;  %v3813_v17 = vadd.f32 %v3812_v15, %v3723_v22 }
 0x2c4   : > { %v3284_v26 = vadd.f32 %v3283_v27, %v6393_v19 }
 0x2c5   : > { %v3902_v8 = vadd.f32 %v3901_v21, %v3813_v17 }
 0x2c7   : > { %v3942_v29 = vadd.f32 %v3902_v8, %v3282_v9 }
 0x2c8   : > { %v3906_v31 = vpop.f32.mrf.mxu0 }
 0x2c9   : > { %v4037_v50 = vadd.f32 %v4036_v36, %v3942_v29  ;;  %v4075_v44 = vmul.f32 %v3942_v29, %v3942_v29  ;;  %v3725_v49 = vpop.f32.mrf.mxu2 }
 0x2ca   : > { %v3814_v45 = vpop.f32.mrf.mxu3 }
 0x2cb   : > { %v4106_v6 = vadd.f32 %v4105_v30, %v4075_v44  ;;  %v3815_v18 = vadd.f32 %v3814_v45, %v3725_v49  ;;  %v3286_v47 = vpop.f32.mrf.mxu1 }
 0x2cc   : > { %v3287_v62 = vadd.f32 %v3286_v47, %v6402_v48 }
 0x2cd   : > { %v3904_v2 = vadd.f32 %v3903_v7, %v3815_v18 }
 0x2cf   : > { %v3943_v3 = vadd.f32 %v3904_v2, %v3284_v26 }
 0x2d0   : > { %v3908_v39 = vpop.f32.mrf.mxu0 }
 0x2d1   : > { %v5252_v60 = vpack.c.bf16 %v3943_v3, %v3942_v29  ;;  %v4038_v35 = vadd.f32 %v4037_v50, %v3943_v3  ;;  %v4076_v40 = vmul.f32 %v3943_v3, %v3943_v3  ;;  %v3728_v58 = vpop.f32.mrf.mxu2 }
 0x2d2   : > { %v3817_v32 = vpop.f32.mrf.mxu3 }
 0x2d3   : > { %5307 = vst [vmem:[%s6452_s30 + $0x68] sm:$0xff] %v5252_v60   ;;  %v4107_v14 = vadd.f32 %v4106_v6, %v4076_v40  ;;  %v3818_v38 = vadd.f32 %v3817_v32, %v3728_v58  ;;  %v3288_v61 = vpop.f32.mrf.mxu1 }
 0x2d4   : > { %v3289_v13 = vadd.f32 %v3288_v61, %v6411_v42 }
 0x2d5   : > { %v3907_v51 = vadd.f32 %v3906_v31, %v3818_v38 }
 0x2d7   : > { %v3944_v37 = vadd.f32 %v3907_v51, %v3287_v62 }
 0x2d8   : > { %v3911_v57 = vpop.f32.mrf.mxu0 }
 0x2d9   : > { %v4039_v11 = vadd.f32 %v4038_v35, %v3944_v37  ;;  %v4077_v19 = vmul.f32 %v3944_v37, %v3944_v37  ;;  %v3730_v59 = vpop.f32.mrf.mxu2 }
 0x2da   : > { %v3819_v33 = vpop.f32.mrf.mxu3 }
 0x2db   : > { %v4108_v20 = vadd.f32 %v4107_v14, %v4077_v19  ;;  %v3820_v63 = vadd.f32 %v3819_v33, %v3730_v59  ;;  %v3291_v0 = vpop.f32.mrf.mxu1 }
 0x2dc   : > { %v3292_v21 = vadd.f32 %v3291_v0, %v6420_v43 }
 0x2dd   : > { %v3909_v25 = vadd.f32 %v3908_v39, %v3820_v63 }
 0x2df   : > { %v3945_v10 = vadd.f32 %v3909_v25, %v3289_v13 }
 0x2e0   : > { %v3913_v36 = vpop.f32.mrf.mxu0 }
 0x2e1   : > { %v5257_v12 = vpack.c.bf16 %v3945_v10, %v3944_v37  ;;  %v4040_v4 = vadd.f32 %v4039_v11, %v3945_v10  ;;  %v4078_v52 = vmul.f32 %v3945_v10, %v3945_v10  ;;  %v3733_v48 = vpop.f32.mrf.mxu2 }
 0x2e2   : > { %v3822_v55 = vpop.f32.mrf.mxu3 }
 0x2e3   : > { %5308 = vst [vmem:[%s6452_s30 + $0x70] sm:$0xff] %v5257_v12   ;;  %v4109_v54 = vadd.f32 %v4108_v20, %v4078_v52  ;;  %v3823_v24 = vadd.f32 %v3822_v55, %v3733_v48  ;;  %v3293_v1 = vpop.f32.mrf.mxu1 }
 0x2e4   : > { %v3294_v5 = vadd.f32 %v3293_v1, %v6429_v28 }
 0x2e5   : > { %v3912_v46 = vadd.f32 %v3911_v57, %v3823_v24 }
 0x2e7   : > { %v3946_v53 = vadd.f32 %v3912_v46, %v3292_v21 }
 0x2e9   : > { %v4041_v16 = vadd.f32 %v4040_v4, %v3946_v53  ;;  %v4079_v23 = vmul.f32 %v3946_v53, %v3946_v53  ;;  %v3735_v42 = vpop.f32.mrf.mxu2 }
 0x2ea   : > { %v3824_v41 = vpop.f32.mrf.mxu3 }
 0x2eb   : > { %v4110_v56 = vadd.f32 %v4109_v54, %v4079_v23  ;;  %v3825_v34 = vadd.f32 %v3824_v41, %v3735_v42 }
 0x2ed   : > { %v3914_v22 = vadd.f32 %v3913_v36, %v3825_v34 }
 0x2ef   : > { %v3947_v15 = vadd.f32 %v3914_v22, %v3294_v5 }
 0x2f1   : > { %v5262_v27 = vpack.c.bf16 %v3947_v15, %v3946_v53  ;;  %v4042_v30 = vadd.f32 %v4041_v16, %v3947_v15  ;;  %v4080_v17 = vmul.f32 %v3947_v15, %v3947_v15 }
 0x2f3   : > { %5309 = vst [vmem:[%s6452_s30 + $0x78] sm:$0xff] %v5262_v27   ;;  %v4043_v43 = vrot.slane %v4042_v30, 4  ;;  %v4111_v7 = vadd.f32 %v4110_v56, %v4080_v17 }
 0x2f5   : > { %v4044_v9 = vadd.f32 %v4043_v43, %v4042_v30  ;;  %v4112_v8 = vrot.slane %v4111_v7, 4 }
 0x2f7   : > { %v4045_v29 = vrot.slane %v4044_v9, 2  ;;  %v4113_v50 = vadd.f32 %v4112_v8, %v4111_v7 }
 0x2f9   : > { %v4046_v44 = vadd.f32 %v4045_v29, %v4044_v9  ;;  %v4114_v49 = vrot.slane %v4113_v50, 2 }
 0x2fb   : > { %v4047_v45 = vrot.slane %v4046_v44, 1  ;;  %v4115_v6 = vadd.f32 %v4114_v49, %v4113_v50 }
 0x2fd   : > { %v4116_v18 = vrot.slane %v4115_v6, 1  ;;  %v4048_v28 = vadd.f32 %v4047_v45, %v4046_v44 }
 0x2ff   : > { %v4117_v47 = vadd.f32 %v4116_v18, %v4115_v6 }
 0x301   : > { %v4118_v26 = vsel %vm936_vm4, %v4048_v28, %v4117_v47 }
 0x302   : > { %4119 = vst [vmem:[%s235_s8] sm:$0x3] %v4118_v26 }
 0x303 PF: > { %s16_s18 = sadd.s32 1, %s5372_s18  }
 0x304   : > { %p13_p4 = scmp.ge.s32.totalorder %s16_s18, 4  }
 0x306   :  { %15 = sbr.rel (!%p13_p4) target bundleno = 1 (0x1), region = 82 }

</bundles_post_ra>
